<compile_context>
chip_gen: v7x
topology: tpu7x:2x2x1
jax: 0.10.0
libtpu: 0.0.40
codegen_flags: <defaults>
</compile_context>

<pallas_src>
import jax
import jax.numpy as jnp
from jax.experimental import pallas as pl
from jax.experimental.pallas import tpu as pltpu

IN_FEATURES = 423
HIDDEN = 1024
OUT_FEATURES = 5

IN_PAD = 512      # 423 -> 512: aligned (8,128) K tiles into the layer-1 MXU matmul
OUT_PAD = 128     # 5 -> 128: lane-dense final matmul tile + unmasked output stores
TILE_B_MAX = 256  # MXU M tile (v6e/v7x); keeps (TILE_B,1024) f32 intermediates ~1 MB


def _round_up(n, m):
    return ((n + m - 1) // m) * m


def dql_kernel(x_ref, w1_ref, b1_ref, w2_ref, b2_ref, w3_ref, b3_ref, o_ref):
    """One batch tile of the fused 3-layer MLP.

    x: (TILE_B, IN_PAD) bf16; w1/w2/w3: bf16 (VMEM-resident across the grid);
    b1/b2/b3: f32; o: (TILE_B, OUT_PAD) f32.
    Matmuls run bf16 x bf16 on the MXU with f32 accumulation; bias add,
    sigmoid and LeakyReLU stay in f32.
    """
    # Layer 1: Linear(512 -> 1024) + sigmoid
    h1 = jnp.dot(x_ref[...], w1_ref[...], preferred_element_type=jnp.float32)
    h1 = jax.nn.sigmoid(h1 + b1_ref[...])

    # Layer 2: Linear(1024 -> 1024) + sigmoid
    h2 = jnp.dot(h1.astype(jnp.bfloat16), w2_ref[...],
                 preferred_element_type=jnp.float32)
    h2 = jax.nn.sigmoid(h2 + b2_ref[...])

    # Output layer: Linear(1024 -> 128, padded from 5) + LeakyReLU(0.01)
    z = jnp.dot(h2.astype(jnp.bfloat16), w3_ref[...],
                preferred_element_type=jnp.float32) + b3_ref[...]
    o_ref[...] = jnp.where(z >= 0, z, 0.01 * z)


@jax.jit
def dql_forward(x, w1, b1, w2, b2, w3, b3):
    """x: (B, 423) f32. Weights stored as (in, out). Returns (B, 5) f32."""
    B = x.shape[0]
    tile_b = min(TILE_B_MAX, _round_up(B, 8))
    b_pad = _round_up(B, tile_b)
    grid = (b_pad // tile_b,)

    # Zero-pad to lane/sublane-friendly shapes (zeros do not change the math)
    # and compress weights/activations to bf16 to halve HBM traffic.
    x_p = jnp.zeros((b_pad, IN_PAD), jnp.bfloat16).at[:B, :IN_FEATURES].set(
        x.astype(jnp.bfloat16))
    w1_p = jnp.zeros((IN_PAD, HIDDEN), jnp.bfloat16).at[:IN_FEATURES, :].set(
        w1.astype(jnp.bfloat16))
    w2_p = w2.astype(jnp.bfloat16)
    w3_p = jnp.zeros((HIDDEN, OUT_PAD), jnp.bfloat16).at[:, :OUT_FEATURES].set(
        w3.astype(jnp.bfloat16))
    b3_p = jnp.zeros((1, OUT_PAD), jnp.float32).at[:, :OUT_FEATURES].set(b3)

    const = lambda i: (0, 0)  # weights/biases: same block every step -> stay resident
    out = pl.pallas_call(
        dql_kernel,
        out_shape=jax.ShapeDtypeStruct((b_pad, OUT_PAD), jnp.float32),
        grid=grid,
        in_specs=[
            pl.BlockSpec((tile_b, IN_PAD), lambda i: (i, 0)),   # x: batch-tiled
            pl.BlockSpec((IN_PAD, HIDDEN), const),              # w1
            pl.BlockSpec((1, HIDDEN), const),                   # b1
            pl.BlockSpec((HIDDEN, HIDDEN), const),              # w2
            pl.BlockSpec((1, HIDDEN), const),                   # b2
            pl.BlockSpec((HIDDEN, OUT_PAD), const),             # w3 (padded)
            pl.BlockSpec((1, OUT_PAD), const),                  # b3 (padded)
        ],
        out_specs=pl.BlockSpec((tile_b, OUT_PAD), lambda i: (i, 0)),
        compiler_params=pltpu.CompilerParams(
            dimension_semantics=("parallel",),   # megacore-shard the batch on v7x
            vmem_limit_bytes=48 * 1024 * 1024,   # budgeted vs v7x's 64 MiB VMEM
        ),
    )(x_p, w1_p, b1, w2_p, b2, w3_p, b3_p)

    return out[:B, :OUT_FEATURES]


def init_params(key):
    """Deterministic init mimicking nn.Linear's U(-1/sqrt(fan_in), 1/sqrt(fan_in))."""
    ks = jax.random.split(key, 6)

    def linear(kw, kb, fan_in, fan_out):
        bound = 1.0 / jnp.sqrt(jnp.float32(fan_in))
        w = jax.random.uniform(kw, (fan_in, fan_out), jnp.float32, -bound, bound)
        b = jax.random.uniform(kb, (1, fan_out), jnp.float32, -bound, bound)
        return w, b

    w1, b1 = linear(ks[0], ks[1], IN_FEATURES, HIDDEN)
    w2, b2 = linear(ks[2], ks[3], HIDDEN, HIDDEN)
    w3, b3 = linear(ks[4], ks[5], HIDDEN, OUT_FEATURES)
    return w1, b1, w2, b2, w3, b3


def reference_forward(x, w1, b1, w2, b2, w3, b3):
    """Pure-JAX f32 reference matching the PyTorch forward."""
    h1 = jax.nn.sigmoid(x @ w1 + b1)
    h2 = jax.nn.sigmoid(h1 @ w2 + b2)
    z = h2 @ w3 + b3
    return jnp.where(z >= 0, z, 0.01 * z)


# TODO(synk): remember/samplebatch/optimizer/MSELoss are replay-buffer/training
# utilities with no forward-pass semantics; only forward() is implemented here.

if __name__ == "__main__":
    key = jax.random.PRNGKey(0)
    k_params, k_x_small, k_x_large = jax.random.split(key, 3)
    params = init_params(k_params)

    # Small batch (single grid point, padded to 8 rows) and a larger batch
    # (multi-step batch grid, TILE_B=256, padded to 512 rows).
    for batch, kx in ((4, k_x_small), (300, k_x_large)):
        x = jax.random.normal(kx, (batch, IN_FEATURES), jnp.float32)
        out = jax.block_until_ready(dql_forward(x, *params))
        ref = reference_forward(x, *params)
        assert out.shape == (batch, OUT_FEATURES)
        # bf16 weights/activations in the kernel => loose tolerance vs f32 reference.
        err = float(jnp.max(jnp.abs(out - ref)))
        assert jnp.allclose(out, ref, atol=3e-2, rtol=3e-2), (
            f"mismatch vs reference at batch={batch}: max abs err {err}")

    print("KERNEL_OK")
</pallas_src>

<mosaic_0001>
module attributes {stable_mosaic.version = 11 : i64} {
  func.func @dql_kernel(%arg0: i32, %arg1: memref<8x512xbf16, #tpu.memory_space<vmem>>, %arg2: memref<512x1024xbf16, #tpu.memory_space<vmem>>, %arg3: memref<1x1024xf32, #tpu.memory_space<vmem>>, %arg4: memref<1024x1024xbf16, #tpu.memory_space<vmem>>, %arg5: memref<1x1024xf32, #tpu.memory_space<vmem>>, %arg6: memref<1024x128xbf16, #tpu.memory_space<vmem>>, %arg7: memref<1x128xf32, #tpu.memory_space<vmem>>, %arg8: memref<8x128xf32, #tpu.memory_space<vmem>>) attributes {dimension_semantics = [#tpu.dimension_semantics<parallel>], iteration_bounds = array<i64: 1>, scalar_prefetch = 0 : i64, scratch_operands = 0 : i64, tpu.core_type = #tpu.core_type<tc>, window_params = [{transform_indices = @transform_0, window_bounds = array<i64: 8, 512>}, {pipeline_mode = #tpu.pipeline_mode<synchronous>, transform_indices = @transform_1, window_bounds = array<i64: 512, 1024>}, {pipeline_mode = #tpu.pipeline_mode<synchronous>, transform_indices = @transform_2, window_bounds = array<i64: 1, 1024>}, {pipeline_mode = #tpu.pipeline_mode<synchronous>, transform_indices = @transform_3, window_bounds = array<i64: 1024, 1024>}, {pipeline_mode = #tpu.pipeline_mode<synchronous>, transform_indices = @transform_4, window_bounds = array<i64: 1, 1024>}, {pipeline_mode = #tpu.pipeline_mode<synchronous>, transform_indices = @transform_5, window_bounds = array<i64: 1024, 128>}, {pipeline_mode = #tpu.pipeline_mode<synchronous>, transform_indices = @transform_6, window_bounds = array<i64: 1, 128>}, {transform_indices = @transform_7, window_bounds = array<i64: 8, 128>}]} {
    %c0 = arith.constant 0 : index
    %c0_0 = arith.constant 0 : index
    %0 = vector.load %arg1[%c0, %c0_0] : memref<8x512xbf16, #tpu.memory_space<vmem>>, vector<8x512xbf16>
    %c0_1 = arith.constant 0 : index
    %c0_2 = arith.constant 0 : index
    %1 = vector.load %arg2[%c0_1, %c0_2] : memref<512x1024xbf16, #tpu.memory_space<vmem>>, vector<512x1024xbf16>
    %cst = arith.constant dense<0.000000e+00> : vector<8x1024xf32>
    %2 = tpu.matmul %0, %1, %cst {dimension_numbers = #tpu.dot_dimension_numbers<[1], [0], [0], [1], [0, 0, 1, 1], [], []>} : vector<8x512xbf16>, vector<512x1024xbf16>, vector<8x1024xf32> -> vector<8x1024xf32>
    %c0_3 = arith.constant 0 : index
    %c0_4 = arith.constant 0 : index
    %3 = vector.load %arg3[%c0_3, %c0_4] : memref<1x1024xf32, #tpu.memory_space<vmem>>, vector<1x1024xf32>
    %4 = vector.broadcast %3 : vector<1x1024xf32> to vector<8x1024xf32>
    %5 = arith.addf %2, %4 : vector<8x1024xf32>
    %6 = arith.negf %5 : vector<8x1024xf32>
    %7 = math.exp %6 : vector<8x1024xf32>
    %cst_5 = arith.constant 1.000000e+00 : f32
    %8 = vector.broadcast %cst_5 : f32 to vector<8x1024xf32>
    %9 = arith.addf %8, %7 : vector<8x1024xf32>
    %10 = arith.divf %8, %9 : vector<8x1024xf32>
    %11 = arith.truncf %10 : vector<8x1024xf32> to vector<8x1024xbf16>
    %c0_6 = arith.constant 0 : index
    %c0_7 = arith.constant 0 : index
    %12 = vector.load %arg4[%c0_6, %c0_7] : memref<1024x1024xbf16, #tpu.memory_space<vmem>>, vector<1024x1024xbf16>
    %cst_8 = arith.constant dense<0.000000e+00> : vector<8x1024xf32>
    %13 = tpu.matmul %11, %12, %cst_8 {dimension_numbers = #tpu.dot_dimension_numbers<[1], [0], [0], [1], [0, 0, 1, 1], [], []>} : vector<8x1024xbf16>, vector<1024x1024xbf16>, vector<8x1024xf32> -> vector<8x1024xf32>
    %c0_9 = arith.constant 0 : index
    %c0_10 = arith.constant 0 : index
    %14 = vector.load %arg5[%c0_9, %c0_10] : memref<1x1024xf32, #tpu.memory_space<vmem>>, vector<1x1024xf32>
    %15 = vector.broadcast %14 : vector<1x1024xf32> to vector<8x1024xf32>
    %16 = arith.addf %13, %15 : vector<8x1024xf32>
    %17 = arith.negf %16 : vector<8x1024xf32>
    %18 = math.exp %17 : vector<8x1024xf32>
    %cst_11 = arith.constant 1.000000e+00 : f32
    %19 = vector.broadcast %cst_11 : f32 to vector<8x1024xf32>
    %20 = arith.addf %19, %18 : vector<8x1024xf32>
    %21 = arith.divf %19, %20 : vector<8x1024xf32>
    %22 = arith.truncf %21 : vector<8x1024xf32> to vector<8x1024xbf16>
    %c0_12 = arith.constant 0 : index
    %c0_13 = arith.constant 0 : index
    %23 = vector.load %arg6[%c0_12, %c0_13] : memref<1024x128xbf16, #tpu.memory_space<vmem>>, vector<1024x128xbf16>
    %cst_14 = arith.constant dense<0.000000e+00> : vector<8x128xf32>
    %24 = tpu.matmul %22, %23, %cst_14 {dimension_numbers = #tpu.dot_dimension_numbers<[1], [0], [0], [1], [0, 0, 1, 1], [], []>} : vector<8x1024xbf16>, vector<1024x128xbf16>, vector<8x128xf32> -> vector<8x128xf32>
    %c0_15 = arith.constant 0 : index
    %c0_16 = arith.constant 0 : index
    %25 = vector.load %arg7[%c0_15, %c0_16] : memref<1x128xf32, #tpu.memory_space<vmem>>, vector<1x128xf32>
    %26 = vector.broadcast %25 : vector<1x128xf32> to vector<8x128xf32>
    %27 = arith.addf %24, %26 : vector<8x128xf32>
    %cst_17 = arith.constant 0.000000e+00 : f32
    %28 = vector.broadcast %cst_17 : f32 to vector<8x128xf32>
    %29 = arith.cmpf oge, %27, %28 : vector<8x128xf32>
    %cst_18 = arith.constant 0.00999999977 : f32
    %30 = vector.broadcast %cst_18 : f32 to vector<8x128xf32>
    %31 = arith.mulf %30, %27 : vector<8x128xf32>
    %32 = arith.select %29, %27, %31 : vector<8x128xi1>, vector<8x128xf32>
    %c0_19 = arith.constant 0 : index
    %c0_20 = arith.constant 0 : index
    %33 = vector.load %arg8[%c0_19, %c0_20] : memref<8x128xf32, #tpu.memory_space<vmem>>, vector<8x128xf32>
    tpu.vector_store %arg8[%c0_19, %c0_20], %32 {strides = array<i32>} : memref<8x128xf32, #tpu.memory_space<vmem>>, vector<8x128xf32>,
    return
  }
  func.func @transform_0(%arg0: i32) -> (i32, i32) {
    %c0_i32 = arith.constant 0 : i32
    %c0_i32_0 = arith.constant 0 : i32
    return %arg0, %c0_i32 : i32, i32
  }
  func.func @transform_1(%arg0: i32) -> (i32, i32) {
    %c0_i32 = arith.constant 0 : i32
    %c0_i32_0 = arith.constant 0 : i32
    %c0_i32_1 = arith.constant 0 : i32
    return %c0_i32, %c0_i32_0 : i32, i32
  }
  func.func @transform_2(%arg0: i32) -> (i32, i32) {
    %c0_i32 = arith.constant 0 : i32
    %c0_i32_0 = arith.constant 0 : i32
    %c0_i32_1 = arith.constant 0 : i32
    return %c0_i32, %c0_i32_0 : i32, i32
  }
  func.func @transform_3(%arg0: i32) -> (i32, i32) {
    %c0_i32 = arith.constant 0 : i32
    %c0_i32_0 = arith.constant 0 : i32
    %c0_i32_1 = arith.constant 0 : i32
    return %c0_i32, %c0_i32_0 : i32, i32
  }
  func.func @transform_4(%arg0: i32) -> (i32, i32) {
    %c0_i32 = arith.constant 0 : i32
    %c0_i32_0 = arith.constant 0 : i32
    %c0_i32_1 = arith.constant 0 : i32
    return %c0_i32, %c0_i32_0 : i32, i32
  }
  func.func @transform_5(%arg0: i32) -> (i32, i32) {
    %c0_i32 = arith.constant 0 : i32
    %c0_i32_0 = arith.constant 0 : i32
    %c0_i32_1 = arith.constant 0 : i32
    return %c0_i32, %c0_i32_0 : i32, i32
  }
  func.func @transform_6(%arg0: i32) -> (i32, i32) {
    %c0_i32 = arith.constant 0 : i32
    %c0_i32_0 = arith.constant 0 : i32
    %c0_i32_1 = arith.constant 0 : i32
    return %c0_i32, %c0_i32_0 : i32, i32
  }
  func.func @transform_7(%arg0: i32) -> (i32, i32) {
    %c0_i32 = arith.constant 0 : i32
    %c0_i32_0 = arith.constant 0 : i32
    return %arg0, %c0_i32 : i32, i32
  }
}

</mosaic_0001>

<bundles_post_ra>
// kernel: dql_forward.1
= control target key start
LH: loop header
LB: loop body
LE: loop exit
PB: predicated region body
PF: predicated region fallthrough
CT: control target
= control target key end

     0   :  { %s10402_s1 = inlined_call_operand.vmem [shape: bf16[512,1024], index: 1, kind: input, shape index: {}]   ;;  %s10403_s0 = inlined_call_operand.vmem [shape: bf16[8,512], index: 0, kind: input, shape index: {}]   ;;  %s10404_s3 = inlined_call_operand.vmem [shape: bf16[1024,1024], index: 3, kind: input, shape index: {}]   ;;  %s10405_s2 = inlined_call_operand.vmem [shape: f32[1,1024], index: 2, kind: input, shape index: {}]   ;;  %s10406_s5 = inlined_call_operand.vmem [shape: bf16[1024,128], index: 5, kind: input, shape index: {}]   ;;  %s10407_s4 = inlined_call_operand.vmem [shape: f32[1,1024], index: 4, kind: input, shape index: {}]   ;;  %s10408_s6 = inlined_call_operand.vmem [shape: f32[1,128], index: 6, kind: input, shape index: {}]   ;;  %s10409_s7 = inlined_call_operand.vmem [shape: f32[8,128], index: 7, kind: output, shape index: {}]  }
   0x1   :  { %v29_v0 = vld [vmem:[%s10402_s1] sm:$0xff]  ;;  %v30_v2 = vld [vmem:[%s10402_s1 + $0x8] sm:$0xff] }
   0x2   :  { %v33_v1 = vld [vmem:[%s10402_s1 + $0x20] sm:$0xff]  ;;  %v34_v4 = vld [vmem:[%s10402_s1 + $0x28] sm:$0xff] }
   0x3   :  { %v6523_v3 = vcombine.high %v29_v0, %v33_v1  ;;  %v6522_v5 = vcombine.low %v29_v0, %v33_v1  ;;  %v37_v6 = vld [vmem:[%s10402_s1 + $0x40] sm:$0xff]  ;;  %v6525_v8 = vcombine.high %v30_v2, %v34_v4  ;;  %v6524_v9 = vcombine.low %v30_v2, %v34_v4  ;;  %v38_v11 = vld [vmem:[%s10402_s1 + $0x48] sm:$0xff] }
   0x4   :  { %v41_v7 = vld [vmem:[%s10402_s1 + $0x60] sm:$0xff]  ;;  %v42_v12 = vld [vmem:[%s10402_s1 + $0x68] sm:$0xff] }
   0x5   :  { %v6531_v10 = vcombine.high %v37_v6, %v41_v7  ;;  %v45_v13 = vld [vmem:[%s10402_s1 + $0x80] sm:$0xff]  ;;  %1621 = vmatprep.subr.bf16.mxu0 %v6523_v3  ;;  %v6533_v14 = vcombine.high %v38_v11, %v42_v12  ;;  %v46_v16 = vld [vmem:[%s10402_s1 + $0x88] sm:$0xff]  ;;  %1703 = vmatprep.subr.bf16.mxu1 %v6525_v8  ;;  %v6530_v18 = vcombine.low %v37_v6, %v41_v7 }
   0x6   :  { %v49_v15 = vld [vmem:[%s10402_s1 + $0xa0] sm:$0xff]  ;;  %v50_v17 = vld [vmem:[%s10402_s1 + $0xa8] sm:$0xff]  ;;  %1622 = vmatpush1.bf16.msra.mxu0 %v6522_v5  ;;  %1704 = vmatpush1.bf16.msra.mxu1 %v6524_v9  ;;  %v6532_v19 = vcombine.low %v38_v11, %v42_v12 }
   0x7   :  { %1623 = vmatprep.subr.bf16.mxu0 %v6531_v10  ;;  %v6539_v20 = vcombine.high %v45_v13, %v49_v15  ;;  %1705 = vmatprep.subr.bf16.mxu1 %v6533_v14  ;;  %v6541_v21 = vcombine.high %v46_v16, %v50_v17  ;;  %v53_v22 = vld [vmem:[%s10402_s1 + $0xc0] sm:$0xff]  ;;  %v54_v24 = vld [vmem:[%s10402_s1 + $0xc8] sm:$0xff]  ;;  %v6538_v26 = vcombine.low %v45_v13, %v49_v15 }
   0x8   :  { %v57_v23 = vld [vmem:[%s10402_s1 + $0xe0] sm:$0xff]  ;;  %v58_v25 = vld [vmem:[%s10402_s1 + $0xe8] sm:$0xff]  ;;  %v6540_v27 = vcombine.low %v46_v16, %v50_v17 }
   0x9   :  { %v6547_v28 = vcombine.high %v53_v22, %v57_v23  ;;  %v6549_v29 = vcombine.high %v54_v24, %v58_v25  ;;  %v61_v30 = vld [vmem:[%s10402_s1 + $0x100] sm:$0xff]  ;;  %v62_v32 = vld [vmem:[%s10402_s1 + $0x108] sm:$0xff]  ;;  %v6546_v34 = vcombine.low %v53_v22, %v57_v23  ;;  %v6548_v35 = vcombine.low %v54_v24, %v58_v25 }
   0xa   :  { %1624 = vmatpush1.bf16.msra.mxu0 %v6530_v18  ;;  %1706 = vmatpush1.bf16.msra.mxu1 %v6532_v19  ;;  %v65_v31 = vld [vmem:[%s10402_s1 + $0x120] sm:$0xff]  ;;  %v66_v33 = vld [vmem:[%s10402_s1 + $0x128] sm:$0xff] }
   0xb   :  { %1625 = vmatprep.subr.bf16.mxu0 %v6539_v20  ;;  %1707 = vmatprep.subr.bf16.mxu1 %v6541_v21  ;;  %v6555_v36 = vcombine.high %v61_v30, %v65_v31  ;;  %v6557_v37 = vcombine.high %v62_v32, %v66_v33  ;;  %v69_v38 = vld [vmem:[%s10402_s1 + $0x140] sm:$0xff]  ;;  %v70_v40 = vld [vmem:[%s10402_s1 + $0x148] sm:$0xff]  ;;  %v6554_v42 = vcombine.low %v61_v30, %v65_v31 }
   0xc   :  { %v73_v39 = vld [vmem:[%s10402_s1 + $0x160] sm:$0xff]  ;;  %v74_v41 = vld [vmem:[%s10402_s1 + $0x168] sm:$0xff]  ;;  %v6556_v43 = vcombine.low %v62_v32, %v66_v33 }
   0xd   :  { %v6563_v44 = vcombine.high %v69_v38, %v73_v39  ;;  %v6565_v45 = vcombine.high %v70_v40, %v74_v41  ;;  %v77_v46 = vld [vmem:[%s10402_s1 + $0x180] sm:$0xff]  ;;  %v78_v48 = vld [vmem:[%s10402_s1 + $0x188] sm:$0xff]  ;;  %v6562_v50 = vcombine.low %v69_v38, %v73_v39  ;;  %v6564_v51 = vcombine.low %v70_v40, %v74_v41 }
   0xe   :  { %1626 = vmatpush1.bf16.msra.mxu0 %v6538_v26  ;;  %1708 = vmatpush1.bf16.msra.mxu1 %v6540_v27  ;;  %v81_v47 = vld [vmem:[%s10402_s1 + $0x1a0] sm:$0xff]  ;;  %v82_v49 = vld [vmem:[%s10402_s1 + $0x1a8] sm:$0xff] }
   0xf   :  { %1627 = vmatprep.subr.bf16.mxu0 %v6547_v28  ;;  %1709 = vmatprep.subr.bf16.mxu1 %v6549_v29  ;;  %v6571_v52 = vcombine.high %v77_v46, %v81_v47  ;;  %v7799_v53 = vld [vmem:[%s10403_s0] sm:$0xff]  ;;  %v6573_v54 = vcombine.high %v78_v48, %v82_v49  ;;  %v86_v58 = vld [vmem:[%s10402_s1 + $0x1c8] sm:$0xff]  ;;  %v6570_v60 = vcombine.low %v77_v46, %v81_v47 }
  0x10   :  { %v85_v55 = vld [vmem:[%s10402_s1 + $0x1c0] sm:$0xff]  ;;  %v7809_v57 = vcombine.high %v7799_v53, %v7799_v53  ;;  %v90_v59 = vld [vmem:[%s10402_s1 + $0x1e8] sm:$0xff]  ;;  %v6572_v61 = vcombine.low %v78_v48, %v82_v49 }
  0x11   :  { %v89_v56 = vld [vmem:[%s10402_s1 + $0x1e0] sm:$0xff]  ;;  %v6581_v63 = vcombine.high %v86_v58, %v90_v59  ;;  %v94_v2 = vld [vmem:[%s10402_s1 + $0x208] sm:$0xff]  ;;  %v6580_v5 = vcombine.low %v86_v58, %v90_v59 }
  0x12   :  { %1628 = vmatpush1.bf16.msra.mxu0 %v6546_v34  ;;  %1710 = vmatpush1.bf16.msra.mxu1 %v6548_v35  ;;  %v6579_v62 = vcombine.high %v85_v55, %v89_v56  ;;  %v93_v0 = vld [vmem:[%s10402_s1 + $0x200] sm:$0xff]  ;;  %v98_v3 = vld [vmem:[%s10402_s1 + $0x228] sm:$0xff]  ;;  %v6578_v4 = vcombine.low %v85_v55, %v89_v56 }
  0x13   :  { %1629 = vmatprep.subr.bf16.mxu0 %v6555_v36  ;;  %1711 = vmatprep.subr.bf16.mxu1 %v6557_v37  ;;  %v97_v1 = vld [vmem:[%s10402_s1 + $0x220] sm:$0xff]  ;;  %v6589_v7 = vcombine.high %v94_v2, %v98_v3  ;;  %v102_v10 = vld [vmem:[%s10402_s1 + $0x248] sm:$0xff]  ;;  %v6588_v13 = vcombine.low %v94_v2, %v98_v3 }
  0x14   :  { %1653 = vmatprep.mubr.bf16.mxu0 %v7809_v57  ;;  %1735 = vmatprep.mubr.bf16.mxu1 %v7809_v57  ;;  %v6587_v6 = vcombine.high %v93_v0, %v97_v1  ;;  %v101_v8 = vld [vmem:[%s10402_s1 + $0x240] sm:$0xff]  ;;  %v106_v11 = vld [vmem:[%s10402_s1 + $0x268] sm:$0xff]  ;;  %v6586_v12 = vcombine.low %v93_v0, %v97_v1 }
  0x15   :  { %v105_v9 = vld [vmem:[%s10402_s1 + $0x260] sm:$0xff]  ;;  %v6597_v15 = vcombine.high %v102_v10, %v106_v11  ;;  %v110_v18 = vld [vmem:[%s10402_s1 + $0x288] sm:$0xff]  ;;  %v6596_v21 = vcombine.low %v102_v10, %v106_v11 }
  0x16   :  { %1630 = vmatpush1.bf16.msra.mxu0 %v6554_v42  ;;  %1712 = vmatpush1.bf16.msra.mxu1 %v6556_v43  ;;  %v6595_v14 = vcombine.high %v101_v8, %v105_v9  ;;  %v109_v16 = vld [vmem:[%s10402_s1 + $0x280] sm:$0xff]  ;;  %v114_v19 = vld [vmem:[%s10402_s1 + $0x2a8] sm:$0xff]  ;;  %v6594_v20 = vcombine.low %v101_v8, %v105_v9 }
  0x17   :  { %1631 = vmatprep.subr.bf16.mxu0 %v6563_v44  ;;  %1713 = vmatprep.subr.bf16.mxu1 %v6565_v45  ;;  %v113_v17 = vld [vmem:[%s10402_s1 + $0x2a0] sm:$0xff]  ;;  %v6605_v23 = vcombine.high %v110_v18, %v114_v19  ;;  %v118_v26 = vld [vmem:[%s10402_s1 + $0x2c8] sm:$0xff]  ;;  %v6604_v29 = vcombine.low %v110_v18, %v114_v19 }
  0x18   :  { %v6603_v22 = vcombine.high %v109_v16, %v113_v17  ;;  %v117_v24 = vld [vmem:[%s10402_s1 + $0x2c0] sm:$0xff]  ;;  %v122_v27 = vld [vmem:[%s10402_s1 + $0x2e8] sm:$0xff]  ;;  %v6602_v28 = vcombine.low %v109_v16, %v113_v17 }
  0x19   :  { %v121_v25 = vld [vmem:[%s10402_s1 + $0x2e0] sm:$0xff]  ;;  %v6613_v31 = vcombine.high %v118_v26, %v122_v27  ;;  %v126_v34 = vld [vmem:[%s10402_s1 + $0x308] sm:$0xff]  ;;  %v6612_v37 = vcombine.low %v118_v26, %v122_v27 }
  0x1a   :  { %1632 = vmatpush1.bf16.msra.mxu0 %v6562_v50  ;;  %1714 = vmatpush1.bf16.msra.mxu1 %v6564_v51  ;;  %v6611_v30 = vcombine.high %v117_v24, %v121_v25  ;;  %v125_v32 = vld [vmem:[%s10402_s1 + $0x300] sm:$0xff]  ;;  %v130_v35 = vld [vmem:[%s10402_s1 + $0x328] sm:$0xff]  ;;  %v6610_v36 = vcombine.low %v117_v24, %v121_v25 }
  0x1b   :  { %1633 = vmatprep.subr.bf16.mxu0 %v6571_v52  ;;  %1715 = vmatprep.subr.bf16.mxu1 %v6573_v54  ;;  %v129_v33 = vld [vmem:[%s10402_s1 + $0x320] sm:$0xff]  ;;  %v6621_v39 = vcombine.high %v126_v34, %v130_v35  ;;  %v134_v42 = vld [vmem:[%s10402_s1 + $0x348] sm:$0xff]  ;;  %v6620_v45 = vcombine.low %v126_v34, %v130_v35 }
  0x1c   :  { %v6619_v38 = vcombine.high %v125_v32, %v129_v33  ;;  %v133_v40 = vld [vmem:[%s10402_s1 + $0x340] sm:$0xff]  ;;  %v138_v43 = vld [vmem:[%s10402_s1 + $0x368] sm:$0xff]  ;;  %v6618_v44 = vcombine.low %v125_v32, %v129_v33 }
  0x1d   :  { %v137_v41 = vld [vmem:[%s10402_s1 + $0x360] sm:$0xff]  ;;  %v6629_v47 = vcombine.high %v134_v42, %v138_v43  ;;  %v142_v50 = vld [vmem:[%s10402_s1 + $0x388] sm:$0xff]  ;;  %v6628_v54 = vcombine.low %v134_v42, %v138_v43 }
  0x1e   :  { %1634 = vmatpush1.bf16.msra.mxu0 %v6570_v60  ;;  %1716 = vmatpush1.bf16.msra.mxu1 %v6572_v61  ;;  %v6627_v46 = vcombine.high %v133_v40, %v137_v41  ;;  %v141_v48 = vld [vmem:[%s10402_s1 + $0x380] sm:$0xff]  ;;  %v146_v51 = vld [vmem:[%s10402_s1 + $0x3a8] sm:$0xff]  ;;  %v6626_v52 = vcombine.low %v133_v40, %v137_v41 }
  0x1f   :  { %1635 = vmatprep.subr.bf16.mxu0 %v6579_v62  ;;  %1717 = vmatprep.subr.bf16.mxu1 %v6581_v63  ;;  %v145_v49 = vld [vmem:[%s10402_s1 + $0x3a0] sm:$0xff]  ;;  %v6637_v56 = vcombine.high %v142_v50, %v146_v51  ;;  %v150_v60 = vld [vmem:[%s10402_s1 + $0x3c8] sm:$0xff]  ;;  %v6636_v63 = vcombine.low %v142_v50, %v146_v51 }
  0x20   :  { %v6635_v55 = vcombine.high %v141_v48, %v145_v49  ;;  %v149_v58 = vld [vmem:[%s10402_s1 + $0x3c0] sm:$0xff]  ;;  %v154_v61 = vld [vmem:[%s10402_s1 + $0x3e8] sm:$0xff]  ;;  %v6634_v62 = vcombine.low %v141_v48, %v145_v49 }
  0x21   :  { %v153_v59 = vld [vmem:[%s10402_s1 + $0x3e0] sm:$0xff]  ;;  %v6645_v1 = vcombine.high %v150_v60, %v154_v61 }
  0x22   :  { %1636 = vmatpush1.bf16.msra.mxu0 %v6578_v4  ;;  %1718 = vmatpush1.bf16.msra.mxu1 %v6580_v5  ;;  %v6643_v0 = vcombine.high %v149_v58, %v153_v59  ;;  %v157_v2 = vld [vmem:[%s10402_s1 + $0x400] sm:$0xff]  ;;  %v158_v4 = vld [vmem:[%s10402_s1 + $0x408] sm:$0xff] }
  0x23   :  { %1637 = vmatprep.subr.bf16.mxu0 %v6587_v6  ;;  %1719 = vmatprep.subr.bf16.mxu1 %v6589_v7  ;;  %v161_v3 = vld [vmem:[%s10402_s1 + $0x420] sm:$0xff]  ;;  %v162_v5 = vld [vmem:[%s10402_s1 + $0x428] sm:$0xff]  ;;  %v6642_v6 = vcombine.low %v149_v58, %v153_v59  ;;  %v6644_v7 = vcombine.low %v150_v60, %v154_v61 }
  0x24   :  { %v6651_v8 = vcombine.high %v157_v2, %v161_v3  ;;  %v6653_v9 = vcombine.high %v158_v4, %v162_v5  ;;  %v165_v10 = vld [vmem:[%s10402_s1 + $0x440] sm:$0xff]  ;;  %v6650_v16 = vcombine.low %v157_v2, %v161_v3  ;;  %v6652_v17 = vcombine.low %v158_v4, %v162_v5 }
  0x25   :  { %v169_v11 = vld [vmem:[%s10402_s1 + $0x460] sm:$0xff] }
  0x26   :  { %1638 = vmatpush1.bf16.msra.mxu0 %v6586_v12  ;;  %1720 = vmatpush1.bf16.msra.mxu1 %v6588_v13  ;;  %v7935_v12 = vcombine.low %v7799_v53, %v7799_v53  ;;  %v166_v13 = vld [vmem:[%s10402_s1 + $0x448] sm:$0xff]  ;;  %v6659_v53 = vcombine.high %v165_v10, %v169_v11  ;;  %v173_v19 = vld [vmem:[%s10402_s1 + $0x480] sm:$0xff]  ;;  %v6658_v24 = vcombine.low %v165_v10, %v169_v11 }
  0x27   :  { %1639 = vmatprep.subr.bf16.mxu0 %v6595_v14  ;;  %1721 = vmatprep.subr.bf16.mxu1 %v6597_v15  ;;  %v170_v14 = vld [vmem:[%s10402_s1 + $0x468] sm:$0xff] }
  0x28   :  { %v7946_v15 = vld [vmem:[%s10403_s0 + $0x8] sm:$0xff]  ;;  %v6661_v18 = vcombine.high %v166_v13, %v170_v14  ;;  %v6660_v25 = vcombine.low %v166_v13, %v170_v14 }
  0x2a   :  { %1640 = vmatpush1.bf16.msra.mxu0 %v6594_v20  ;;  %1722 = vmatpush1.bf16.msra.mxu1 %v6596_v21  ;;  %v177_v20 = vld [vmem:[%s10402_s1 + $0x4a0] sm:$0xff]  ;;  %v7956_v21 = vcombine.high %v7946_v15, %v7946_v15 }
  0x2b   :  { %1641 = vmatprep.subr.bf16.mxu0 %v6603_v22  ;;  %1723 = vmatprep.subr.bf16.mxu1 %v6605_v23  ;;  %v174_v22 = vld [vmem:[%s10402_s1 + $0x488] sm:$0xff]  ;;  %v6667_v26 = vcombine.high %v173_v19, %v177_v20  ;;  %v6666_v32 = vcombine.low %v173_v19, %v177_v20 }
  0x2c   :  { %v178_v23 = vld [vmem:[%s10402_s1 + $0x4a8] sm:$0xff] }
  0x2d   :  { %v6669_v27 = vcombine.high %v174_v22, %v178_v23  ;;  %v6668_v33 = vcombine.low %v174_v22, %v178_v23 }
  0x2e   :  { %1642 = vmatpush1.bf16.msra.mxu0 %v6602_v28  ;;  %1724 = vmatpush1.bf16.msra.mxu1 %v6604_v29  ;;  %v181_v28 = vld [vmem:[%s10402_s1 + $0x4c0] sm:$0xff] }
  0x2f   :  { %1643 = vmatprep.subr.bf16.mxu0 %v6611_v30  ;;  %1725 = vmatprep.subr.bf16.mxu1 %v6613_v31  ;;  %v185_v29 = vld [vmem:[%s10402_s1 + $0x4e0] sm:$0xff]  ;;  %v182_v30 = vld [vmem:[%s10402_s1 + $0x4c8] sm:$0xff] }
  0x30   :  { %v186_v31 = vld [vmem:[%s10402_s1 + $0x4e8] sm:$0xff]  ;;  %v6675_v34 = vcombine.high %v181_v28, %v185_v29  ;;  %v6674_v40 = vcombine.low %v181_v28, %v185_v29 }
  0x31   :  { %v6677_v35 = vcombine.high %v182_v30, %v186_v31  ;;  %v6676_v41 = vcombine.low %v182_v30, %v186_v31 }
  0x32   :  { %1644 = vmatpush1.bf16.msra.mxu0 %v6610_v36  ;;  %1726 = vmatpush1.bf16.msra.mxu1 %v6612_v37  ;;  %v189_v36 = vld [vmem:[%s10402_s1 + $0x500] sm:$0xff] }
  0x33   :  { %1645 = vmatprep.subr.bf16.mxu0 %v6619_v38  ;;  %1727 = vmatprep.subr.bf16.mxu1 %v6621_v39  ;;  %v193_v37 = vld [vmem:[%s10402_s1 + $0x520] sm:$0xff]  ;;  %v190_v38 = vld [vmem:[%s10402_s1 + $0x508] sm:$0xff] }
  0x34   :  { %v194_v39 = vld [vmem:[%s10402_s1 + $0x528] sm:$0xff]  ;;  %v6683_v42 = vcombine.high %v189_v36, %v193_v37  ;;  %v6682_v48 = vcombine.low %v189_v36, %v193_v37 }
  0x35   :  { %v6685_v43 = vcombine.high %v190_v38, %v194_v39  ;;  %v6684_v49 = vcombine.low %v190_v38, %v194_v39 }
  0x36   :  { %1646 = vmatpush1.bf16.msra.mxu0 %v6618_v44  ;;  %1728 = vmatpush1.bf16.msra.mxu1 %v6620_v45  ;;  %v197_v44 = vld [vmem:[%s10402_s1 + $0x540] sm:$0xff] }
  0x37   :  { %1647 = vmatprep.subr.bf16.mxu0 %v6627_v46  ;;  %1729 = vmatprep.subr.bf16.mxu1 %v6629_v47  ;;  %v201_v45 = vld [vmem:[%s10402_s1 + $0x560] sm:$0xff]  ;;  %v198_v46 = vld [vmem:[%s10402_s1 + $0x548] sm:$0xff] }
  0x38   :  { %v202_v47 = vld [vmem:[%s10402_s1 + $0x568] sm:$0xff]  ;;  %v6691_v50 = vcombine.high %v197_v44, %v201_v45  ;;  %v6690_v58 = vcombine.low %v197_v44, %v201_v45 }
  0x39   :  { %v6693_v51 = vcombine.high %v198_v46, %v202_v47  ;;  %v6692_v59 = vcombine.low %v198_v46, %v202_v47 }
  0x3a   :  { %1648 = vmatpush1.bf16.msra.mxu0 %v6626_v52  ;;  %1730 = vmatpush1.bf16.msra.mxu1 %v6628_v54  ;;  %v205_v52 = vld [vmem:[%s10402_s1 + $0x580] sm:$0xff] }
  0x3b   :  { %1649 = vmatprep.subr.bf16.mxu0 %v6635_v55  ;;  %1731 = vmatprep.subr.bf16.mxu1 %v6637_v56  ;;  %v209_v54 = vld [vmem:[%s10402_s1 + $0x5a0] sm:$0xff]  ;;  %v206_v55 = vld [vmem:[%s10402_s1 + $0x588] sm:$0xff] }
  0x3c   :  { %v210_v56 = vld [vmem:[%s10402_s1 + $0x5a8] sm:$0xff]  ;;  %v6699_v60 = vcombine.high %v205_v52, %v209_v54  ;;  %v6698_v2 = vcombine.low %v205_v52, %v209_v54 }
  0x3d   :  { %v6701_v61 = vcombine.high %v206_v55, %v210_v56  ;;  %v6700_v3 = vcombine.low %v206_v55, %v210_v56 }
  0x3e   :  { %1650 = vmatpush1.bf16.msra.mxu0 %v6634_v62  ;;  %1732 = vmatpush1.bf16.msra.mxu1 %v6636_v63  ;;  %v213_v62 = vld [vmem:[%s10402_s1 + $0x5c0] sm:$0xff] }
  0x3f   :  { %1651 = vmatprep.subr.bf16.mxu0 %v6643_v0  ;;  %1733 = vmatprep.subr.bf16.mxu1 %v6645_v1  ;;  %v217_v63 = vld [vmem:[%s10402_s1 + $0x5e0] sm:$0xff]  ;;  %v214_v0 = vld [vmem:[%s10402_s1 + $0x5c8] sm:$0xff] }
  0x40   :  { %v218_v1 = vld [vmem:[%s10402_s1 + $0x5e8] sm:$0xff]  ;;  %v6707_v4 = vcombine.high %v213_v62, %v217_v63  ;;  %v6706_v10 = vcombine.low %v213_v62, %v217_v63 }
  0x41   :  { %v6709_v5 = vcombine.high %v214_v0, %v218_v1  ;;  %v6708_v11 = vcombine.low %v214_v0, %v218_v1 }
  0x42   :  { %1652 = vmatpush1.bf16.msra.mxu0 %v6642_v6  ;;  %1734 = vmatpush1.bf16.msra.mxu1 %v6644_v7  ;;  %v221_v6 = vld [vmem:[%s10402_s1 + $0x600] sm:$0xff] }
  0x43   :  { %1662 = vmatprep.subr.bf16.mxu0 %v6651_v8  ;;  %1744 = vmatprep.subr.bf16.mxu1 %v6653_v9  ;;  %v225_v7 = vld [vmem:[%s10402_s1 + $0x620] sm:$0xff]  ;;  %v222_v8 = vld [vmem:[%s10402_s1 + $0x608] sm:$0xff] }
  0x44   :  { %v226_v9 = vld [vmem:[%s10402_s1 + $0x628] sm:$0xff]  ;;  %v6715_v13 = vcombine.high %v221_v6, %v225_v7  ;;  %v6714_v19 = vcombine.low %v221_v6, %v225_v7 }
  0x45   :  { %1654 = vmatmul.mubr.bf16.vlgmr.msra.gmra.mrb[0].mxu0 %v7935_v12  ;;  %1736 = vmatmul.mubr.bf16.vlgmr.msra.gmra.mrb[0].mxu1 %v7935_v12  ;;  %v6717_v14 = vcombine.high %v222_v8, %v226_v9  ;;  %v6716_v20 = vcombine.low %v222_v8, %v226_v9 }
  0x46   :  { %1663 = vmatpush1.bf16.msra.mxu0 %v6650_v16  ;;  %1745 = vmatpush1.bf16.msra.mxu1 %v6652_v17  ;;  %v229_v16 = vld [vmem:[%s10402_s1 + $0x640] sm:$0xff] }
  0x47   :  { %1664 = vmatprep.subr.bf16.mxu0 %v6659_v53  ;;  %1746 = vmatprep.subr.bf16.mxu1 %v6661_v18  ;;  %v233_v17 = vld [vmem:[%s10402_s1 + $0x660] sm:$0xff]  ;;  %v230_v53 = vld [vmem:[%s10402_s1 + $0x648] sm:$0xff] }
  0x48   :  { %1694 = vmatprep.mubr.bf16.mxu0 %v7956_v21  ;;  %1776 = vmatprep.mubr.bf16.mxu1 %v7956_v21  ;;  %v234_v18 = vld [vmem:[%s10402_s1 + $0x668] sm:$0xff]  ;;  %v6723_v22 = vcombine.high %v229_v16, %v233_v17  ;;  %v6722_v28 = vcombine.low %v229_v16, %v233_v17 }
  0x49   :  { %v6725_v23 = vcombine.high %v230_v53, %v234_v18  ;;  %v6724_v29 = vcombine.low %v230_v53, %v234_v18 }
  0x4a   :  { %1665 = vmatpush1.bf16.msra.mxu0 %v6658_v24  ;;  %1747 = vmatpush1.bf16.msra.mxu1 %v6660_v25  ;;  %v237_v24 = vld [vmem:[%s10402_s1 + $0x680] sm:$0xff] }
  0x4b   :  { %1666 = vmatprep.subr.bf16.mxu0 %v6667_v26  ;;  %1748 = vmatprep.subr.bf16.mxu1 %v6669_v27  ;;  %v241_v25 = vld [vmem:[%s10402_s1 + $0x6a0] sm:$0xff]  ;;  %v238_v26 = vld [vmem:[%s10402_s1 + $0x688] sm:$0xff] }
  0x4c   :  { %v242_v27 = vld [vmem:[%s10402_s1 + $0x6a8] sm:$0xff]  ;;  %v6731_v30 = vcombine.high %v237_v24, %v241_v25  ;;  %v6730_v36 = vcombine.low %v237_v24, %v241_v25  ;;  %v44_v24 = vld [vmem:[%s10402_s1 + $0x78] sm:$0xff] }
  0x4d   :  { %v6733_v31 = vcombine.high %v238_v26, %v242_v27  ;;  %v6732_v37 = vcombine.low %v238_v26, %v242_v27 }
  0x4e   :  { %1667 = vmatpush1.bf16.msra.mxu0 %v6666_v32  ;;  %1749 = vmatpush1.bf16.msra.mxu1 %v6668_v33  ;;  %v245_v32 = vld [vmem:[%s10402_s1 + $0x6c0] sm:$0xff] }
  0x4f   :  { %1668 = vmatprep.subr.bf16.mxu0 %v6675_v34  ;;  %1750 = vmatprep.subr.bf16.mxu1 %v6677_v35  ;;  %v249_v33 = vld [vmem:[%s10402_s1 + $0x6e0] sm:$0xff]  ;;  %v246_v34 = vld [vmem:[%s10402_s1 + $0x6c8] sm:$0xff] }
  0x50   :  { %v250_v35 = vld [vmem:[%s10402_s1 + $0x6e8] sm:$0xff]  ;;  %v6739_v38 = vcombine.high %v245_v32, %v249_v33  ;;  %v6738_v44 = vcombine.low %v245_v32, %v249_v33 }
  0x51   :  { %v6741_v39 = vcombine.high %v246_v34, %v250_v35  ;;  %v6740_v45 = vcombine.low %v246_v34, %v250_v35 }
  0x52   :  { %1669 = vmatpush1.bf16.msra.mxu0 %v6674_v40  ;;  %1751 = vmatpush1.bf16.msra.mxu1 %v6676_v41  ;;  %v253_v40 = vld [vmem:[%s10402_s1 + $0x700] sm:$0xff] }
  0x53   :  { %1670 = vmatprep.subr.bf16.mxu0 %v6683_v42  ;;  %1752 = vmatprep.subr.bf16.mxu1 %v6685_v43  ;;  %v257_v41 = vld [vmem:[%s10402_s1 + $0x720] sm:$0xff]  ;;  %v254_v42 = vld [vmem:[%s10402_s1 + $0x708] sm:$0xff] }
  0x54   :  { %v258_v43 = vld [vmem:[%s10402_s1 + $0x728] sm:$0xff]  ;;  %v6747_v46 = vcombine.high %v253_v40, %v257_v41  ;;  %v6746_v52 = vcombine.low %v253_v40, %v257_v41 }
  0x55   :  { %v6749_v47 = vcombine.high %v254_v42, %v258_v43  ;;  %v6748_v54 = vcombine.low %v254_v42, %v258_v43 }
  0x56   :  { %1671 = vmatpush1.bf16.msra.mxu0 %v6682_v48  ;;  %1753 = vmatpush1.bf16.msra.mxu1 %v6684_v49  ;;  %v261_v48 = vld [vmem:[%s10402_s1 + $0x740] sm:$0xff] }
  0x57   :  { %1672 = vmatprep.subr.bf16.mxu0 %v6691_v50  ;;  %1754 = vmatprep.subr.bf16.mxu1 %v6693_v51  ;;  %v265_v49 = vld [vmem:[%s10402_s1 + $0x760] sm:$0xff]  ;;  %v262_v50 = vld [vmem:[%s10402_s1 + $0x748] sm:$0xff] }
  0x58   :  { %v266_v51 = vld [vmem:[%s10402_s1 + $0x768] sm:$0xff]  ;;  %v6755_v55 = vcombine.high %v261_v48, %v265_v49  ;;  %v6754_v62 = vcombine.low %v261_v48, %v265_v49 }
  0x59   :  { %v6757_v56 = vcombine.high %v262_v50, %v266_v51  ;;  %v6756_v63 = vcombine.low %v262_v50, %v266_v51  ;;  %v71_v51 = vld [vmem:[%s10402_s1 + $0x150] sm:$0xff] }
  0x5a   :  { %1673 = vmatpush1.bf16.msra.mxu0 %v6690_v58  ;;  %1755 = vmatpush1.bf16.msra.mxu1 %v6692_v59  ;;  %v269_v58 = vld [vmem:[%s10402_s1 + $0x780] sm:$0xff] }
  0x5b   :  { %1674 = vmatprep.subr.bf16.mxu0 %v6699_v60  ;;  %1756 = vmatprep.subr.bf16.mxu1 %v6701_v61  ;;  %v273_v59 = vld [vmem:[%s10402_s1 + $0x7a0] sm:$0xff]  ;;  %v270_v60 = vld [vmem:[%s10402_s1 + $0x788] sm:$0xff] }
  0x5c   :  { %v274_v61 = vld [vmem:[%s10402_s1 + $0x7a8] sm:$0xff]  ;;  %v6763_v0 = vcombine.high %v269_v58, %v273_v59  ;;  %v6762_v6 = vcombine.low %v269_v58, %v273_v59 }
  0x5d   :  { %v6765_v1 = vcombine.high %v270_v60, %v274_v61  ;;  %v6764_v7 = vcombine.low %v270_v60, %v274_v61  ;;  %v79_v61 = vld [vmem:[%s10402_s1 + $0x190] sm:$0xff] }
  0x5e   :  { %1675 = vmatpush1.bf16.msra.mxu0 %v6698_v2  ;;  %1757 = vmatpush1.bf16.msra.mxu1 %v6700_v3  ;;  %v277_v2 = vld [vmem:[%s10402_s1 + $0x7c0] sm:$0xff] }
  0x5f   :  { %1676 = vmatprep.subr.bf16.mxu0 %v6707_v4  ;;  %1758 = vmatprep.subr.bf16.mxu1 %v6709_v5  ;;  %v281_v3 = vld [vmem:[%s10402_s1 + $0x7e0] sm:$0xff]  ;;  %v278_v4 = vld [vmem:[%s10402_s1 + $0x7c8] sm:$0xff] }
  0x60   :  { %v282_v5 = vld [vmem:[%s10402_s1 + $0x7e8] sm:$0xff]  ;;  %v6771_v8 = vcombine.high %v277_v2, %v281_v3  ;;  %v6770_v16 = vcombine.low %v277_v2, %v281_v3 }
  0x61   :  { %v6773_v9 = vcombine.high %v278_v4, %v282_v5  ;;  %v6772_v17 = vcombine.low %v278_v4, %v282_v5  ;;  %v87_v5 = vld [vmem:[%s10402_s1 + $0x1d0] sm:$0xff] }
  0x62   :  { %1677 = vmatpush1.bf16.msra.mxu0 %v6706_v10  ;;  %1759 = vmatpush1.bf16.msra.mxu1 %v6708_v11  ;;  %v31_v10 = vld [vmem:[%s10402_s1 + $0x10] sm:$0xff] }
  0x63   :  { %1678 = vmatprep.subr.bf16.mxu0 %v6715_v13  ;;  %1760 = vmatprep.subr.bf16.mxu1 %v6717_v14  ;;  %v35_v11 = vld [vmem:[%s10402_s1 + $0x30] sm:$0xff]  ;;  %v32_v13 = vld [vmem:[%s10402_s1 + $0x18] sm:$0xff] }
  0x64   :  { %v36_v14 = vld [vmem:[%s10402_s1 + $0x38] sm:$0xff]  ;;  %v6527_v53 = vcombine.high %v31_v10, %v35_v11  ;;  %v6526_v25 = vcombine.low %v31_v10, %v35_v11 }
  0x65   :  { %v6529_v18 = vcombine.high %v32_v13, %v36_v14  ;;  %v6528_v26 = vcombine.low %v32_v13, %v36_v14  ;;  %v95_v14 = vld [vmem:[%s10402_s1 + $0x210] sm:$0xff] }
  0x66   :  { %1679 = vmatpush1.bf16.msra.mxu0 %v6714_v19  ;;  %1761 = vmatpush1.bf16.msra.mxu1 %v6716_v20  ;;  %v39_v19 = vld [vmem:[%s10402_s1 + $0x50] sm:$0xff] }
  0x67   :  { %1680 = vmatprep.subr.bf16.mxu0 %v6723_v22  ;;  %1762 = vmatprep.subr.bf16.mxu1 %v6725_v23  ;;  %v43_v20 = vld [vmem:[%s10402_s1 + $0x70] sm:$0xff]  ;;  %v8144_v22 = vcombine.low %v7946_v15, %v7946_v15  ;;  %v40_v23 = vld [vmem:[%s10402_s1 + $0x58] sm:$0xff] }
  0x68   :  { %v6535_v27 = vcombine.high %v39_v19, %v43_v20  ;;  %v47_v15 = vld [vmem:[%s10402_s1 + $0x90] sm:$0xff]  ;;  %v6534_v32 = vcombine.low %v39_v19, %v43_v20  ;;  %v6536_v33 = vcombine.low %v40_v23, %v44_v24 }
  0x6a   :  { %1681 = vmatpush1.bf16.msra.mxu0 %v6722_v28  ;;  %1763 = vmatpush1.bf16.msra.mxu1 %v6724_v29  ;;  %v6537_v28 = vcombine.high %v40_v23, %v44_v24  ;;  %v51_v29 = vld [vmem:[%s10402_s1 + $0xb0] sm:$0xff] }
  0x6b   :  { %1682 = vmatprep.subr.bf16.mxu0 %v6731_v30  ;;  %1764 = vmatprep.subr.bf16.mxu1 %v6733_v31  ;;  %v48_v30 = vld [vmem:[%s10402_s1 + $0x98] sm:$0xff]  ;;  %v6543_v34 = vcombine.high %v47_v15, %v51_v29  ;;  %v6542_v40 = vcombine.low %v47_v15, %v51_v29  ;;  %v103_v24 = vld [vmem:[%s10402_s1 + $0x250] sm:$0xff] }
  0x6c   :  { %v52_v31 = vld [vmem:[%s10402_s1 + $0xb8] sm:$0xff] }
  0x6d   :  { %v6545_v35 = vcombine.high %v48_v30, %v52_v31  ;;  %v6544_v41 = vcombine.low %v48_v30, %v52_v31  ;;  %v111_v31 = vld [vmem:[%s10402_s1 + $0x290] sm:$0xff] }
  0x6e   :  { %1683 = vmatpush1.bf16.msra.mxu0 %v6730_v36  ;;  %1765 = vmatpush1.bf16.msra.mxu1 %v6732_v37  ;;  %v55_v36 = vld [vmem:[%s10402_s1 + $0xd0] sm:$0xff] }
  0x6f   :  { %1684 = vmatprep.subr.bf16.mxu0 %v6739_v38  ;;  %1766 = vmatprep.subr.bf16.mxu1 %v6741_v39  ;;  %v59_v37 = vld [vmem:[%s10402_s1 + $0xf0] sm:$0xff]  ;;  %v56_v38 = vld [vmem:[%s10402_s1 + $0xd8] sm:$0xff] }
  0x70   :  { %v60_v39 = vld [vmem:[%s10402_s1 + $0xf8] sm:$0xff]  ;;  %v6551_v42 = vcombine.high %v55_v36, %v59_v37 }
  0x71   :  { %v6553_v43 = vcombine.high %v56_v38, %v60_v39  ;;  %v6552_v48 = vcombine.low %v56_v38, %v60_v39  ;;  %v119_v39 = vld [vmem:[%s10402_s1 + $0x2d0] sm:$0xff] }
  0x72   :  { %1685 = vmatpush1.bf16.msra.mxu0 %v6738_v44  ;;  %1767 = vmatpush1.bf16.msra.mxu1 %v6740_v45  ;;  %v63_v44 = vld [vmem:[%s10402_s1 + $0x110] sm:$0xff] }
  0x73   :  { %1686 = vmatprep.subr.bf16.mxu0 %v6747_v46  ;;  %1768 = vmatprep.subr.bf16.mxu1 %v6749_v47  ;;  %v67_v45 = vld [vmem:[%s10402_s1 + $0x130] sm:$0xff]  ;;  %v68_v46 = vld [vmem:[%s10402_s1 + $0x138] sm:$0xff]  ;;  %v6550_v47 = vcombine.low %v55_v36, %v59_v37 }
  0x74   :  { %v6559_v49 = vcombine.high %v63_v44, %v67_v45 }
  0x76   :  { %1687 = vmatpush1.bf16.msra.mxu0 %v6746_v52  ;;  %1769 = vmatpush1.bf16.msra.mxu1 %v6748_v54  ;;  %v75_v52 = vld [vmem:[%s10402_s1 + $0x170] sm:$0xff]  ;;  %v72_v54 = vld [vmem:[%s10402_s1 + $0x158] sm:$0xff] }
  0x77   :  { %1688 = vmatprep.subr.bf16.mxu0 %v6755_v55  ;;  %1770 = vmatprep.subr.bf16.mxu1 %v6757_v56  ;;  %v76_v55 = vld [vmem:[%s10402_s1 + $0x178] sm:$0xff]  ;;  %v6558_v56 = vcombine.low %v63_v44, %v67_v45  ;;  %v6567_v59 = vcombine.high %v71_v51, %v75_v52 }
  0x78   :  { %v6569_v60 = vcombine.high %v72_v54, %v76_v55  ;;  %v6568_v2 = vcombine.low %v72_v54, %v76_v55  ;;  %v135_v55 = vld [vmem:[%s10402_s1 + $0x350] sm:$0xff] }
  0x7a   :  { %1689 = vmatpush1.bf16.msra.mxu0 %v6754_v62  ;;  %1771 = vmatpush1.bf16.msra.mxu1 %v6756_v63  ;;  %v83_v62 = vld [vmem:[%s10402_s1 + $0x1b0] sm:$0xff]  ;;  %v80_v63 = vld [vmem:[%s10402_s1 + $0x198] sm:$0xff] }
  0x7b   :  { %1690 = vmatprep.subr.bf16.mxu0 %v6763_v0  ;;  %1772 = vmatprep.subr.bf16.mxu1 %v6765_v1  ;;  %v84_v0 = vld [vmem:[%s10402_s1 + $0x1b8] sm:$0xff]  ;;  %v6566_v1 = vcombine.low %v71_v51, %v75_v52  ;;  %v6575_v3 = vcombine.high %v79_v61, %v83_v62 }
  0x7c   :  { %v6577_v4 = vcombine.high %v80_v63, %v84_v0  ;;  %v6576_v10 = vcombine.low %v80_v63, %v84_v0  ;;  %v143_v0 = vld [vmem:[%s10402_s1 + $0x390] sm:$0xff] }
  0x7e   :  { %1691 = vmatpush1.bf16.msra.mxu0 %v6762_v6  ;;  %1773 = vmatpush1.bf16.msra.mxu1 %v6764_v7  ;;  %v91_v6 = vld [vmem:[%s10402_s1 + $0x1f0] sm:$0xff]  ;;  %v88_v7 = vld [vmem:[%s10402_s1 + $0x1d8] sm:$0xff] }
  0x7f   :  { %1692 = vmatprep.subr.bf16.mxu0 %v6771_v8  ;;  %1774 = vmatprep.subr.bf16.mxu1 %v6773_v9  ;;  %v92_v8 = vld [vmem:[%s10402_s1 + $0x1f8] sm:$0xff]  ;;  %v6574_v9 = vcombine.low %v79_v61, %v83_v62  ;;  %v6583_v11 = vcombine.high %v87_v5, %v91_v6 }
  0x80   :  { %v6585_v13 = vcombine.high %v88_v7, %v92_v8  ;;  %v6584_v19 = vcombine.low %v88_v7, %v92_v8  ;;  %v151_v8 = vld [vmem:[%s10402_s1 + $0x3d0] sm:$0xff] }
  0x82   :  { %1693 = vmatpush1.bf16.msra.mxu0 %v6770_v16  ;;  %1775 = vmatpush1.bf16.msra.mxu1 %v6772_v17  ;;  %v99_v16 = vld [vmem:[%s10402_s1 + $0x230] sm:$0xff]  ;;  %v96_v17 = vld [vmem:[%s10402_s1 + $0x218] sm:$0xff] }
  0x83   :  { %1785 = vmatprep.subr.bf16.mxu0 %v6527_v53  ;;  %1867 = vmatprep.subr.bf16.mxu1 %v6529_v18  ;;  %v100_v53 = vld [vmem:[%s10402_s1 + $0x238] sm:$0xff]  ;;  %v6582_v18 = vcombine.low %v87_v5, %v91_v6  ;;  %v6591_v20 = vcombine.high %v95_v14, %v99_v16 }
  0x84   :  { %v6593_v23 = vcombine.high %v96_v17, %v100_v53  ;;  %v6592_v15 = vcombine.low %v96_v17, %v100_v53  ;;  %v159_v53 = vld [vmem:[%s10402_s1 + $0x410] sm:$0xff] }
  0x85   :  { %1695 = vmatmul.mubr.bf16.vlgmr.msra.gmra.mrb[0].mxu0 %v8144_v22  ;;  %1777 = vmatmul.mubr.bf16.vlgmr.msra.gmra.mrb[0].mxu1 %v8144_v22 }
  0x86   :  { %1786 = vmatpush1.bf16.msra.mxu0 %v6526_v25  ;;  %1868 = vmatpush1.bf16.msra.mxu1 %v6528_v26  ;;  %v107_v25 = vld [vmem:[%s10402_s1 + $0x270] sm:$0xff]  ;;  %v104_v26 = vld [vmem:[%s10402_s1 + $0x258] sm:$0xff] }
  0x87   :  { %1787 = vmatprep.subr.bf16.mxu0 %v6535_v27  ;;  %1869 = vmatprep.subr.bf16.mxu1 %v6537_v28  ;;  %v108_v27 = vld [vmem:[%s10402_s1 + $0x278] sm:$0xff]  ;;  %v6590_v28 = vcombine.low %v95_v14, %v99_v16  ;;  %v6599_v29 = vcombine.high %v103_v24, %v107_v25 }
  0x88   :  { %1817 = vmatprep.mubr.bf16.mxu0 %v7809_v57  ;;  %1899 = vmatprep.mubr.bf16.mxu1 %v7809_v57  ;;  %v64_v57 = vld [vmem:[%s10402_s1 + $0x118] sm:$0xff]  ;;  %v6601_v30 = vcombine.high %v104_v26, %v108_v27  ;;  %v6600_v36 = vcombine.low %v104_v26, %v108_v27  ;;  %v167_v27 = vld [vmem:[%s10402_s1 + $0x450] sm:$0xff] }
  0x89   :  { %v6561_v50 = vcombine.high %v64_v57, %v68_v46  ;;  %v6560_v58 = vcombine.low %v64_v57, %v68_v46  ;;  %v127_v46 = vld [vmem:[%s10402_s1 + $0x310] sm:$0xff] }
  0x8a   :  { %1788 = vmatpush1.bf16.msra.mxu0 %v6534_v32  ;;  %1870 = vmatpush1.bf16.msra.mxu1 %v6536_v33  ;;  %v115_v32 = vld [vmem:[%s10402_s1 + $0x2b0] sm:$0xff]  ;;  %v112_v33 = vld [vmem:[%s10402_s1 + $0x298] sm:$0xff] }
  0x8b   :  { %1789 = vmatprep.subr.bf16.mxu0 %v6543_v34  ;;  %1871 = vmatprep.subr.bf16.mxu1 %v6545_v35  ;;  %v116_v34 = vld [vmem:[%s10402_s1 + $0x2b8] sm:$0xff]  ;;  %v6598_v35 = vcombine.low %v103_v24, %v107_v25  ;;  %v6607_v37 = vcombine.high %v111_v31, %v115_v32 }
  0x8c   :  { %v6609_v38 = vcombine.high %v112_v33, %v116_v34  ;;  %v6608_v44 = vcombine.low %v112_v33, %v116_v34  ;;  %v175_v34 = vld [vmem:[%s10402_s1 + $0x490] sm:$0xff] }
  0x8e   :  { %1790 = vmatpush1.bf16.msra.mxu0 %v6542_v40  ;;  %1872 = vmatpush1.bf16.msra.mxu1 %v6544_v41  ;;  %v123_v40 = vld [vmem:[%s10402_s1 + $0x2f0] sm:$0xff]  ;;  %v120_v41 = vld [vmem:[%s10402_s1 + $0x2d8] sm:$0xff] }
  0x8f   :  { %1791 = vmatprep.subr.bf16.mxu0 %v6551_v42  ;;  %1873 = vmatprep.subr.bf16.mxu1 %v6553_v43  ;;  %v124_v42 = vld [vmem:[%s10402_s1 + $0x2f8] sm:$0xff]  ;;  %v6606_v43 = vcombine.low %v111_v31, %v115_v32  ;;  %v6615_v45 = vcombine.high %v119_v39, %v123_v40 }
  0x90   :  { %v6617_v57 = vcombine.high %v120_v41, %v124_v42  ;;  %v6616_v51 = vcombine.low %v120_v41, %v124_v42  ;;  %v183_v42 = vld [vmem:[%s10402_s1 + $0x4d0] sm:$0xff] }
  0x92   :  { %1792 = vmatpush1.bf16.msra.mxu0 %v6550_v47  ;;  %1874 = vmatpush1.bf16.msra.mxu1 %v6552_v48  ;;  %v131_v47 = vld [vmem:[%s10402_s1 + $0x330] sm:$0xff]  ;;  %v128_v48 = vld [vmem:[%s10402_s1 + $0x318] sm:$0xff] }
  0x93   :  { %1793 = vmatprep.subr.bf16.mxu0 %v6559_v49  ;;  %1875 = vmatprep.subr.bf16.mxu1 %v6561_v50  ;;  %v132_v49 = vld [vmem:[%s10402_s1 + $0x338] sm:$0xff]  ;;  %v6614_v50 = vcombine.low %v119_v39, %v123_v40  ;;  %v6623_v52 = vcombine.high %v127_v46, %v131_v47 }
  0x94   :  { %v6625_v54 = vcombine.high %v128_v48, %v132_v49  ;;  %v6624_v61 = vcombine.low %v128_v48, %v132_v49  ;;  %v191_v48 = vld [vmem:[%s10402_s1 + $0x510] sm:$0xff] }
  0x95   :  { %v195_v49 = vld [vmem:[%s10402_s1 + $0x530] sm:$0xff] }
  0x96   :  { %1794 = vmatpush1.bf16.msra.mxu0 %v6558_v56  ;;  %1876 = vmatpush1.bf16.msra.mxu1 %v6560_v58  ;;  %v139_v56 = vld [vmem:[%s10402_s1 + $0x370] sm:$0xff]  ;;  %v136_v58 = vld [vmem:[%s10402_s1 + $0x358] sm:$0xff] }
  0x97   :  { %1795 = vmatprep.subr.bf16.mxu0 %v6567_v59  ;;  %1877 = vmatprep.subr.bf16.mxu1 %v6569_v60  ;;  %v140_v59 = vld [vmem:[%s10402_s1 + $0x378] sm:$0xff]  ;;  %v6622_v60 = vcombine.low %v127_v46, %v131_v47  ;;  %v6631_v62 = vcombine.high %v135_v55, %v139_v56 }
  0x98   :  { %v6633_v63 = vcombine.high %v136_v58, %v140_v59  ;;  %v6632_v5 = vcombine.low %v136_v58, %v140_v59  ;;  %v203_v58 = vld [vmem:[%s10402_s1 + $0x570] sm:$0xff]  ;;  %v200_v59 = vld [vmem:[%s10402_s1 + $0x558] sm:$0xff] }
  0x9a   :  { %1796 = vmatpush1.bf16.msra.mxu0 %v6566_v1  ;;  %1878 = vmatpush1.bf16.msra.mxu1 %v6568_v2  ;;  %v147_v1 = vld [vmem:[%s10402_s1 + $0x3b0] sm:$0xff]  ;;  %v144_v2 = vld [vmem:[%s10402_s1 + $0x398] sm:$0xff] }
  0x9b   :  { %1797 = vmatprep.subr.bf16.mxu0 %v6575_v3  ;;  %1879 = vmatprep.subr.bf16.mxu1 %v6577_v4  ;;  %v148_v3 = vld [vmem:[%s10402_s1 + $0x3b8] sm:$0xff]  ;;  %v6630_v4 = vcombine.low %v135_v55, %v139_v56  ;;  %v6639_v6 = vcombine.high %v143_v0, %v147_v1  ;;  %v199_v56 = vld [vmem:[%s10402_s1 + $0x550] sm:$0xff] }
  0x9c   :  { %v6641_v7 = vcombine.high %v144_v2, %v148_v3  ;;  %v6640_v14 = vcombine.low %v144_v2, %v148_v3  ;;  %v211_v2 = vld [vmem:[%s10402_s1 + $0x5b0] sm:$0xff]  ;;  %v208_v3 = vld [vmem:[%s10402_s1 + $0x598] sm:$0xff] }
  0x9e   :  { %1798 = vmatpush1.bf16.msra.mxu0 %v6574_v9  ;;  %1880 = vmatpush1.bf16.msra.mxu1 %v6576_v10  ;;  %v155_v9 = vld [vmem:[%s10402_s1 + $0x3f0] sm:$0xff]  ;;  %v152_v10 = vld [vmem:[%s10402_s1 + $0x3d8] sm:$0xff] }
  0x9f   :  { %1799 = vmatprep.subr.bf16.mxu0 %v6583_v11  ;;  %1881 = vmatprep.subr.bf16.mxu1 %v6585_v13  ;;  %v156_v11 = vld [vmem:[%s10402_s1 + $0x3f8] sm:$0xff]  ;;  %v6638_v13 = vcombine.low %v143_v0, %v147_v1  ;;  %v6647_v16 = vcombine.high %v151_v8, %v155_v9  ;;  %v207_v1 = vld [vmem:[%s10402_s1 + $0x590] sm:$0xff] }
  0xa0   :  { %v6649_v17 = vcombine.high %v152_v10, %v156_v11  ;;  %v6648_v24 = vcombine.low %v152_v10, %v156_v11  ;;  %v219_v10 = vld [vmem:[%s10402_s1 + $0x5f0] sm:$0xff]  ;;  %v216_v11 = vld [vmem:[%s10402_s1 + $0x5d8] sm:$0xff] }
  0xa2   :  { %1800 = vmatpush1.bf16.msra.mxu0 %v6582_v18  ;;  %1882 = vmatpush1.bf16.msra.mxu1 %v6584_v19  ;;  %v163_v18 = vld [vmem:[%s10402_s1 + $0x430] sm:$0xff]  ;;  %v160_v19 = vld [vmem:[%s10402_s1 + $0x418] sm:$0xff] }
  0xa3   :  { %1801 = vmatprep.subr.bf16.mxu0 %v6591_v20  ;;  %1883 = vmatprep.subr.bf16.mxu1 %v6593_v23  ;;  %v164_v20 = vld [vmem:[%s10402_s1 + $0x438] sm:$0xff]  ;;  %v6646_v23 = vcombine.low %v151_v8, %v155_v9  ;;  %v6655_v25 = vcombine.high %v159_v53, %v163_v18  ;;  %v215_v9 = vld [vmem:[%s10402_s1 + $0x5d0] sm:$0xff] }
  0xa4   :  { %v6657_v26 = vcombine.high %v160_v19, %v164_v20  ;;  %v6656_v31 = vcombine.low %v160_v19, %v164_v20  ;;  %v227_v19 = vld [vmem:[%s10402_s1 + $0x630] sm:$0xff]  ;;  %v224_v20 = vld [vmem:[%s10402_s1 + $0x618] sm:$0xff] }
  0xa6   :  { %1802 = vmatpush1.bf16.msra.mxu0 %v6590_v28  ;;  %1884 = vmatpush1.bf16.msra.mxu1 %v6592_v15  ;;  %v171_v28 = vld [vmem:[%s10402_s1 + $0x470] sm:$0xff]  ;;  %v168_v15 = vld [vmem:[%s10402_s1 + $0x458] sm:$0xff] }
  0xa7   :  { %1803 = vmatprep.subr.bf16.mxu0 %v6599_v29  ;;  %1885 = vmatprep.subr.bf16.mxu1 %v6601_v30  ;;  %v172_v29 = vld [vmem:[%s10402_s1 + $0x478] sm:$0xff]  ;;  %v6654_v30 = vcombine.low %v159_v53, %v163_v18  ;;  %v6663_v32 = vcombine.high %v167_v27, %v171_v28  ;;  %v223_v18 = vld [vmem:[%s10402_s1 + $0x610] sm:$0xff] }
  0xa8   :  { %v6665_v33 = vcombine.high %v168_v15, %v172_v29  ;;  %v6664_v39 = vcombine.low %v168_v15, %v172_v29  ;;  %v235_v15 = vld [vmem:[%s10402_s1 + $0x670] sm:$0xff]  ;;  %v232_v29 = vld [vmem:[%s10402_s1 + $0x658] sm:$0xff] }
  0xaa   :  { %1804 = vmatpush1.bf16.msra.mxu0 %v6598_v35  ;;  %1886 = vmatpush1.bf16.msra.mxu1 %v6600_v36  ;;  %v179_v35 = vld [vmem:[%s10402_s1 + $0x4b0] sm:$0xff]  ;;  %v176_v36 = vld [vmem:[%s10402_s1 + $0x498] sm:$0xff] }
  0xab   :  { %1805 = vmatprep.subr.bf16.mxu0 %v6607_v37  ;;  %1887 = vmatprep.subr.bf16.mxu1 %v6609_v38  ;;  %v180_v37 = vld [vmem:[%s10402_s1 + $0x4b8] sm:$0xff]  ;;  %v6662_v38 = vcombine.low %v167_v27, %v171_v28  ;;  %v6671_v40 = vcombine.high %v175_v34, %v179_v35  ;;  %v231_v28 = vld [vmem:[%s10402_s1 + $0x650] sm:$0xff] }
  0xac   :  { %v6673_v41 = vcombine.high %v176_v36, %v180_v37 }
  0xae   :  { %1806 = vmatpush1.bf16.msra.mxu0 %v6606_v43  ;;  %1888 = vmatpush1.bf16.msra.mxu1 %v6608_v44  ;;  %v187_v43 = vld [vmem:[%s10402_s1 + $0x4f0] sm:$0xff]  ;;  %v188_v44 = vld [vmem:[%s10402_s1 + $0x4f8] sm:$0xff] }
  0xaf   :  { %1807 = vmatprep.subr.bf16.mxu0 %v6615_v45  ;;  %1889 = vmatprep.subr.bf16.mxu1 %v6617_v57  ;;  %v6670_v45 = vcombine.low %v175_v34, %v179_v35  ;;  %v6672_v57 = vcombine.low %v176_v36, %v180_v37  ;;  %v6679_v46 = vcombine.high %v183_v42, %v187_v43  ;;  %v239_v35 = vld [vmem:[%s10402_s1 + $0x690] sm:$0xff]  ;;  %v240_v37 = vld [vmem:[%s10402_s1 + $0x698] sm:$0xff] }
  0xb0   :  { %v243_v36 = vld [vmem:[%s10402_s1 + $0x6b0] sm:$0xff] }
  0xb2   :  { %1808 = vmatpush1.bf16.msra.mxu0 %v6614_v50  ;;  %1890 = vmatpush1.bf16.msra.mxu1 %v6616_v51  ;;  %v196_v50 = vld [vmem:[%s10402_s1 + $0x538] sm:$0xff]  ;;  %v6678_v51 = vcombine.low %v183_v42, %v187_v43  ;;  %v247_v43 = vld [vmem:[%s10402_s1 + $0x6d0] sm:$0xff] }
  0xb3   :  { %1809 = vmatprep.subr.bf16.mxu0 %v6623_v52  ;;  %1891 = vmatprep.subr.bf16.mxu1 %v6625_v54  ;;  %v6687_v54 = vcombine.high %v191_v48, %v195_v49 }
  0xb6   :  { %1810 = vmatpush1.bf16.msra.mxu0 %v6622_v60  ;;  %1892 = vmatpush1.bf16.msra.mxu1 %v6624_v61  ;;  %v204_v60 = vld [vmem:[%s10402_s1 + $0x578] sm:$0xff]  ;;  %v6686_v61 = vcombine.low %v191_v48, %v195_v49  ;;  %v255_v49 = vld [vmem:[%s10402_s1 + $0x710] sm:$0xff] }
  0xb7   :  { %1811 = vmatprep.subr.bf16.mxu0 %v6631_v62  ;;  %1893 = vmatprep.subr.bf16.mxu1 %v6633_v63  ;;  %v6695_v63 = vcombine.high %v199_v56, %v203_v58  ;;  %v6697_v0 = vcombine.high %v200_v59, %v204_v60 }
  0xba   :  { %1812 = vmatpush1.bf16.msra.mxu0 %v6630_v4  ;;  %1894 = vmatpush1.bf16.msra.mxu1 %v6632_v5  ;;  %v212_v4 = vld [vmem:[%s10402_s1 + $0x5b8] sm:$0xff]  ;;  %v6694_v5 = vcombine.low %v199_v56, %v203_v58  ;;  %v263_v58 = vld [vmem:[%s10402_s1 + $0x750] sm:$0xff] }
  0xbb   :  { %1813 = vmatprep.subr.bf16.mxu0 %v6639_v6  ;;  %1895 = vmatprep.subr.bf16.mxu1 %v6641_v7  ;;  %v6696_v6 = vcombine.low %v200_v59, %v204_v60  ;;  %v6703_v7 = vcombine.high %v207_v1, %v211_v2  ;;  %v6705_v8 = vcombine.high %v208_v3, %v212_v4  ;;  %v267_v59 = vld [vmem:[%s10402_s1 + $0x770] sm:$0xff]  ;;  %v264_v60 = vld [vmem:[%s10402_s1 + $0x758] sm:$0xff] }
  0xbe   :  { %1814 = vmatpush1.bf16.msra.mxu0 %v6638_v13  ;;  %1896 = vmatpush1.bf16.msra.mxu1 %v6640_v14  ;;  %v220_v13 = vld [vmem:[%s10402_s1 + $0x5f8] sm:$0xff]  ;;  %v6702_v14 = vcombine.low %v207_v1, %v211_v2  ;;  %v271_v2 = vld [vmem:[%s10402_s1 + $0x790] sm:$0xff] }
  0xbf   :  { %1815 = vmatprep.subr.bf16.mxu0 %v6647_v16  ;;  %1897 = vmatprep.subr.bf16.mxu1 %v6649_v17  ;;  %v6704_v16 = vcombine.low %v208_v3, %v212_v4  ;;  %v6711_v17 = vcombine.high %v215_v9, %v219_v10  ;;  %v6713_v53 = vcombine.high %v216_v11, %v220_v13  ;;  %v275_v3 = vld [vmem:[%s10402_s1 + $0x7b0] sm:$0xff]  ;;  %v272_v4 = vld [vmem:[%s10402_s1 + $0x798] sm:$0xff] }
  0xc2   :  { %1816 = vmatpush1.bf16.msra.mxu0 %v6646_v23  ;;  %1898 = vmatpush1.bf16.msra.mxu1 %v6648_v24  ;;  %v228_v23 = vld [vmem:[%s10402_s1 + $0x638] sm:$0xff]  ;;  %v6710_v24 = vcombine.low %v215_v9, %v219_v10  ;;  %v279_v10 = vld [vmem:[%s10402_s1 + $0x7d0] sm:$0xff] }
  0xc3   :  { %1826 = vmatprep.subr.bf16.mxu0 %v6655_v25  ;;  %1908 = vmatprep.subr.bf16.mxu1 %v6657_v26  ;;  %v6712_v25 = vcombine.low %v216_v11, %v220_v13  ;;  %v6719_v26 = vcombine.high %v223_v18, %v227_v19  ;;  %v6721_v27 = vcombine.high %v224_v20, %v228_v23  ;;  %v283_v11 = vld [vmem:[%s10402_s1 + $0x7f0] sm:$0xff]  ;;  %v280_v13 = vld [vmem:[%s10402_s1 + $0x7d8] sm:$0xff] }
  0xc5   :  { %1818 = vmatmul.mubr.bf16.vlgmr.msra.gmra.mrb[4].mxu0 %v7935_v12  ;;  %1900 = vmatmul.mubr.bf16.vlgmr.msra.gmra.mrb[4].mxu1 %v7935_v12  ;;  %v184_v12 = vld [vmem:[%s10402_s1 + $0x4d8] sm:$0xff] }
  0xc6   :  { %1827 = vmatpush1.bf16.msra.mxu0 %v6654_v30  ;;  %1909 = vmatpush1.bf16.msra.mxu1 %v6656_v31  ;;  %v6681_v47 = vcombine.high %v184_v12, %v188_v44  ;;  %v6680_v52 = vcombine.low %v184_v12, %v188_v44  ;;  %v236_v30 = vld [vmem:[%s10402_s1 + $0x678] sm:$0xff]  ;;  %v6718_v31 = vcombine.low %v223_v18, %v227_v19  ;;  %v251_v12 = vld [vmem:[%s10402_s1 + $0x6f0] sm:$0xff]  ;;  %v2005_v19 = vld [vmem:[%s10404_s3] sm:$0xff] }
  0xc7   :  { %1828 = vmatprep.subr.bf16.mxu0 %v6663_v32  ;;  %1910 = vmatprep.subr.bf16.mxu1 %v6665_v33  ;;  %v6720_v32 = vcombine.low %v224_v20, %v228_v23  ;;  %v6727_v33 = vcombine.high %v231_v28, %v235_v15  ;;  %v6729_v34 = vcombine.high %v232_v29, %v236_v30  ;;  %v248_v44 = vld [vmem:[%s10402_s1 + $0x6d8] sm:$0xff]  ;;  %v2009_v20 = vld [vmem:[%s10404_s3 + $0x20] sm:$0xff]  ;;  %v2006_v23 = vld [vmem:[%s10404_s3 + $0x8] sm:$0xff] }
  0xc8   :  { %1858 = vmatprep.mubr.bf16.mxu0 %v7956_v21  ;;  %1940 = vmatprep.mubr.bf16.mxu1 %v7956_v21  ;;  %v192_v21 = vld [vmem:[%s10402_s1 + $0x518] sm:$0xff] }
  0xc9   :  { %v6689_v55 = vcombine.high %v192_v21, %v196_v50  ;;  %v6688_v62 = vcombine.low %v192_v21, %v196_v50  ;;  %v259_v21 = vld [vmem:[%s10402_s1 + $0x730] sm:$0xff]  ;;  %v256_v50 = vld [vmem:[%s10402_s1 + $0x718] sm:$0xff] }
  0xca   :  { %1829 = vmatpush1.bf16.msra.mxu0 %v6662_v38  ;;  %1911 = vmatpush1.bf16.msra.mxu1 %v6664_v39  ;;  %v244_v38 = vld [vmem:[%s10402_s1 + $0x6b8] sm:$0xff]  ;;  %v6726_v39 = vcombine.low %v231_v28, %v235_v15  ;;  %v2013_v15 = vld [vmem:[%s10404_s3 + $0x40] sm:$0xff] }
  0xcb   :  { %1830 = vmatprep.subr.bf16.mxu0 %v6671_v40  ;;  %1912 = vmatprep.subr.bf16.mxu1 %v6673_v41  ;;  %v6728_v40 = vcombine.low %v232_v29, %v236_v30  ;;  %v6735_v41 = vcombine.high %v239_v35, %v243_v36  ;;  %v6737_v42 = vcombine.high %v240_v37, %v244_v38  ;;  %v2017_v29 = vld [vmem:[%s10404_s3 + $0x60] sm:$0xff]  ;;  %v2014_v30 = vld [vmem:[%s10404_s3 + $0x48] sm:$0xff] }
  0xce   :  { %1831 = vmatpush1.bf16.msra.mxu0 %v6670_v45  ;;  %1913 = vmatpush1.bf16.msra.mxu1 %v6672_v57  ;;  %v252_v45 = vld [vmem:[%s10402_s1 + $0x6f8] sm:$0xff]  ;;  %v6734_v57 = vcombine.low %v239_v35, %v243_v36  ;;  %v2021_v36 = vld [vmem:[%s10404_s3 + $0x80] sm:$0xff] }
  0xcf   :  { %1832 = vmatprep.subr.bf16.mxu0 %v6679_v46  ;;  %1914 = vmatprep.subr.bf16.mxu1 %v6681_v47  ;;  %v6736_v46 = vcombine.low %v240_v37, %v244_v38  ;;  %v6743_v47 = vcombine.high %v247_v43, %v251_v12  ;;  %v6745_v48 = vcombine.high %v248_v44, %v252_v45  ;;  %v2025_v37 = vld [vmem:[%s10404_s3 + $0xa0] sm:$0xff]  ;;  %v2022_v38 = vld [vmem:[%s10404_s3 + $0x88] sm:$0xff] }
  0xd2   :  { %1833 = vmatpush1.bf16.msra.mxu0 %v6678_v51  ;;  %1915 = vmatpush1.bf16.msra.mxu1 %v6680_v52  ;;  %v260_v51 = vld [vmem:[%s10402_s1 + $0x738] sm:$0xff]  ;;  %v6742_v52 = vcombine.low %v247_v43, %v251_v12  ;;  %v2029_v12 = vld [vmem:[%s10404_s3 + $0xc0] sm:$0xff] }
  0xd3   :  { %1834 = vmatprep.subr.bf16.mxu0 %v6687_v54  ;;  %1916 = vmatprep.subr.bf16.mxu1 %v6689_v55  ;;  %v6744_v54 = vcombine.low %v248_v44, %v252_v45  ;;  %v6751_v55 = vcombine.high %v255_v49, %v259_v21  ;;  %v6753_v56 = vcombine.high %v256_v50, %v260_v51  ;;  %v2033_v44 = vld [vmem:[%s10404_s3 + $0xe0] sm:$0xff]  ;;  %v2034_v45 = vld [vmem:[%s10404_s3 + $0xe8] sm:$0xff] }
  0xd6   :  { %1835 = vmatpush1.bf16.msra.mxu0 %v6686_v61  ;;  %1917 = vmatpush1.bf16.msra.mxu1 %v6688_v62  ;;  %v268_v61 = vld [vmem:[%s10402_s1 + $0x778] sm:$0xff]  ;;  %v6750_v62 = vcombine.low %v255_v49, %v259_v21  ;;  %v2037_v49 = vld [vmem:[%s10404_s3 + $0x100] sm:$0xff] }
  0xd7   :  { %1836 = vmatprep.subr.bf16.mxu0 %v6695_v63  ;;  %1918 = vmatprep.subr.bf16.mxu1 %v6697_v0  ;;  %v6752_v63 = vcombine.low %v256_v50, %v260_v51  ;;  %v6759_v0 = vcombine.high %v263_v58, %v267_v59  ;;  %v6761_v1 = vcombine.high %v264_v60, %v268_v61  ;;  %v2041_v21 = vld [vmem:[%s10404_s3 + $0x120] sm:$0xff]  ;;  %v2038_v50 = vld [vmem:[%s10404_s3 + $0x108] sm:$0xff] }
  0xd8   :  { %v2042_v51 = vld [vmem:[%s10404_s3 + $0x128] sm:$0xff] }
  0xda   :  { %1837 = vmatpush1.bf16.msra.mxu0 %v6694_v5  ;;  %1919 = vmatpush1.bf16.msra.mxu1 %v6696_v6  ;;  %v276_v5 = vld [vmem:[%s10402_s1 + $0x7b8] sm:$0xff]  ;;  %v6758_v6 = vcombine.low %v263_v58, %v267_v59  ;;  %v2045_v58 = vld [vmem:[%s10404_s3 + $0x140] sm:$0xff] }
  0xdb   :  { %1838 = vmatprep.subr.bf16.mxu0 %v6703_v7  ;;  %1920 = vmatprep.subr.bf16.mxu1 %v6705_v8  ;;  %v6760_v7 = vcombine.low %v264_v60, %v268_v61  ;;  %v6767_v8 = vcombine.high %v271_v2, %v275_v3  ;;  %v6769_v9 = vcombine.high %v272_v4, %v276_v5  ;;  %v2049_v59 = vld [vmem:[%s10404_s3 + $0x160] sm:$0xff]  ;;  %v2046_v60 = vld [vmem:[%s10404_s3 + $0x148] sm:$0xff] }
  0xdc   :  { %v2050_v61 = vld [vmem:[%s10404_s3 + $0x168] sm:$0xff] }
  0xde   :  { %1839 = vmatpush1.bf16.msra.mxu0 %v6702_v14  ;;  %1921 = vmatpush1.bf16.msra.mxu1 %v6704_v16  ;;  %v284_v14 = vld [vmem:[%s10402_s1 + $0x7f8] sm:$0xff]  ;;  %v6766_v16 = vcombine.low %v271_v2, %v275_v3  ;;  %v2053_v2 = vld [vmem:[%s10404_s3 + $0x180] sm:$0xff] }
  0xdf   :  { %1840 = vmatprep.subr.bf16.mxu0 %v6711_v17  ;;  %1922 = vmatprep.subr.bf16.mxu1 %v6713_v53  ;;  %v6768_v17 = vcombine.low %v272_v4, %v276_v5  ;;  %v6775_v53 = vcombine.high %v279_v10, %v283_v11  ;;  %v6777_v18 = vcombine.high %v280_v13, %v284_v14  ;;  %v2057_v3 = vld [vmem:[%s10404_s3 + $0x1a0] sm:$0xff]  ;;  %v2054_v4 = vld [vmem:[%s10404_s3 + $0x188] sm:$0xff] }
  0xe0   :  { %v2058_v5 = vld [vmem:[%s10404_s3 + $0x1a8] sm:$0xff] }
  0xe2   :  { %1841 = vmatpush1.bf16.msra.mxu0 %v6710_v24  ;;  %1923 = vmatpush1.bf16.msra.mxu1 %v6712_v25  ;;  %v2010_v24 = vld [vmem:[%s10404_s3 + $0x28] sm:$0xff]  ;;  %v6774_v25 = vcombine.low %v279_v10, %v283_v11  ;;  %v2061_v10 = vld [vmem:[%s10404_s3 + $0x1c0] sm:$0xff] }
  0xe3   :  { %1842 = vmatprep.subr.bf16.mxu0 %v6719_v26  ;;  %1924 = vmatprep.subr.bf16.mxu1 %v6721_v27  ;;  %v6776_v26 = vcombine.low %v280_v13, %v284_v14  ;;  %v6787_v27 = vcombine.high %v2005_v19, %v2009_v20  ;;  %v6789_v28 = vcombine.high %v2006_v23, %v2010_v24  ;;  %v2065_v11 = vld [vmem:[%s10404_s3 + $0x1e0] sm:$0xff]  ;;  %v2062_v13 = vld [vmem:[%s10404_s3 + $0x1c8] sm:$0xff] }
  0xe4   :  { %v2066_v14 = vld [vmem:[%s10404_s3 + $0x1e8] sm:$0xff] }
  0xe6   :  { %1843 = vmatpush1.bf16.msra.mxu0 %v6718_v31  ;;  %1925 = vmatpush1.bf16.msra.mxu1 %v6720_v32  ;;  %v2018_v31 = vld [vmem:[%s10404_s3 + $0x68] sm:$0xff]  ;;  %v6786_v32 = vcombine.low %v2005_v19, %v2009_v20  ;;  %v2069_v19 = vld [vmem:[%s10404_s3 + $0x200] sm:$0xff] }
  0xe7   :  { %1844 = vmatprep.subr.bf16.mxu0 %v6727_v33  ;;  %1926 = vmatprep.subr.bf16.mxu1 %v6729_v34  ;;  %v6788_v33 = vcombine.low %v2006_v23, %v2010_v24  ;;  %v6795_v34 = vcombine.high %v2013_v15, %v2017_v29  ;;  %v6797_v35 = vcombine.high %v2014_v30, %v2018_v31  ;;  %v2073_v20 = vld [vmem:[%s10404_s3 + $0x220] sm:$0xff]  ;;  %v2070_v23 = vld [vmem:[%s10404_s3 + $0x208] sm:$0xff] }
  0xe8   :  { %v2074_v24 = vld [vmem:[%s10404_s3 + $0x228] sm:$0xff] }
  0xea   :  { %1845 = vmatpush1.bf16.msra.mxu0 %v6726_v39  ;;  %1927 = vmatpush1.bf16.msra.mxu1 %v6728_v40  ;;  %v2026_v39 = vld [vmem:[%s10404_s3 + $0xa8] sm:$0xff]  ;;  %v6794_v40 = vcombine.low %v2013_v15, %v2017_v29  ;;  %v2077_v15 = vld [vmem:[%s10404_s3 + $0x240] sm:$0xff] }
  0xeb   :  { %1846 = vmatprep.subr.bf16.mxu0 %v6735_v41  ;;  %1928 = vmatprep.subr.bf16.mxu1 %v6737_v42  ;;  %v6796_v41 = vcombine.low %v2014_v30, %v2018_v31  ;;  %v6803_v42 = vcombine.high %v2021_v36, %v2025_v37  ;;  %v6805_v43 = vcombine.high %v2022_v38, %v2026_v39  ;;  %v2081_v29 = vld [vmem:[%s10404_s3 + $0x260] sm:$0xff]  ;;  %v2078_v30 = vld [vmem:[%s10404_s3 + $0x248] sm:$0xff] }
  0xec   :  { %v2082_v31 = vld [vmem:[%s10404_s3 + $0x268] sm:$0xff] }
  0xee   :  { %1847 = vmatpush1.bf16.msra.mxu0 %v6734_v57  ;;  %1929 = vmatpush1.bf16.msra.mxu1 %v6736_v46  ;;  %v6802_v57 = vcombine.low %v2021_v36, %v2025_v37  ;;  %v6804_v46 = vcombine.low %v2022_v38, %v2026_v39  ;;  %v2085_v36 = vld [vmem:[%s10404_s3 + $0x280] sm:$0xff]  ;;  %v2086_v38 = vld [vmem:[%s10404_s3 + $0x288] sm:$0xff] }
  0xef   :  { %1848 = vmatprep.subr.bf16.mxu0 %v6743_v47  ;;  %1930 = vmatprep.subr.bf16.mxu1 %v6745_v48  ;;  %v6811_v47 = vcombine.high %v2029_v12, %v2033_v44  ;;  %v2089_v37 = vld [vmem:[%s10404_s3 + $0x2a0] sm:$0xff]  ;;  %v2090_v39 = vld [vmem:[%s10404_s3 + $0x2a8] sm:$0xff] }
  0xf2   :  { %1849 = vmatpush1.bf16.msra.mxu0 %v6742_v52  ;;  %1931 = vmatpush1.bf16.msra.mxu1 %v6744_v54  ;;  %v6810_v52 = vcombine.low %v2029_v12, %v2033_v44  ;;  %v2093_v12 = vld [vmem:[%s10404_s3 + $0x2c0] sm:$0xff] }
  0xf3   :  { %1850 = vmatprep.subr.bf16.mxu0 %v6751_v55  ;;  %1932 = vmatprep.subr.bf16.mxu1 %v6753_v56  ;;  %v6819_v55 = vcombine.high %v2037_v49, %v2041_v21  ;;  %v6821_v56 = vcombine.high %v2038_v50, %v2042_v51  ;;  %v2097_v44 = vld [vmem:[%s10404_s3 + $0x2e0] sm:$0xff] }
  0xf6   :  { %1851 = vmatpush1.bf16.msra.mxu0 %v6750_v62  ;;  %1933 = vmatpush1.bf16.msra.mxu1 %v6752_v63  ;;  %v6818_v62 = vcombine.low %v2037_v49, %v2041_v21  ;;  %v6820_v63 = vcombine.low %v2038_v50, %v2042_v51  ;;  %v2101_v49 = vld [vmem:[%s10404_s3 + $0x300] sm:$0xff]  ;;  %v2102_v50 = vld [vmem:[%s10404_s3 + $0x308] sm:$0xff] }
  0xf7   :  { %1852 = vmatprep.subr.bf16.mxu0 %v6759_v0  ;;  %1934 = vmatprep.subr.bf16.mxu1 %v6761_v1  ;;  %v6827_v0 = vcombine.high %v2045_v58, %v2049_v59  ;;  %v6829_v1 = vcombine.high %v2046_v60, %v2050_v61  ;;  %v2105_v21 = vld [vmem:[%s10404_s3 + $0x320] sm:$0xff]  ;;  %v2106_v51 = vld [vmem:[%s10404_s3 + $0x328] sm:$0xff] }
  0xfa   :  { %1853 = vmatpush1.bf16.msra.mxu0 %v6758_v6  ;;  %1935 = vmatpush1.bf16.msra.mxu1 %v6760_v7  ;;  %v6826_v6 = vcombine.low %v2045_v58, %v2049_v59  ;;  %v6828_v7 = vcombine.low %v2046_v60, %v2050_v61  ;;  %v2109_v58 = vld [vmem:[%s10404_s3 + $0x340] sm:$0xff]  ;;  %v2110_v60 = vld [vmem:[%s10404_s3 + $0x348] sm:$0xff] }
  0xfb   :  { %1854 = vmatprep.subr.bf16.mxu0 %v6767_v8  ;;  %1936 = vmatprep.subr.bf16.mxu1 %v6769_v9  ;;  %v6835_v8 = vcombine.high %v2053_v2, %v2057_v3  ;;  %v6837_v9 = vcombine.high %v2054_v4, %v2058_v5  ;;  %v2113_v59 = vld [vmem:[%s10404_s3 + $0x360] sm:$0xff]  ;;  %v2114_v61 = vld [vmem:[%s10404_s3 + $0x368] sm:$0xff] }
  0xfe   :  { %1855 = vmatpush1.bf16.msra.mxu0 %v6766_v16  ;;  %1937 = vmatpush1.bf16.msra.mxu1 %v6768_v17  ;;  %v6834_v16 = vcombine.low %v2053_v2, %v2057_v3  ;;  %v6836_v17 = vcombine.low %v2054_v4, %v2058_v5  ;;  %v2117_v2 = vld [vmem:[%s10404_s3 + $0x380] sm:$0xff]  ;;  %v2118_v4 = vld [vmem:[%s10404_s3 + $0x388] sm:$0xff] }
  0xff   :  { %1856 = vmatprep.subr.bf16.mxu0 %v6775_v53  ;;  %1938 = vmatprep.subr.bf16.mxu1 %v6777_v18  ;;  %v6843_v53 = vcombine.high %v2061_v10, %v2065_v11  ;;  %v6845_v18 = vcombine.high %v2062_v13, %v2066_v14  ;;  %v2121_v3 = vld [vmem:[%s10404_s3 + $0x3a0] sm:$0xff]  ;;  %v2122_v5 = vld [vmem:[%s10404_s3 + $0x3a8] sm:$0xff] }
 0x102   :  { %1857 = vmatpush1.bf16.msra.mxu0 %v6774_v25  ;;  %1939 = vmatpush1.bf16.msra.mxu1 %v6776_v26  ;;  %v6842_v25 = vcombine.low %v2061_v10, %v2065_v11  ;;  %v6844_v26 = vcombine.low %v2062_v13, %v2066_v14  ;;  %v2125_v10 = vld [vmem:[%s10404_s3 + $0x3c0] sm:$0xff]  ;;  %v2126_v13 = vld [vmem:[%s10404_s3 + $0x3c8] sm:$0xff] }
 0x103   :  { %5119 = vmatprep.subr.bf16.mxu0 %v6787_v27  ;;  %5283 = vmatprep.subr.bf16.mxu1 %v6789_v28  ;;  %v6851_v27 = vcombine.high %v2069_v19, %v2073_v20  ;;  %v6853_v28 = vcombine.high %v2070_v23, %v2074_v24  ;;  %v2129_v11 = vld [vmem:[%s10404_s3 + $0x3e0] sm:$0xff]  ;;  %v2130_v14 = vld [vmem:[%s10404_s3 + $0x3e8] sm:$0xff] }
 0x105   :  { %1859 = vmatmul.mubr.bf16.vlgmr.msra.gmra.mrb[4].mxu0 %v8144_v22  ;;  %1941 = vmatmul.mubr.bf16.vlgmr.msra.gmra.mrb[4].mxu1 %v8144_v22  ;;  %v2030_v22 = vld [vmem:[%s10404_s3 + $0xc8] sm:$0xff] }
 0x106   :  { %5120 = vmatpush1.bf16.msra.mxu0 %v6786_v32  ;;  %5284 = vmatpush1.bf16.msra.mxu1 %v6788_v33  ;;  %v6813_v48 = vcombine.high %v2030_v22, %v2034_v45  ;;  %v6812_v54 = vcombine.low %v2030_v22, %v2034_v45  ;;  %v6850_v32 = vcombine.low %v2069_v19, %v2073_v20  ;;  %v2094_v22 = vld [vmem:[%s10404_s3 + $0x2c8] sm:$0xff]  ;;  %v8717_v19 = vld [vmem:[%s10404_s3 + $0x400] sm:$0xff] }
 0x107   :  { %5121 = vmatprep.subr.bf16.mxu0 %v6795_v34  ;;  %5285 = vmatprep.subr.bf16.mxu1 %v6797_v35  ;;  %v6852_v33 = vcombine.low %v2070_v23, %v2074_v24  ;;  %v6859_v34 = vcombine.high %v2077_v15, %v2081_v29  ;;  %v6861_v35 = vcombine.high %v2078_v30, %v2082_v31  ;;  %v2098_v45 = vld [vmem:[%s10404_s3 + $0x2e8] sm:$0xff]  ;;  %v8722_v20 = vld [vmem:[%s10404_s3 + $0x420] sm:$0xff] }
 0x108   :  { %v8727_v23 = vld [vmem:[%s10404_s3 + $0x408] sm:$0xff] }
 0x109   :  { %v8732_v24 = vld [vmem:[%s10404_s3 + $0x428] sm:$0xff] }
 0x10a   :  { %5122 = vmatpush1.bf16.msra.mxu0 %v6794_v40  ;;  %5286 = vmatpush1.bf16.msra.mxu1 %v6796_v41  ;;  %v6858_v40 = vcombine.low %v2077_v15, %v2081_v29  ;;  %v6860_v41 = vcombine.low %v2078_v30, %v2082_v31  ;;  %v287_v15 = vlaneseq  ;;  %v8744_v31 = vld [vmem:[%s10405_s2] sm:$0xff] }
 0x10b   :  { %5123 = vmatprep.subr.bf16.mxu0 %v6803_v42  ;;  %5287 = vmatprep.subr.bf16.mxu1 %v6805_v43  ;;  %v6867_v42 = vcombine.high %v2085_v36, %v2089_v37  ;;  %v6869_v43 = vcombine.high %v2086_v38, %v2090_v39 }
 0x10c   :  { %v8738_v29 = vshrl.u32 %v287_v15, 7 }
 0x10e   :  { %5124 = vmatpush1.bf16.msra.mxu0 %v6802_v57  ;;  %5288 = vmatpush1.bf16.msra.mxu1 %v6804_v46  ;;  %v6866_v57 = vcombine.low %v2085_v36, %v2089_v37  ;;  %v6868_v46 = vcombine.low %v2086_v38, %v2090_v39  ;;  %v289_v30 = vsub.s32 0, %v8738_v29 }
 0x10f   :  { %5125 = vmatprep.subr.bf16.mxu0 %v6811_v47  ;;  %5289 = vmatprep.subr.bf16.mxu1 %v6813_v48  ;;  %v6875_v47 = vcombine.high %v2093_v12, %v2097_v44  ;;  %v6877_v48 = vcombine.high %v2094_v22, %v2098_v45 }
 0x112   :  { %5126 = vmatpush1.bf16.msra.mxu0 %v6810_v52  ;;  %5290 = vmatpush1.bf16.msra.mxu1 %v6812_v54  ;;  %v6874_v52 = vcombine.low %v2093_v12, %v2097_v44  ;;  %v6876_v54 = vcombine.low %v2094_v22, %v2098_v45 }
 0x113   :  { %5127 = vmatprep.subr.bf16.mxu0 %v6819_v55  ;;  %5291 = vmatprep.subr.bf16.mxu1 %v6821_v56  ;;  %v6883_v55 = vcombine.high %v2101_v49, %v2105_v21  ;;  %v6885_v56 = vcombine.high %v2102_v50, %v2106_v51 }
 0x116   :  { %5128 = vmatpush1.bf16.msra.mxu0 %v6818_v62  ;;  %5292 = vmatpush1.bf16.msra.mxu1 %v6820_v63  ;;  %v6882_v62 = vcombine.low %v2101_v49, %v2105_v21  ;;  %v6884_v63 = vcombine.low %v2102_v50, %v2106_v51 }
 0x117   :  { %5129 = vmatprep.subr.bf16.mxu0 %v6827_v0  ;;  %5293 = vmatprep.subr.bf16.mxu1 %v6829_v1  ;;  %v6891_v0 = vcombine.high %v2109_v58, %v2113_v59  ;;  %v6893_v1 = vcombine.high %v2110_v60, %v2114_v61 }
 0x11a   :  { %5130 = vmatpush1.bf16.msra.mxu0 %v6826_v6  ;;  %5294 = vmatpush1.bf16.msra.mxu1 %v6828_v7  ;;  %v6890_v6 = vcombine.low %v2109_v58, %v2113_v59  ;;  %v6892_v7 = vcombine.low %v2110_v60, %v2114_v61  ;;  %v2145_v58 = vld [vmem:[%s10404_s3 + $0x460] sm:$0xff]  ;;  %v2142_v59 = vld [vmem:[%s10404_s3 + $0x448] sm:$0xff] }
 0x11b   :  { %5131 = vmatprep.subr.bf16.mxu0 %v6835_v8  ;;  %5295 = vmatprep.subr.bf16.mxu1 %v6837_v9  ;;  %v6899_v8 = vcombine.high %v2117_v2, %v2121_v3  ;;  %v6901_v9 = vcombine.high %v2118_v4, %v2122_v5  ;;  %v2146_v60 = vld [vmem:[%s10404_s3 + $0x468] sm:$0xff] }
 0x11e   :  { %5132 = vmatpush1.bf16.msra.mxu0 %v6834_v16  ;;  %5296 = vmatpush1.bf16.msra.mxu1 %v6836_v17  ;;  %v6898_v16 = vcombine.low %v2117_v2, %v2121_v3  ;;  %v6900_v17 = vcombine.low %v2118_v4, %v2122_v5  ;;  %v2149_v2 = vld [vmem:[%s10404_s3 + $0x480] sm:$0xff]  ;;  %v6925_v4 = vcombine.high %v2142_v59, %v2146_v60 }
 0x11f   :  { %5133 = vmatprep.subr.bf16.mxu0 %v6843_v53  ;;  %5297 = vmatprep.subr.bf16.mxu1 %v6845_v18  ;;  %v6907_v53 = vcombine.high %v2125_v10, %v2129_v11  ;;  %v6909_v18 = vcombine.high %v2126_v13, %v2130_v14  ;;  %v2153_v5 = vld [vmem:[%s10404_s3 + $0x4a0] sm:$0xff] }
 0x122   :  { %5134 = vmatpush1.bf16.msra.mxu0 %v6842_v25  ;;  %5298 = vmatpush1.bf16.msra.mxu1 %v6844_v26  ;;  %v6906_v25 = vcombine.low %v2125_v10, %v2129_v11  ;;  %v6908_v26 = vcombine.low %v2126_v13, %v2130_v14  ;;  %v6924_v10 = vcombine.low %v2142_v59, %v2146_v60  ;;  %v2157_v14 = vld [vmem:[%s10404_s3 + $0x4c0] sm:$0xff] }
 0x123   :  { %5135 = vmatprep.subr.bf16.mxu0 %v6851_v27  ;;  %5299 = vmatprep.subr.bf16.mxu1 %v6853_v28  ;;  %v6915_v27 = vcombine.high %v8717_v19, %v8722_v20  ;;  %v6917_v28 = vcombine.high %v8727_v23, %v8732_v24  ;;  %v6931_v11 = vcombine.high %v2149_v2, %v2153_v5 }
 0x126   :  { %5136 = vmatpush1.bf16.msra.mxu0 %v6850_v32  ;;  %5300 = vmatpush1.bf16.msra.mxu1 %v6852_v33  ;;  %v293_v32 = vsub.s32 1, %v8738_v29  ;;  %v301_v33 = vsub.s32 3, %v8738_v29 }
 0x127   :  { %5137 = vmatprep.subr.bf16.mxu0 %v6859_v34  ;;  %5301 = vmatprep.subr.bf16.mxu1 %v6861_v35  ;;  %v290_v34 = vrot.slane %v8744_v31, %v289_v30 }
 0x128   :  { %v294_v35 = vrot.slane %v8744_v31, %v293_v32  ;;  %v302_v36 = vrot.slane %v8744_v31, %v301_v33 }
 0x12a   :  { %5138 = vmatpush1.bf16.msra.mxu0 %v6858_v40  ;;  %5302 = vmatpush1.bf16.msra.mxu1 %v6860_v41 }
 0x12b   :  { %5139 = vmatprep.subr.bf16.mxu0 %v6867_v42  ;;  %5303 = vmatprep.subr.bf16.mxu1 %v6869_v43 }
 0x12e   :  { %5140 = vmatpush1.bf16.msra.mxu0 %v6866_v57  ;;  %5304 = vmatpush1.bf16.msra.mxu1 %v6868_v46 }
 0x12f   :  { %5141 = vmatprep.subr.bf16.mxu0 %v6875_v47  ;;  %5305 = vmatprep.subr.bf16.mxu1 %v6877_v48 }
 0x132   :  { %5142 = vmatpush1.bf16.msra.mxu0 %v6874_v52  ;;  %5306 = vmatpush1.bf16.msra.mxu1 %v6876_v54 }
 0x133   :  { %5143 = vmatprep.subr.bf16.mxu0 %v6883_v55  ;;  %5307 = vmatprep.subr.bf16.mxu1 %v6885_v56  ;;  %v2141_v55 = vld [vmem:[%s10404_s3 + $0x440] sm:$0xff] }
 0x134   :  { %v6923_v3 = vcombine.high %v2141_v55, %v2145_v58 }
 0x136   :  { %5144 = vmatpush1.bf16.msra.mxu0 %v6882_v62  ;;  %5308 = vmatpush1.bf16.msra.mxu1 %v6884_v63  ;;  %v6914_v63 = vcombine.low %v8717_v19, %v8722_v20 }
 0x137   :  { %5145 = vmatprep.subr.bf16.mxu0 %v6891_v0  ;;  %5309 = vmatprep.subr.bf16.mxu1 %v6893_v1  ;;  %v6916_v0 = vcombine.low %v8727_v23, %v8732_v24  ;;  %v2165_v24 = vld [vmem:[%s10404_s3 + $0x500] sm:$0xff] }
 0x13a   :  { %5146 = vmatpush1.bf16.msra.mxu0 %v6890_v6  ;;  %5310 = vmatpush1.bf16.msra.mxu1 %v6892_v7  ;;  %v2150_v6 = vld [vmem:[%s10404_s3 + $0x488] sm:$0xff] }
 0x13b   :  { %5147 = vmatprep.subr.bf16.mxu0 %v6899_v8  ;;  %5311 = vmatprep.subr.bf16.mxu1 %v6901_v9  ;;  %v2154_v7 = vld [vmem:[%s10404_s3 + $0x4a8] sm:$0xff]  ;;  %v6922_v9 = vcombine.low %v2141_v55, %v2145_v58 }
 0x13c   :  { %v6933_v13 = vcombine.high %v2150_v6, %v2154_v7  ;;  %v6932_v19 = vcombine.low %v2150_v6, %v2154_v7 }
 0x13e   :  { %5148 = vmatpush1.bf16.msra.mxu0 %v6898_v16  ;;  %5312 = vmatpush1.bf16.msra.mxu1 %v6900_v17  ;;  %v2161_v16 = vld [vmem:[%s10404_s3 + $0x4e0] sm:$0xff]  ;;  %v2158_v17 = vld [vmem:[%s10404_s3 + $0x4c8] sm:$0xff] }
 0x13f   :  { %5149 = vmatprep.subr.bf16.mxu0 %v6907_v53  ;;  %5313 = vmatprep.subr.bf16.mxu1 %v6909_v18  ;;  %v2162_v53 = vld [vmem:[%s10404_s3 + $0x4e8] sm:$0xff]  ;;  %v6930_v18 = vcombine.low %v2149_v2, %v2153_v5  ;;  %v6939_v20 = vcombine.high %v2157_v14, %v2161_v16 }
 0x140   :  { %v6941_v23 = vcombine.high %v2158_v17, %v2162_v53  ;;  %v6940_v15 = vcombine.low %v2158_v17, %v2162_v53  ;;  %v2202_v2 = vld [vmem:[%s10404_s3 + $0x628] sm:$0xff] }
 0x142   :  { %5150 = vmatpush1.bf16.msra.mxu0 %v6906_v25  ;;  %5314 = vmatpush1.bf16.msra.mxu1 %v6908_v26  ;;  %v2169_v25 = vld [vmem:[%s10404_s3 + $0x520] sm:$0xff]  ;;  %v2166_v26 = vld [vmem:[%s10404_s3 + $0x508] sm:$0xff] }
 0x143   :  { %5160 = vmatprep.subr.bf16.mxu0 %v6915_v27  ;;  %5324 = vmatprep.subr.bf16.mxu1 %v6917_v28  ;;  %v2170_v27 = vld [vmem:[%s10404_s3 + $0x528] sm:$0xff]  ;;  %v6938_v28 = vcombine.low %v2157_v14, %v2161_v16 }
 0x158   :  { %v1696_v37 = vpop.f32.mrb[0].mxu0  ;;  %v8757_v39 = vpop.f32.mrb[0].mxu1 }
 0x159   :  { %v7459_v38 = vadd.f32 %v1696_v37, %v290_v34  ;;  %v1698_v40 = vpop.f32.mrb[1].mxu0  ;;  %v1780_v42 = vpop.f32.mrb[1].mxu1  ;;  %v6947_v34 = vcombine.high %v2165_v24, %v2169_v25  ;;  %v2177_v37 = vld [vmem:[%s10404_s3 + $0x560] sm:$0xff] }
 0x15a   :  { %v7460_v41 = vadd.f32 %v1698_v40, %v294_v35  ;;  %v1700_v43 = vpop.f32.mrb[2].mxu0  ;;  %v7462_v44 = vadd.f32 %v1780_v42, %v302_v36  ;;  %v1782_v22 = vpop.f32.mrb[2].mxu1  ;;  %v6949_v35 = vcombine.high %v2166_v26, %v2170_v27  ;;  %v2173_v36 = vld [vmem:[%s10404_s3 + $0x540] sm:$0xff]  ;;  %v2178_v40 = vld [vmem:[%s10404_s3 + $0x568] sm:$0xff]  ;;  %v6948_v42 = vcombine.low %v2166_v26, %v2170_v27 }
 0x15b   :  { %v6778_v12 = vmul.f32 -1.442695, %v7459_v38  ;;  %v1701_v45 = vpop.f32.mrb[3].mxu0  ;;  %v1783_v46 = vpop.f32.mrb[3].mxu1  ;;  %v2174_v38 = vld [vmem:[%s10404_s3 + $0x548] sm:$0xff]  ;;  %v6955_v43 = vcombine.high %v2173_v36, %v2177_v37  ;;  %v2185_v22 = vld [vmem:[%s10404_s3 + $0x5a0] sm:$0xff] }
 0x15c   :  { %v6779_v57 = vmul.f32 -1.442695, %v7460_v41  ;;  %v6781_v47 = vmul.f32 -1.442695, %v7462_v44  ;;  %v6946_v41 = vcombine.low %v2165_v24, %v2169_v25  ;;  %v2181_v44 = vld [vmem:[%s10404_s3 + $0x580] sm:$0xff]  ;;  %v2182_v45 = vld [vmem:[%s10404_s3 + $0x588] sm:$0xff] }
 0x15d   :  { %7607 = vpow2.f32 %v6778_v12  ;;  %v6957_v12 = vcombine.high %v2174_v38, %v2178_v40  ;;  %v297_v46 = vsub.s32 2, %v8738_v29 }
 0x15e   :  { %7609 = vpow2.f32 %v6779_v57  ;;  %v2186_v57 = vld [vmem:[%s10404_s3 + $0x5a8] sm:$0xff] }
 0x15f   :  { %7611 = vpow2.f32 %v6781_v47  ;;  %v6954_v47 = vcombine.low %v2173_v36, %v2177_v37  ;;  %v298_v55 = vrot.slane %v8744_v31, %v297_v46  ;;  %v6964_v58 = vcombine.low %v2182_v45, %v2186_v57 }
 0x167   :  { %v7608_v48 = vpop.eup %7607 }
 0x168   :  { %v1973_v49 = vadd.f32 1.0, %v7608_v48  ;;  %v7610_v21 = vpop.eup %7609  ;;  %v6956_v48 = vcombine.low %v2174_v38, %v2178_v40 }
 0x169   :  { %v7612_v50 = vpop.eup %7611  ;;  %v1974_v51 = vadd.f32 1.0, %v7610_v21  ;;  %v6965_v21 = vcombine.high %v2182_v45, %v2186_v57 }
 0x16a   :  { %7613 = vrcp.f32 %v1973_v49  ;;  %v1976_v52 = vadd.f32 1.0, %v7612_v50  ;;  %v6963_v49 = vcombine.high %v2181_v44, %v2185_v22  ;;  %v2189_v50 = vld [vmem:[%s10404_s3 + $0x5c0] sm:$0xff] }
 0x16b   :  { %7615 = vrcp.f32 %v1974_v51  ;;  %v2193_v51 = vld [vmem:[%s10404_s3 + $0x5e0] sm:$0xff] }
 0x16c   :  { %7617 = vrcp.f32 %v1976_v52  ;;  %v2190_v52 = vld [vmem:[%s10404_s3 + $0x5c8] sm:$0xff]  ;;  %v6971_v59 = vcombine.high %v2189_v50, %v2193_v51 }
 0x174   :  { %v7614_v54 = vpop.eup %7613 }
 0x175   :  { %v7616_v56 = vpop.eup %7615  ;;  %v8777_v1 = vpack.c.bf16 %v7614_v54, %v7614_v54  ;;  %v2194_v54 = vld [vmem:[%s10404_s3 + $0x5e8] sm:$0xff] }
 0x176   :  { %v7618_v61 = vpop.eup %7617  ;;  %v8771_v62 = vpack.c.bf16 %v7616_v56, %v7616_v56  ;;  %v6962_v56 = vcombine.low %v2181_v44, %v2185_v22  ;;  %v6973_v60 = vcombine.high %v2190_v52, %v2194_v54  ;;  %v6972_v5 = vcombine.low %v2190_v52, %v2194_v54 }
 0x177   :  { %v8795_v8 = vpack.c.bf16 %v7618_v61, %v7618_v61  ;;  %v2197_v61 = vld [vmem:[%s10404_s3 + $0x600] sm:$0xff] }
 0x178   :  { %5151 = vmatprep.mubr.bf16.mxu0 %v8771_v62  ;;  %5315 = vmatprep.mubr.bf16.mxu1 %v8771_v62 }
 0x179   :  { %5152 = vmatmul.mubr.bf16.vlgmr.msra.gmra.mrb[8].mxu0 %v8777_v1  ;;  %5316 = vmatmul.mubr.bf16.vlgmr.msra.gmra.mrb[8].mxu1 %v8777_v1 }
 0x17a   :  { %5161 = vmatpush1.bf16.msra.mxu0 %v6914_v63  ;;  %5325 = vmatpush1.bf16.msra.mxu1 %v6916_v0  ;;  %v2201_v63 = vld [vmem:[%s10404_s3 + $0x620] sm:$0xff]  ;;  %v2198_v0 = vld [vmem:[%s10404_s3 + $0x608] sm:$0xff] }
 0x17b   :  { %5192 = vmatprep.mubr.bf16.mxu0 %v8795_v8  ;;  %5356 = vmatprep.mubr.bf16.mxu1 %v8795_v8  ;;  %v6979_v6 = vcombine.high %v2197_v61, %v2201_v63  ;;  %v6981_v7 = vcombine.high %v2198_v0, %v2202_v2  ;;  %v6978_v14 = vcombine.low %v2197_v61, %v2201_v63  ;;  %v2250_v61 = vld [vmem:[%s10404_s3 + $0x7a8] sm:$0xff] }
 0x17c   :  { %5162 = vmatprep.subr.bf16.mxu0 %v6923_v3  ;;  %5326 = vmatprep.subr.bf16.mxu1 %v6925_v4  ;;  %v7461_v3 = vadd.f32 %v8757_v39, %v298_v55  ;;  %v6970_v4 = vcombine.low %v2189_v50, %v2193_v51  ;;  %v2206_v39 = vld [vmem:[%s10404_s3 + $0x648] sm:$0xff]  ;;  %v6980_v16 = vcombine.low %v2198_v0, %v2202_v2 }
 0x17d   :  { %v2242_v50 = vld [vmem:[%s10404_s3 + $0x768] sm:$0xff] }
 0x17e   :  { %5163 = vmatpush1.bf16.msra.mxu0 %v6922_v9  ;;  %5327 = vmatpush1.bf16.msra.mxu1 %v6924_v10  ;;  %v2205_v9 = vld [vmem:[%s10404_s3 + $0x640] sm:$0xff] }
 0x17f   :  { %5164 = vmatprep.subr.bf16.mxu0 %v6931_v11  ;;  %5328 = vmatprep.subr.bf16.mxu1 %v6933_v13  ;;  %v2209_v10 = vld [vmem:[%s10404_s3 + $0x660] sm:$0xff]  ;;  %v2210_v11 = vld [vmem:[%s10404_s3 + $0x668] sm:$0xff]  ;;  %v6780_v13 = vmul.f32 -1.442695, %v7461_v3 }
 0x180   :  { %v6987_v17 = vcombine.high %v2205_v9, %v2209_v10  ;;  %v6989_v53 = vcombine.high %v2206_v39, %v2210_v11  ;;  %v6986_v24 = vcombine.low %v2205_v9, %v2209_v10  ;;  %v6988_v25 = vcombine.low %v2206_v39, %v2210_v11 }
 0x181   :  { %7619 = vpow2.f32 %v6780_v13  ;;  %v2261_v13 = vld [vmem:[%s10404_s3 + $0x800] sm:$0xff] }
 0x182   :  { %5165 = vmatpush1.bf16.msra.mxu0 %v6930_v18  ;;  %5329 = vmatpush1.bf16.msra.mxu1 %v6932_v19  ;;  %v2213_v18 = vld [vmem:[%s10404_s3 + $0x680] sm:$0xff] }
 0x183   :  { %5166 = vmatprep.subr.bf16.mxu0 %v6939_v20  ;;  %5330 = vmatprep.subr.bf16.mxu1 %v6941_v23  ;;  %v2217_v19 = vld [vmem:[%s10404_s3 + $0x6a0] sm:$0xff]  ;;  %v2214_v20 = vld [vmem:[%s10404_s3 + $0x688] sm:$0xff] }
 0x184   :  { %v2218_v23 = vld [vmem:[%s10404_s3 + $0x6a8] sm:$0xff]  ;;  %v6995_v26 = vcombine.high %v2213_v18, %v2217_v19  ;;  %v6994_v36 = vcombine.low %v2213_v18, %v2217_v19 }
 0x185   :  { %v6997_v27 = vcombine.high %v2214_v20, %v2218_v23  ;;  %v6996_v37 = vcombine.low %v2214_v20, %v2218_v23  ;;  %v2269_v23 = vld [vmem:[%s10404_s3 + $0x840] sm:$0xff] }
 0x186   :  { %5167 = vmatpush1.bf16.msra.mxu0 %v6938_v28  ;;  %5331 = vmatpush1.bf16.msra.mxu1 %v6940_v15  ;;  %v2221_v28 = vld [vmem:[%s10404_s3 + $0x6c0] sm:$0xff] }
 0x187   :  { %5168 = vmatprep.subr.bf16.mxu0 %v6947_v34  ;;  %5332 = vmatprep.subr.bf16.mxu1 %v6949_v35  ;;  %v2225_v15 = vld [vmem:[%s10404_s3 + $0x6e0] sm:$0xff]  ;;  %v2222_v34 = vld [vmem:[%s10404_s3 + $0x6c8] sm:$0xff] }
 0x188   :  { %v2226_v35 = vld [vmem:[%s10404_s3 + $0x6e8] sm:$0xff]  ;;  %v7003_v38 = vcombine.high %v2221_v28, %v2225_v15  ;;  %v7002_v44 = vcombine.low %v2221_v28, %v2225_v15 }
 0x189   :  { %v7005_v40 = vcombine.high %v2222_v34, %v2226_v35  ;;  %v7004_v22 = vcombine.low %v2222_v34, %v2226_v35 }
 0x18a   :  { %5169 = vmatpush1.bf16.msra.mxu0 %v6946_v41  ;;  %5333 = vmatpush1.bf16.msra.mxu1 %v6948_v42  ;;  %v2229_v41 = vld [vmem:[%s10404_s3 + $0x700] sm:$0xff] }
 0x18b   :  { %5170 = vmatprep.subr.bf16.mxu0 %v6955_v43  ;;  %5334 = vmatprep.subr.bf16.mxu1 %v6957_v12  ;;  %v2233_v42 = vld [vmem:[%s10404_s3 + $0x720] sm:$0xff]  ;;  %v2230_v43 = vld [vmem:[%s10404_s3 + $0x708] sm:$0xff]  ;;  %v7620_v45 = vpop.eup %7619 }
 0x18c   :  { %v2234_v12 = vld [vmem:[%s10404_s3 + $0x728] sm:$0xff]  ;;  %v7011_v57 = vcombine.high %v2229_v41, %v2233_v42  ;;  %v1975_v51 = vadd.f32 1.0, %v7620_v45  ;;  %v7010_v52 = vcombine.low %v2229_v41, %v2233_v42  ;;  %v2289_v45 = vld [vmem:[%s10404_s3 + $0x8e0] sm:$0xff] }
 0x18d   :  { %v7012_v54 = vcombine.low %v2230_v43, %v2234_v12  ;;  %v2282_v41 = vld [vmem:[%s10404_s3 + $0x8a8] sm:$0xff] }
 0x18e   :  { %5171 = vmatpush1.bf16.msra.mxu0 %v6954_v47  ;;  %5335 = vmatpush1.bf16.msra.mxu1 %v6956_v48  ;;  %v7013_v47 = vcombine.high %v2230_v43, %v2234_v12  ;;  %v2237_v48 = vld [vmem:[%s10404_s3 + $0x740] sm:$0xff]  ;;  %7621 = vrcp.f32 %v1975_v51 }
 0x18f   :  { %5172 = vmatprep.subr.bf16.mxu0 %v6963_v49  ;;  %5336 = vmatprep.subr.bf16.mxu1 %v6965_v21  ;;  %v2241_v49 = vld [vmem:[%s10404_s3 + $0x760] sm:$0xff]  ;;  %v2238_v21 = vld [vmem:[%s10404_s3 + $0x748] sm:$0xff] }
 0x190   :  { %v7019_v55 = vcombine.high %v2237_v48, %v2241_v49  ;;  %v7018_v63 = vcombine.low %v2237_v48, %v2241_v49  ;;  %v7020_v0 = vcombine.low %v2238_v21, %v2242_v50  ;;  %v2293_v51 = vld [vmem:[%s10404_s3 + $0x900] sm:$0xff] }
 0x192   :  { %5173 = vmatpush1.bf16.msra.mxu0 %v6962_v56  ;;  %5337 = vmatpush1.bf16.msra.mxu1 %v6964_v58  ;;  %v7021_v56 = vcombine.high %v2238_v21, %v2242_v50  ;;  %v2245_v58 = vld [vmem:[%s10404_s3 + $0x780] sm:$0xff] }
 0x193   :  { %5174 = vmatprep.subr.bf16.mxu0 %v6971_v59  ;;  %5338 = vmatprep.subr.bf16.mxu1 %v6973_v60  ;;  %v2249_v59 = vld [vmem:[%s10404_s3 + $0x7a0] sm:$0xff]  ;;  %v2246_v60 = vld [vmem:[%s10404_s3 + $0x788] sm:$0xff] }
 0x194   :  { %v7027_v2 = vcombine.high %v2245_v58, %v2249_v59  ;;  %v7029_v3 = vcombine.high %v2246_v60, %v2250_v61  ;;  %v7026_v9 = vcombine.low %v2245_v58, %v2249_v59  ;;  %v7028_v10 = vcombine.low %v2246_v60, %v2250_v61  ;;  %v2301_v61 = vld [vmem:[%s10404_s3 + $0x940] sm:$0xff] }
 0x196   :  { %5175 = vmatpush1.bf16.msra.mxu0 %v6970_v4  ;;  %5339 = vmatpush1.bf16.msra.mxu1 %v6972_v5  ;;  %v2253_v4 = vld [vmem:[%s10404_s3 + $0x7c0] sm:$0xff] }
 0x197   :  { %5176 = vmatprep.subr.bf16.mxu0 %v6979_v6  ;;  %5340 = vmatprep.subr.bf16.mxu1 %v6981_v7  ;;  %v2257_v5 = vld [vmem:[%s10404_s3 + $0x7e0] sm:$0xff]  ;;  %v2254_v6 = vld [vmem:[%s10404_s3 + $0x7c8] sm:$0xff] }
 0x198   :  { %v2258_v7 = vld [vmem:[%s10404_s3 + $0x7e8] sm:$0xff]  ;;  %v7035_v39 = vcombine.high %v2253_v4, %v2257_v5 }
 0x199   :  { %v7037_v11 = vcombine.high %v2254_v6, %v2258_v7  ;;  %v7036_v18 = vcombine.low %v2254_v6, %v2258_v7  ;;  %v2309_v7 = vld [vmem:[%s10404_s3 + $0x980] sm:$0xff] }
 0x19a   :  { %5177 = vmatpush1.bf16.msra.mxu0 %v6978_v14  ;;  %5341 = vmatpush1.bf16.msra.mxu1 %v6980_v16  ;;  %v2265_v14 = vld [vmem:[%s10404_s3 + $0x820] sm:$0xff]  ;;  %v2262_v16 = vld [vmem:[%s10404_s3 + $0x808] sm:$0xff] }
 0x19b   :  { %5178 = vmatprep.subr.bf16.mxu0 %v6987_v17  ;;  %5342 = vmatprep.subr.bf16.mxu1 %v6989_v53  ;;  %v2266_v17 = vld [vmem:[%s10404_s3 + $0x828] sm:$0xff]  ;;  %v7034_v53 = vcombine.low %v2253_v4, %v2257_v5  ;;  %v7043_v19 = vcombine.high %v2261_v13, %v2265_v14  ;;  %v7042_v28 = vcombine.low %v2261_v13, %v2265_v14 }
 0x19c   :  { %v7045_v20 = vcombine.high %v2262_v16, %v2266_v17  ;;  %v7044_v15 = vcombine.low %v2262_v16, %v2266_v17  ;;  %v2317_v17 = vld [vmem:[%s10404_s3 + $0x9c0] sm:$0xff] }
 0x19e   :  { %5179 = vmatpush1.bf16.msra.mxu0 %v6986_v24  ;;  %5343 = vmatpush1.bf16.msra.mxu1 %v6988_v25  ;;  %v7622_v24 = vpop.eup %7621  ;;  %v2273_v25 = vld [vmem:[%s10404_s3 + $0x860] sm:$0xff] }
 0x19f   :  { %5180 = vmatprep.subr.bf16.mxu0 %v6995_v26  ;;  %5344 = vmatprep.subr.bf16.mxu1 %v6997_v27  ;;  %v2270_v26 = vld [vmem:[%s10404_s3 + $0x848] sm:$0xff]  ;;  %v8984_v34 = vpack.c.bf16 %v7622_v24, %v7622_v24  ;;  %v7051_v35 = vcombine.high %v2269_v23, %v2273_v25  ;;  %v7050_v42 = vcombine.low %v2269_v23, %v2273_v25 }
 0x1a0   :  { %v2274_v27 = vld [vmem:[%s10404_s3 + $0x868] sm:$0xff] }
 0x1a1   :  { %v7052_v43 = vcombine.low %v2270_v26, %v2274_v27 }
 0x1a2   :  { %5181 = vmatpush1.bf16.msra.mxu0 %v6994_v36  ;;  %5345 = vmatpush1.bf16.msra.mxu1 %v6996_v37  ;;  %v7053_v36 = vcombine.high %v2270_v26, %v2274_v27  ;;  %v2277_v37 = vld [vmem:[%s10404_s3 + $0x880] sm:$0xff]  ;;  %v305_v27 = vsub.s32 4, %v8738_v29 }
 0x1a3   :  { %5182 = vmatprep.subr.bf16.mxu0 %v7003_v38  ;;  %5346 = vmatprep.subr.bf16.mxu1 %v7005_v40  ;;  %v2281_v38 = vld [vmem:[%s10404_s3 + $0x8a0] sm:$0xff]  ;;  %v2278_v40 = vld [vmem:[%s10404_s3 + $0x888] sm:$0xff] }
 0x1a4   :  { %v7059_v12 = vcombine.high %v2277_v37, %v2281_v38  ;;  %v7058_v48 = vcombine.low %v2277_v37, %v2281_v38  ;;  %v7060_v49 = vcombine.low %v2278_v40, %v2282_v41  ;;  %v2325_v26 = vld [vmem:[%s10404_s3 + $0xa00] sm:$0xff] }
 0x1a6   :  { %5183 = vmatpush1.bf16.msra.mxu0 %v7002_v44  ;;  %5347 = vmatpush1.bf16.msra.mxu1 %v7004_v22  ;;  %v7061_v44 = vcombine.high %v2278_v40, %v2282_v41  ;;  %v2285_v22 = vld [vmem:[%s10404_s3 + $0x8c0] sm:$0xff]  ;;  %v317_v40 = vsub.s32 7, %v8738_v29 }
 0x1a7   :  { %5184 = vmatprep.subr.bf16.mxu0 %v7011_v57  ;;  %5348 = vmatprep.subr.bf16.mxu1 %v7013_v47  ;;  %v2286_v57 = vld [vmem:[%s10404_s3 + $0x8c8] sm:$0xff]  ;;  %v7067_v21 = vcombine.high %v2285_v22, %v2289_v45 }
 0x1a8   :  { %v2290_v47 = vld [vmem:[%s10404_s3 + $0x8e8] sm:$0xff] }
 0x1a9   :  { %v7069_v50 = vcombine.high %v2286_v57, %v2290_v47  ;;  %v7068_v58 = vcombine.low %v2286_v57, %v2290_v47 }
 0x1aa   :  { %5185 = vmatpush1.bf16.msra.mxu0 %v7010_v52  ;;  %5349 = vmatpush1.bf16.msra.mxu1 %v7012_v54  ;;  %v2297_v52 = vld [vmem:[%s10404_s3 + $0x920] sm:$0xff]  ;;  %v2294_v54 = vld [vmem:[%s10404_s3 + $0x908] sm:$0xff] }
 0x1ab   :  { %5186 = vmatprep.subr.bf16.mxu0 %v7019_v55  ;;  %5350 = vmatprep.subr.bf16.mxu1 %v7021_v56  ;;  %v2298_v55 = vld [vmem:[%s10404_s3 + $0x928] sm:$0xff]  ;;  %v7066_v56 = vcombine.low %v2285_v22, %v2289_v45  ;;  %v7075_v59 = vcombine.high %v2293_v51, %v2297_v52 }
 0x1ac   :  { %v7077_v60 = vcombine.high %v2294_v54, %v2298_v55  ;;  %v7076_v4 = vcombine.low %v2294_v54, %v2298_v55  ;;  %v2334_v22 = vld [vmem:[%s10404_s3 + $0xa48] sm:$0xff] }
 0x1ad   :  { %v2338_v45 = vld [vmem:[%s10404_s3 + $0xa68] sm:$0xff] }
 0x1ae   :  { %5187 = vmatpush1.bf16.msra.mxu0 %v7018_v63  ;;  %5351 = vmatpush1.bf16.msra.mxu1 %v7020_v0  ;;  %v2305_v63 = vld [vmem:[%s10404_s3 + $0x960] sm:$0xff]  ;;  %v2302_v0 = vld [vmem:[%s10404_s3 + $0x948] sm:$0xff] }
 0x1af   :  { %5188 = vmatprep.subr.bf16.mxu0 %v7027_v2  ;;  %5352 = vmatprep.subr.bf16.mxu1 %v7029_v3  ;;  %v2306_v2 = vld [vmem:[%s10404_s3 + $0x968] sm:$0xff]  ;;  %v7074_v3 = vcombine.low %v2293_v51, %v2297_v52  ;;  %v7083_v5 = vcombine.high %v2301_v61, %v2305_v63  ;;  %v7117_v51 = vcombine.high %v2334_v22, %v2338_v45  ;;  %v2341_v52 = vld [vmem:[%s10404_s3 + $0xa80] sm:$0xff] }
 0x1b0   :  { %v7085_v6 = vcombine.high %v2302_v0, %v2306_v2  ;;  %v7084_v13 = vcombine.low %v2302_v0, %v2306_v2 }
 0x1b2   :  { %5189 = vmatpush1.bf16.msra.mxu0 %v7026_v9  ;;  %5353 = vmatpush1.bf16.msra.mxu1 %v7028_v10  ;;  %v2313_v9 = vld [vmem:[%s10404_s3 + $0x9a0] sm:$0xff]  ;;  %v2310_v10 = vld [vmem:[%s10404_s3 + $0x988] sm:$0xff] }
 0x1b3   :  { %5190 = vmatprep.subr.bf16.mxu0 %v7035_v39  ;;  %5354 = vmatprep.subr.bf16.mxu1 %v7037_v11  ;;  %v2314_v39 = vld [vmem:[%s10404_s3 + $0x9a8] sm:$0xff]  ;;  %v7082_v11 = vcombine.low %v2301_v61, %v2305_v63  ;;  %v7091_v14 = vcombine.high %v2309_v7, %v2313_v9 }
 0x1b4   :  { %v7093_v16 = vcombine.high %v2310_v10, %v2314_v39  ;;  %v7092_v23 = vcombine.low %v2310_v10, %v2314_v39 }
 0x1b6   :  { %5191 = vmatpush1.bf16.msra.mxu0 %v7034_v53  ;;  %5355 = vmatpush1.bf16.msra.mxu1 %v7036_v18  ;;  %v2321_v53 = vld [vmem:[%s10404_s3 + $0x9e0] sm:$0xff]  ;;  %v2318_v18 = vld [vmem:[%s10404_s3 + $0x9c8] sm:$0xff] }
 0x1b7   :  { %5201 = vmatprep.subr.bf16.mxu0 %v7043_v19  ;;  %5365 = vmatprep.subr.bf16.mxu1 %v7045_v20  ;;  %v2322_v19 = vld [vmem:[%s10404_s3 + $0x9e8] sm:$0xff]  ;;  %v7090_v20 = vcombine.low %v2309_v7, %v2313_v9  ;;  %v7099_v24 = vcombine.high %v2317_v17, %v2321_v53  ;;  %v7098_v37 = vcombine.low %v2317_v17, %v2321_v53 }
 0x1b8   :  { %v7101_v25 = vcombine.high %v2318_v18, %v2322_v19  ;;  %v7100_v38 = vcombine.low %v2318_v18, %v2322_v19  ;;  %v2354_v17 = vld [vmem:[%s10404_s3 + $0xae8] sm:$0xff] }
 0x1b9   :  { %5193 = vmatmul.mubr.bf16.vlgmr.msra.gmra.mrb[8].mxu0 %v8984_v34  ;;  %5357 = vmatmul.mubr.bf16.vlgmr.msra.gmra.mrb[8].mxu1 %v8984_v34 }
 0x1ba   :  { %5202 = vmatpush1.bf16.msra.mxu0 %v7042_v28  ;;  %5366 = vmatpush1.bf16.msra.mxu1 %v7044_v15  ;;  %v2329_v28 = vld [vmem:[%s10404_s3 + $0xa20] sm:$0xff]  ;;  %v2326_v15 = vld [vmem:[%s10404_s3 + $0xa08] sm:$0xff] }
 0x1bb   :  { %5203 = vmatprep.subr.bf16.mxu0 %v7051_v35  ;;  %5367 = vmatprep.subr.bf16.mxu1 %v7053_v36  ;;  %v2330_v35 = vld [vmem:[%s10404_s3 + $0xa28] sm:$0xff]  ;;  %v309_v36 = vsub.s32 5, %v8738_v29  ;;  %v7107_v41 = vcombine.high %v2325_v26, %v2329_v28  ;;  %v7106_v47 = vcombine.low %v2325_v26, %v2329_v28 }
 0x1bc   :  { %v2362_v26 = vld [vmem:[%s10404_s3 + $0xb28] sm:$0xff] }
 0x1bd   :  { %v310_v57 = vrot.slane %v8744_v31, %v309_v36 }
 0x1be   :  { %5204 = vmatpush1.bf16.msra.mxu0 %v7050_v42  ;;  %5368 = vmatpush1.bf16.msra.mxu1 %v7052_v43  ;;  %v7109_v42 = vcombine.high %v2326_v15, %v2330_v35  ;;  %v2333_v43 = vld [vmem:[%s10404_s3 + $0xa40] sm:$0xff] }
 0x1bf   :  { %5205 = vmatprep.subr.bf16.mxu0 %v7059_v12  ;;  %5369 = vmatprep.subr.bf16.mxu1 %v7061_v44  ;;  %v306_v12 = vrot.slane %v8744_v31, %v305_v27  ;;  %v2337_v44 = vld [vmem:[%s10404_s3 + $0xa60] sm:$0xff] }
 0x1c2   :  { %5206 = vmatpush1.bf16.msra.mxu0 %v7058_v48  ;;  %5370 = vmatpush1.bf16.msra.mxu1 %v7060_v49  ;;  %v7108_v48 = vcombine.low %v2326_v15, %v2330_v35  ;;  %v318_v49 = vrot.slane %v8744_v31, %v317_v40  ;;  %v2342_v31 = vld [vmem:[%s10404_s3 + $0xa88] sm:$0xff] }
 0x1c3   :  { %5207 = vmatprep.subr.bf16.mxu0 %v7067_v21  ;;  %5371 = vmatprep.subr.bf16.mxu1 %v7069_v50  ;;  %v7115_v50 = vcombine.high %v2333_v43, %v2337_v44 }
 0x1c6   :  { %5208 = vmatpush1.bf16.msra.mxu0 %v7066_v56  ;;  %5372 = vmatpush1.bf16.msra.mxu1 %v7068_v58  ;;  %v2345_v58 = vld [vmem:[%s10404_s3 + $0xaa0] sm:$0xff] }
 0x1c7   :  { %5209 = vmatprep.subr.bf16.mxu0 %v7075_v59  ;;  %5373 = vmatprep.subr.bf16.mxu1 %v7077_v60  ;;  %v2346_v59 = vld [vmem:[%s10404_s3 + $0xaa8] sm:$0xff]  ;;  %v7123_v10 = vcombine.high %v2341_v52, %v2345_v58  ;;  %v7122_v53 = vcombine.low %v2341_v52, %v2345_v58 }
 0x1c8   :  { %v7125_v39 = vcombine.high %v2342_v31, %v2346_v59  ;;  %v7124_v18 = vcombine.low %v2342_v31, %v2346_v59 }
 0x1ca   :  { %5210 = vmatpush1.bf16.msra.mxu0 %v7074_v3  ;;  %5374 = vmatpush1.bf16.msra.mxu1 %v7076_v4 }
 0x1cb   :  { %5211 = vmatprep.subr.bf16.mxu0 %v7083_v5  ;;  %5375 = vmatprep.subr.bf16.mxu1 %v7085_v6  ;;  %v7114_v5 = vcombine.low %v2333_v43, %v2337_v44  ;;  %v7116_v6 = vcombine.low %v2334_v22, %v2338_v45  ;;  %v2370_v43 = vld [vmem:[%s10404_s3 + $0xb68] sm:$0xff] }
 0x1ce   :  { %5212 = vmatpush1.bf16.msra.mxu0 %v7082_v11  ;;  %5376 = vmatpush1.bf16.msra.mxu1 %v7084_v13  ;;  %v2349_v11 = vld [vmem:[%s10404_s3 + $0xac0] sm:$0xff] }
 0x1cf   :  { %5213 = vmatprep.subr.bf16.mxu0 %v7091_v14  ;;  %5377 = vmatprep.subr.bf16.mxu1 %v7093_v16  ;;  %v2353_v14 = vld [vmem:[%s10404_s3 + $0xae0] sm:$0xff]  ;;  %v2350_v16 = vld [vmem:[%s10404_s3 + $0xac8] sm:$0xff] }
 0x1d0   :  { %v7131_v19 = vcombine.high %v2349_v11, %v2353_v14  ;;  %v7130_v28 = vcombine.low %v2349_v11, %v2353_v14  ;;  %v7132_v15 = vcombine.low %v2350_v16, %v2354_v17 }
 0x1d2   :  { %5214 = vmatpush1.bf16.msra.mxu0 %v7090_v20  ;;  %5378 = vmatpush1.bf16.msra.mxu1 %v7092_v23  ;;  %v7133_v20 = vcombine.high %v2350_v16, %v2354_v17  ;;  %v2357_v23 = vld [vmem:[%s10404_s3 + $0xb00] sm:$0xff] }
 0x1d3   :  { %5215 = vmatprep.subr.bf16.mxu0 %v7099_v24  ;;  %5379 = vmatprep.subr.bf16.mxu1 %v7101_v25  ;;  %v2361_v24 = vld [vmem:[%s10404_s3 + $0xb20] sm:$0xff]  ;;  %v2358_v25 = vld [vmem:[%s10404_s3 + $0xb08] sm:$0xff] }
 0x1d4   :  { %v7139_v35 = vcombine.high %v2357_v23, %v2361_v24  ;;  %v7138_v44 = vcombine.low %v2357_v23, %v2361_v24  ;;  %v7140_v22 = vcombine.low %v2358_v25, %v2362_v26  ;;  %v2402_v23 = vld [vmem:[%s10404_s3 + $0xc68] sm:$0xff] }
 0x1d6   :  { %5216 = vmatpush1.bf16.msra.mxu0 %v7098_v37  ;;  %5380 = vmatpush1.bf16.msra.mxu1 %v7100_v38  ;;  %v7141_v37 = vcombine.high %v2358_v25, %v2362_v26  ;;  %v2365_v38 = vld [vmem:[%s10404_s3 + $0xb40] sm:$0xff] }
 0x1d7   :  { %5217 = vmatprep.subr.bf16.mxu0 %v7107_v41  ;;  %5381 = vmatprep.subr.bf16.mxu1 %v7109_v42  ;;  %v2369_v41 = vld [vmem:[%s10404_s3 + $0xb60] sm:$0xff]  ;;  %v2366_v42 = vld [vmem:[%s10404_s3 + $0xb48] sm:$0xff] }
 0x1d8   :  { %v1860_v21 = vpop.f32.mrb[4].mxu0  ;;  %v9099_v55 = vpop.f32.mrb[4].mxu1  ;;  %v7146_v58 = vcombine.low %v2365_v38, %v2369_v41  ;;  %v7148_v31 = vcombine.low %v2366_v42, %v2370_v43 }
 0x1d9   :  { %v7463_v54 = vadd.f32 %v1860_v21, %v306_v12  ;;  %v1862_v56 = vpop.f32.mrb[5].mxu0  ;;  %v1944_v61 = vpop.f32.mrb[5].mxu1  ;;  %v2377_v21 = vld [vmem:[%s10404_s3 + $0xba0] sm:$0xff] }
 0x1da   :  { %v7464_v60 = vadd.f32 %v1862_v56, %v310_v57  ;;  %v1864_v63 = vpop.f32.mrb[6].mxu0  ;;  %v7466_v2 = vadd.f32 %v1944_v61, %v318_v49  ;;  %5218 = vmatpush1.bf16.msra.mxu0 %v7106_v47  ;;  %5382 = vmatpush1.bf16.msra.mxu1 %v7108_v48  ;;  %v1946_v3 = vpop.f32.mrb[6].mxu1  ;;  %v7147_v57 = vcombine.high %v2365_v38, %v2369_v41  ;;  %v2373_v48 = vld [vmem:[%s10404_s3 + $0xb80] sm:$0xff] }
 0x1db   :  { %v6782_v0 = vmul.f32 -1.442695, %v7463_v54  ;;  %v1865_v4 = vpop.f32.mrb[7].mxu0  ;;  %v1947_v9 = vpop.f32.mrb[7].mxu1  ;;  %5219 = vmatprep.subr.bf16.mxu0 %v7115_v50  ;;  %5383 = vmatprep.subr.bf16.mxu1 %v7117_v51  ;;  %v7149_v47 = vcombine.high %v2366_v42, %v2370_v43  ;;  %v2374_v50 = vld [vmem:[%s10404_s3 + $0xb88] sm:$0xff]  ;;  %v7155_v59 = vcombine.high %v2373_v48, %v2377_v21  ;;  %v2381_v61 = vld [vmem:[%s10404_s3 + $0xbc0] sm:$0xff]  ;;  %v7154_v3 = vcombine.low %v2373_v48, %v2377_v21 }
 0x1dc   :  { %v6783_v7 = vmul.f32 -1.442695, %v7464_v60  ;;  %v6785_v13 = vmul.f32 -1.442695, %v7466_v2  ;;  %v2378_v51 = vld [vmem:[%s10404_s3 + $0xba8] sm:$0xff]  ;;  %v2385_v63 = vld [vmem:[%s10404_s3 + $0xbe0] sm:$0xff] }
 0x1dd   :  { %7623 = vpow2.f32 %v6782_v0  ;;  %v7157_v60 = vcombine.high %v2374_v50, %v2378_v51  ;;  %v2382_v0 = vld [vmem:[%s10404_s3 + $0xbc8] sm:$0xff]  ;;  %v7156_v4 = vcombine.low %v2374_v50, %v2378_v51  ;;  %v2393_v9 = vld [vmem:[%s10404_s3 + $0xc20] sm:$0xff]  ;;  %v7162_v11 = vcombine.low %v2381_v61, %v2385_v63 }
 0x1de   :  { %7625 = vpow2.f32 %v6783_v7  ;;  %5220 = vmatpush1.bf16.msra.mxu0 %v7114_v5  ;;  %5384 = vmatpush1.bf16.msra.mxu1 %v7116_v6  ;;  %v2386_v2 = vld [vmem:[%s10404_s3 + $0xbe8] sm:$0xff]  ;;  %v7163_v5 = vcombine.high %v2381_v61, %v2385_v63  ;;  %v2389_v7 = vld [vmem:[%s10404_s3 + $0xc00] sm:$0xff] }
 0x1df   :  { %7627 = vpow2.f32 %v6785_v13  ;;  %5221 = vmatprep.subr.bf16.mxu0 %v7123_v10  ;;  %5385 = vmatprep.subr.bf16.mxu1 %v7125_v39  ;;  %v7165_v6 = vcombine.high %v2382_v0, %v2386_v2  ;;  %v2390_v10 = vld [vmem:[%s10404_s3 + $0xc08] sm:$0xff]  ;;  %v7164_v13 = vcombine.low %v2382_v0, %v2386_v2  ;;  %v7171_v14 = vcombine.high %v2389_v7, %v2393_v9  ;;  %v2409_v41 = vld [vmem:[%s10404_s3 + $0xca0] sm:$0xff] }
 0x1e0   :  { %v2394_v39 = vld [vmem:[%s10404_s3 + $0xc28] sm:$0xff]  ;;  %v7170_v26 = vcombine.low %v2389_v7, %v2393_v9  ;;  %v2417_v48 = vld [vmem:[%s10404_s3 + $0xce0] sm:$0xff] }
 0x1e1   :  { %v7173_v16 = vcombine.high %v2390_v10, %v2394_v39  ;;  %v2406_v42 = vld [vmem:[%s10404_s3 + $0xc88] sm:$0xff]  ;;  %v2429_v2 = vld [vmem:[%s10404_s3 + $0xd40] sm:$0xff] }
 0x1e2   :  { %5222 = vmatpush1.bf16.msra.mxu0 %v7122_v53  ;;  %5386 = vmatpush1.bf16.msra.mxu1 %v7124_v18  ;;  %v2397_v53 = vld [vmem:[%s10404_s3 + $0xc40] sm:$0xff]  ;;  %v2410_v43 = vld [vmem:[%s10404_s3 + $0xca8] sm:$0xff] }
 0x1e3   :  { %5223 = vmatprep.subr.bf16.mxu0 %v7131_v19  ;;  %5387 = vmatprep.subr.bf16.mxu1 %v7133_v20  ;;  %v2401_v19 = vld [vmem:[%s10404_s3 + $0xc60] sm:$0xff]  ;;  %v2398_v20 = vld [vmem:[%s10404_s3 + $0xc48] sm:$0xff]  ;;  %v7188_v51 = vcombine.low %v2406_v42, %v2410_v43 }
 0x1e4   :  { %v7181_v38 = vcombine.high %v2398_v20, %v2402_v23  ;;  %v2418_v21 = vld [vmem:[%s10404_s3 + $0xce8] sm:$0xff] }
 0x1e6   :  { %5224 = vmatpush1.bf16.msra.mxu0 %v7130_v28  ;;  %5388 = vmatpush1.bf16.msra.mxu1 %v7132_v15  ;;  %v7172_v28 = vcombine.low %v2390_v10, %v2394_v39  ;;  %v2437_v39 = vld [vmem:[%s10404_s3 + $0xd80] sm:$0xff] }
 0x1e7   :  { %v7624_v12 = vpop.eup %7623  ;;  %5225 = vmatprep.subr.bf16.mxu0 %v7139_v35  ;;  %5389 = vmatprep.subr.bf16.mxu1 %v7141_v37  ;;  %v2405_v35 = vld [vmem:[%s10404_s3 + $0xc80] sm:$0xff]  ;;  %v7179_v37 = vcombine.high %v2397_v53, %v2401_v19 }
 0x1e8   :  { %v1977_v45 = vadd.f32 1.0, %v7624_v12  ;;  %v7626_v49 = vpop.eup %7625  ;;  %v7186_v50 = vcombine.low %v2405_v35, %v2409_v41 }
 0x1e9   :  { %v7628_v52 = vpop.eup %7627  ;;  %v1978_v54 = vadd.f32 1.0, %v7626_v49  ;;  %v2414_v49 = vld [vmem:[%s10404_s3 + $0xcc8] sm:$0xff] }
 0x1ea   :  { %7629 = vrcp.f32 %v1977_v45  ;;  %v1980_v56 = vadd.f32 1.0, %v7628_v52  ;;  %5226 = vmatpush1.bf16.msra.mxu0 %v7138_v44  ;;  %5390 = vmatpush1.bf16.msra.mxu1 %v7140_v22  ;;  %v7178_v44 = vcombine.low %v2397_v53, %v2401_v19  ;;  %v7180_v22 = vcombine.low %v2398_v20, %v2402_v23  ;;  %v2445_v20 = vld [vmem:[%s10404_s3 + $0xdc0] sm:$0xff] }
 0x1eb   :  { %7631 = vrcp.f32 %v1978_v54  ;;  %5227 = vmatprep.subr.bf16.mxu0 %v7147_v57  ;;  %5391 = vmatprep.subr.bf16.mxu1 %v7149_v47  ;;  %v7187_v45 = vcombine.high %v2405_v35, %v2409_v41  ;;  %v7189_v57 = vcombine.high %v2406_v42, %v2410_v43  ;;  %v2413_v47 = vld [vmem:[%s10404_s3 + $0xcc0] sm:$0xff]  ;;  %v7197_v54 = vcombine.high %v2414_v49, %v2418_v21 }
 0x1ec   :  { %7633 = vrcp.f32 %v1980_v56  ;;  %v7195_v52 = vcombine.high %v2413_v47, %v2417_v48  ;;  %v2421_v56 = vld [vmem:[%s10404_s3 + $0xd00] sm:$0xff]  ;;  %v7196_v61 = vcombine.low %v2414_v49, %v2418_v21 }
 0x1ed   :  { %v2449_v23 = vld [vmem:[%s10404_s3 + $0xde0] sm:$0xff] }
 0x1ee   :  { %5228 = vmatpush1.bf16.msra.mxu0 %v7146_v58  ;;  %5392 = vmatpush1.bf16.msra.mxu1 %v7148_v31  ;;  %v2425_v58 = vld [vmem:[%s10404_s3 + $0xd20] sm:$0xff]  ;;  %v2422_v31 = vld [vmem:[%s10404_s3 + $0xd08] sm:$0xff]  ;;  %v7227_v41 = vcombine.high %v2445_v20, %v2449_v23 }
 0x1ef   :  { %5229 = vmatprep.subr.bf16.mxu0 %v7155_v59  ;;  %5393 = vmatprep.subr.bf16.mxu1 %v7157_v60  ;;  %v2426_v59 = vld [vmem:[%s10404_s3 + $0xd28] sm:$0xff]  ;;  %v7194_v60 = vcombine.low %v2413_v47, %v2417_v48  ;;  %v7203_v63 = vcombine.high %v2421_v56, %v2425_v58  ;;  %v2453_v43 = vld [vmem:[%s10404_s3 + $0xe00] sm:$0xff]  ;;  %v7226_v47 = vcombine.low %v2445_v20, %v2449_v23 }
 0x1f0   :  { %v7205_v0 = vcombine.high %v2422_v31, %v2426_v59  ;;  %v7204_v7 = vcombine.low %v2422_v31, %v2426_v59 }
 0x1f2   :  { %5230 = vmatpush1.bf16.msra.mxu0 %v7154_v3  ;;  %5394 = vmatpush1.bf16.msra.mxu1 %v7156_v4  ;;  %v2433_v3 = vld [vmem:[%s10404_s3 + $0xd60] sm:$0xff]  ;;  %v2430_v4 = vld [vmem:[%s10404_s3 + $0xd48] sm:$0xff] }
 0x1f3   :  { %5231 = vmatprep.subr.bf16.mxu0 %v7163_v5  ;;  %5395 = vmatprep.subr.bf16.mxu1 %v7165_v6  ;;  %v2434_v5 = vld [vmem:[%s10404_s3 + $0xd68] sm:$0xff]  ;;  %v7202_v6 = vcombine.low %v2421_v56, %v2425_v58  ;;  %v7211_v9 = vcombine.high %v2429_v2, %v2433_v3 }
 0x1f4   :  { %v7630_v17 = vpop.eup %7629  ;;  %v7213_v10 = vcombine.high %v2430_v4, %v2434_v5  ;;  %v7212_v53 = vcombine.low %v2430_v4, %v2434_v5 }
 0x1f5   :  { %v7632_v18 = vpop.eup %7631  ;;  %v9196_v15 = vpack.c.bf16 %v7630_v17, %v7630_v17  ;;  %v7210_v17 = vcombine.low %v2429_v2, %v2433_v3 }
 0x1f6   :  { %v7634_v24 = vpop.eup %7633  ;;  %5232 = vmatpush1.bf16.msra.mxu0 %v7162_v11  ;;  %5396 = vmatpush1.bf16.msra.mxu1 %v7164_v13  ;;  %v9194_v25 = vpack.c.bf16 %v7632_v18, %v7632_v18  ;;  %v2441_v11 = vld [vmem:[%s10404_s3 + $0xda0] sm:$0xff]  ;;  %v2438_v13 = vld [vmem:[%s10404_s3 + $0xd88] sm:$0xff] }
 0x1f7   :  { %5242 = vmatprep.subr.bf16.mxu0 %v7171_v14  ;;  %5406 = vmatprep.subr.bf16.mxu1 %v7173_v16  ;;  %v9214_v12 = vpack.c.bf16 %v7634_v24, %v7634_v24  ;;  %v2442_v14 = vld [vmem:[%s10404_s3 + $0xda8] sm:$0xff]  ;;  %v313_v16 = vsub.s32 6, %v8738_v29  ;;  %v7219_v18 = vcombine.high %v2437_v39, %v2441_v11 }
 0x1f8   :  { %5233 = vmatprep.mubr.bf16.mxu0 %v9194_v25  ;;  %5397 = vmatprep.mubr.bf16.mxu1 %v9194_v25  ;;  %v7221_v19 = vcombine.high %v2438_v13, %v2442_v14  ;;  %v2446_v24 = vld [vmem:[%s10404_s3 + $0xdc8] sm:$0xff] }
 0x1f9   :  { %5234 = vmatmul.mubr.bf16.vlgmr.msra.gmra.mrb[8].mxu0 %v9196_v15  ;;  %5398 = vmatmul.mubr.bf16.vlgmr.msra.gmra.mrb[8].mxu1 %v9196_v15 }
 0x1fa   :  { %5243 = vmatpush1.bf16.msra.mxu0 %v7170_v26  ;;  %5407 = vmatpush1.bf16.msra.mxu1 %v7172_v28  ;;  %v2450_v26 = vld [vmem:[%s10404_s3 + $0xde8] sm:$0xff]  ;;  %v7671_v28 = vld [vmem:[%s10405_s2] sm:$0xff] }
 0x1fb   :  { %5274 = vmatprep.mubr.bf16.mxu0 %v9214_v12  ;;  %5438 = vmatprep.mubr.bf16.mxu1 %v9214_v12  ;;  %v314_v35 = vrot.slane %v7671_v28, %v313_v16  ;;  %v7229_v42 = vcombine.high %v2446_v24, %v2450_v26  ;;  %v7228_v48 = vcombine.low %v2446_v24, %v2450_v26 }
 0x1fc   :  { %5244 = vmatprep.subr.bf16.mxu0 %v7179_v37  ;;  %5408 = vmatprep.subr.bf16.mxu1 %v7181_v38  ;;  %v7218_v37 = vcombine.low %v2437_v39, %v2441_v11  ;;  %v7220_v38 = vcombine.low %v2438_v13, %v2442_v14 }
 0x1fe   :  { %5245 = vmatpush1.bf16.msra.mxu0 %v7178_v44  ;;  %5409 = vmatpush1.bf16.msra.mxu1 %v7180_v22  ;;  %v2457_v44 = vld [vmem:[%s10404_s3 + $0xe20] sm:$0xff]  ;;  %v2454_v22 = vld [vmem:[%s10404_s3 + $0xe08] sm:$0xff] }
 0x1ff   :  { %5246 = vmatprep.subr.bf16.mxu0 %v7187_v45  ;;  %5410 = vmatprep.subr.bf16.mxu1 %v7189_v57  ;;  %v2458_v45 = vld [vmem:[%s10404_s3 + $0xe28] sm:$0xff]  ;;  %v7465_v57 = vadd.f32 %v9099_v55, %v314_v35  ;;  %v7235_v49 = vcombine.high %v2453_v43, %v2457_v44  ;;  %v7234_v56 = vcombine.low %v2453_v43, %v2457_v44  ;;  %v2493_v35 = vld [vmem:[%s10404_s3 + $0xf40] sm:$0xff] }
 0x200   :  { %v7237_v21 = vcombine.high %v2454_v22, %v2458_v45  ;;  %v2462_v55 = vld [vmem:[%s10404_s3 + $0xe48] sm:$0xff]  ;;  %v7236_v58 = vcombine.low %v2454_v22, %v2458_v45 }
 0x202   :  { %5247 = vmatpush1.bf16.msra.mxu0 %v7186_v50  ;;  %5411 = vmatpush1.bf16.msra.mxu1 %v7188_v51  ;;  %v2461_v50 = vld [vmem:[%s10404_s3 + $0xe40] sm:$0xff] }
 0x203   :  { %5248 = vmatprep.subr.bf16.mxu0 %v7195_v52  ;;  %5412 = vmatprep.subr.bf16.mxu1 %v7197_v54  ;;  %v2465_v51 = vld [vmem:[%s10404_s3 + $0xe60] sm:$0xff]  ;;  %v2466_v52 = vld [vmem:[%s10404_s3 + $0xe68] sm:$0xff]  ;;  %v6784_v54 = vmul.f32 -1.442695, %v7465_v57 }
 0x204   :  { %v7243_v31 = vcombine.high %v2461_v50, %v2465_v51  ;;  %v7245_v59 = vcombine.high %v2462_v55, %v2466_v52  ;;  %v7242_v2 = vcombine.low %v2461_v50, %v2465_v51  ;;  %v7244_v3 = vcombine.low %v2462_v55, %v2466_v52  ;;  %v2501_v57 = vld [vmem:[%s10404_s3 + $0xf80] sm:$0xff] }
 0x205   :  { %7635 = vpow2.f32 %v6784_v54  ;;  %v2509_v52 = vld [vmem:[%s10404_s3 + $0xfc0] sm:$0xff] }
 0x206   :  { %5249 = vmatpush1.bf16.msra.mxu0 %v7194_v60  ;;  %5413 = vmatpush1.bf16.msra.mxu1 %v7196_v61  ;;  %v2469_v60 = vld [vmem:[%s10404_s3 + $0xe80] sm:$0xff] }
 0x207   :  { %5250 = vmatprep.subr.bf16.mxu0 %v7203_v63  ;;  %5414 = vmatprep.subr.bf16.mxu1 %v7205_v0  ;;  %v2473_v61 = vld [vmem:[%s10404_s3 + $0xea0] sm:$0xff]  ;;  %v2470_v63 = vld [vmem:[%s10404_s3 + $0xe88] sm:$0xff] }
 0x208   :  { %v2474_v0 = vld [vmem:[%s10404_s3 + $0xea8] sm:$0xff]  ;;  %v7251_v4 = vcombine.high %v2469_v60, %v2473_v61  ;;  %v7250_v39 = vcombine.low %v2469_v60, %v2473_v61  ;;  %v2513_v54 = vld [vmem:[%s10404_s3 + $0xfe0] sm:$0xff] }
 0x209   :  { %v7253_v5 = vcombine.high %v2470_v63, %v2474_v0  ;;  %v7252_v11 = vcombine.low %v2470_v63, %v2474_v0  ;;  %v7291_v60 = vcombine.high %v2509_v52, %v2513_v54  ;;  %v2007_v63 = vld [vmem:[%s10404_s3 + $0x10] sm:$0xff] }
 0x20a   :  { %5251 = vmatpush1.bf16.msra.mxu0 %v7202_v6  ;;  %5415 = vmatpush1.bf16.msra.mxu1 %v7204_v7  ;;  %v2477_v6 = vld [vmem:[%s10404_s3 + $0xec0] sm:$0xff]  ;;  %v2011_v0 = vld [vmem:[%s10404_s3 + $0x30] sm:$0xff] }
 0x20b   :  { %5252 = vmatprep.subr.bf16.mxu0 %v7211_v9  ;;  %5416 = vmatprep.subr.bf16.mxu1 %v7213_v10  ;;  %v2481_v7 = vld [vmem:[%s10404_s3 + $0xee0] sm:$0xff]  ;;  %v2478_v9 = vld [vmem:[%s10404_s3 + $0xec8] sm:$0xff] }
 0x20c   :  { %v2482_v10 = vld [vmem:[%s10404_s3 + $0xee8] sm:$0xff]  ;;  %v7259_v13 = vcombine.high %v2477_v6, %v2481_v7  ;;  %v7258_v20 = vcombine.low %v2477_v6, %v2481_v7  ;;  %v6791_v6 = vcombine.high %v2007_v63, %v2011_v0 }
 0x20d   :  { %v7261_v14 = vcombine.high %v2478_v9, %v2482_v10  ;;  %v7260_v23 = vcombine.low %v2478_v9, %v2482_v10  ;;  %v2015_v10 = vld [vmem:[%s10404_s3 + $0x50] sm:$0xff] }
 0x20e   :  { %5253 = vmatpush1.bf16.msra.mxu0 %v7210_v17  ;;  %5417 = vmatpush1.bf16.msra.mxu1 %v7212_v53  ;;  %v2485_v17 = vld [vmem:[%s10404_s3 + $0xf00] sm:$0xff] }
 0x20f   :  { %5254 = vmatprep.subr.bf16.mxu0 %v7219_v18  ;;  %5418 = vmatprep.subr.bf16.mxu1 %v7221_v19  ;;  %v2489_v53 = vld [vmem:[%s10404_s3 + $0xf20] sm:$0xff]  ;;  %v2486_v18 = vld [vmem:[%s10404_s3 + $0xf08] sm:$0xff]  ;;  %v7636_v24 = vpop.eup %7635 }
 0x210   :  { %v2490_v19 = vld [vmem:[%s10404_s3 + $0xf28] sm:$0xff]  ;;  %v7267_v26 = vcombine.high %v2485_v17, %v2489_v53  ;;  %v7266_v43 = vcombine.low %v2485_v17, %v2489_v53 }
 0x211   :  { %v7269_v28 = vcombine.high %v2486_v18, %v2490_v19  ;;  %v7268_v44 = vcombine.low %v2486_v18, %v2490_v19 }
 0x212   :  { %5255 = vmatpush1.bf16.msra.mxu0 %v7218_v37  ;;  %5419 = vmatpush1.bf16.msra.mxu1 %v7220_v38  ;;  %v2497_v37 = vld [vmem:[%s10404_s3 + $0xf60] sm:$0xff]  ;;  %v2494_v38 = vld [vmem:[%s10404_s3 + $0xf48] sm:$0xff] }
 0x213   :  { %5256 = vmatprep.subr.bf16.mxu0 %v7227_v41  ;;  %5420 = vmatprep.subr.bf16.mxu1 %v7229_v42  ;;  %v2498_v41 = vld [vmem:[%s10404_s3 + $0xf68] sm:$0xff]  ;;  %v1979_v42 = vadd.f32 1.0, %v7636_v24  ;;  %v7275_v22 = vcombine.high %v2493_v35, %v2497_v37  ;;  %v2024_v24 = vld [vmem:[%s10404_s3 + $0x98] sm:$0xff] }
 0x214   :  { %v7277_v45 = vcombine.high %v2494_v38, %v2498_v41  ;;  %v7276_v50 = vcombine.low %v2494_v38, %v2498_v41  ;;  %v2031_v41 = vld [vmem:[%s10404_s3 + $0xd0] sm:$0xff] }
 0x215   :  { %7637 = vrcp.f32 %v1979_v42  ;;  %v2035_v42 = vld [vmem:[%s10404_s3 + $0xf0] sm:$0xff] }
 0x216   :  { %5257 = vmatpush1.bf16.msra.mxu0 %v7226_v47  ;;  %5421 = vmatpush1.bf16.msra.mxu1 %v7228_v48  ;;  %v2505_v47 = vld [vmem:[%s10404_s3 + $0xfa0] sm:$0xff]  ;;  %v2502_v48 = vld [vmem:[%s10404_s3 + $0xf88] sm:$0xff] }
 0x217   :  { %5258 = vmatprep.subr.bf16.mxu0 %v7235_v49  ;;  %5422 = vmatprep.subr.bf16.mxu1 %v7237_v21  ;;  %v2506_v49 = vld [vmem:[%s10404_s3 + $0xfa8] sm:$0xff]  ;;  %v7274_v21 = vcombine.low %v2493_v35, %v2497_v37  ;;  %v7283_v51 = vcombine.high %v2501_v57, %v2505_v47 }
 0x218   :  { %v7285_v55 = vcombine.high %v2502_v48, %v2506_v49 }
 0x21a   :  { %5259 = vmatpush1.bf16.msra.mxu0 %v7234_v56  ;;  %5423 = vmatpush1.bf16.msra.mxu1 %v7236_v58  ;;  %v2510_v56 = vld [vmem:[%s10404_s3 + $0xfc8] sm:$0xff] }
 0x21b   :  { %5260 = vmatprep.subr.bf16.mxu0 %v7243_v31  ;;  %5424 = vmatprep.subr.bf16.mxu1 %v7245_v59  ;;  %v2514_v58 = vld [vmem:[%s10404_s3 + $0xfe8] sm:$0xff]  ;;  %v7282_v31 = vcombine.low %v2501_v57, %v2505_v47  ;;  %v7284_v59 = vcombine.low %v2502_v48, %v2506_v49  ;;  %v2039_v47 = vld [vmem:[%s10404_s3 + $0x110] sm:$0xff]  ;;  %v2040_v49 = vld [vmem:[%s10404_s3 + $0x118] sm:$0xff] }
 0x21c   :  { %v7293_v61 = vcombine.high %v2510_v56, %v2514_v58  ;;  %v2043_v48 = vld [vmem:[%s10404_s3 + $0x130] sm:$0xff] }
 0x21e   :  { %5261 = vmatpush1.bf16.msra.mxu0 %v7242_v2  ;;  %5425 = vmatpush1.bf16.msra.mxu1 %v7244_v3  ;;  %v2008_v2 = vld [vmem:[%s10404_s3 + $0x18] sm:$0xff] }
 0x21f   :  { %5262 = vmatprep.subr.bf16.mxu0 %v7251_v4  ;;  %5426 = vmatprep.subr.bf16.mxu1 %v7253_v5  ;;  %v2012_v3 = vld [vmem:[%s10404_s3 + $0x38] sm:$0xff]  ;;  %v7290_v4 = vcombine.low %v2509_v52, %v2513_v54  ;;  %v7292_v5 = vcombine.low %v2510_v56, %v2514_v58  ;;  %v7638_v9 = vpop.eup %7637  ;;  %v2047_v54 = vld [vmem:[%s10404_s3 + $0x150] sm:$0xff] }
 0x220   :  { %v6793_v7 = vcombine.high %v2008_v2, %v2012_v3  ;;  %v9405_v17 = vpack.c.bf16 %v7638_v9, %v7638_v9  ;;  %v6792_v53 = vcombine.low %v2008_v2, %v2012_v3  ;;  %v2051_v56 = vld [vmem:[%s10404_s3 + $0x170] sm:$0xff]  ;;  %v2048_v58 = vld [vmem:[%s10404_s3 + $0x158] sm:$0xff] }
 0x221   :  { %v2059_v2 = vld [vmem:[%s10404_s3 + $0x1b0] sm:$0xff]  ;;  %v2056_v3 = vld [vmem:[%s10404_s3 + $0x198] sm:$0xff] }
 0x222   :  { %5263 = vmatpush1.bf16.msra.mxu0 %v7250_v39  ;;  %5427 = vmatpush1.bf16.msra.mxu1 %v7252_v11  ;;  %v2019_v39 = vld [vmem:[%s10404_s3 + $0x70] sm:$0xff]  ;;  %v2016_v11 = vld [vmem:[%s10404_s3 + $0x58] sm:$0xff] }
 0x223   :  { %5264 = vmatprep.subr.bf16.mxu0 %v7259_v13  ;;  %5428 = vmatprep.subr.bf16.mxu1 %v7261_v14  ;;  %v2020_v13 = vld [vmem:[%s10404_s3 + $0x78] sm:$0xff]  ;;  %v6790_v14 = vcombine.low %v2007_v63, %v2011_v0  ;;  %v6799_v18 = vcombine.high %v2015_v10, %v2019_v39  ;;  %v2055_v0 = vld [vmem:[%s10404_s3 + $0x190] sm:$0xff] }
 0x224   :  { %v6801_v19 = vcombine.high %v2016_v11, %v2020_v13  ;;  %v6800_v35 = vcombine.low %v2016_v11, %v2020_v13  ;;  %v2064_v11 = vld [vmem:[%s10404_s3 + $0x1d8] sm:$0xff] }
 0x225   :  { %v2068_v13 = vld [vmem:[%s10404_s3 + $0x1f8] sm:$0xff] }
 0x226   :  { %5265 = vmatpush1.bf16.msra.mxu0 %v7258_v20  ;;  %5429 = vmatpush1.bf16.msra.mxu1 %v7260_v23  ;;  %v2023_v20 = vld [vmem:[%s10404_s3 + $0x90] sm:$0xff] }
 0x227   :  { %5266 = vmatprep.subr.bf16.mxu0 %v7267_v26  ;;  %5430 = vmatprep.subr.bf16.mxu1 %v7269_v28  ;;  %v2027_v23 = vld [vmem:[%s10404_s3 + $0xb0] sm:$0xff]  ;;  %v2028_v26 = vld [vmem:[%s10404_s3 + $0xb8] sm:$0xff]  ;;  %v6798_v28 = vcombine.low %v2015_v10, %v2019_v39 }
 0x228   :  { %v6807_v37 = vcombine.high %v2023_v20, %v2027_v23  ;;  %v6809_v38 = vcombine.high %v2024_v24, %v2028_v26  ;;  %v2063_v10 = vld [vmem:[%s10404_s3 + $0x1d0] sm:$0xff] }
 0x229   :  { %v2067_v39 = vld [vmem:[%s10404_s3 + $0x1f0] sm:$0xff] }
 0x22a   :  { %5267 = vmatpush1.bf16.msra.mxu0 %v7266_v43  ;;  %5431 = vmatpush1.bf16.msra.mxu1 %v7268_v44  ;;  %v2032_v43 = vld [vmem:[%s10404_s3 + $0xd8] sm:$0xff]  ;;  %v6806_v44 = vcombine.low %v2023_v20, %v2027_v23  ;;  %v2071_v20 = vld [vmem:[%s10404_s3 + $0x210] sm:$0xff] }
 0x22b   :  { %5268 = vmatprep.subr.bf16.mxu0 %v7275_v22  ;;  %5432 = vmatprep.subr.bf16.mxu1 %v7277_v45  ;;  %v6808_v22 = vcombine.low %v2024_v24, %v2028_v26  ;;  %v6815_v45 = vcombine.high %v2031_v41, %v2035_v42  ;;  %v2075_v23 = vld [vmem:[%s10404_s3 + $0x230] sm:$0xff]  ;;  %v2072_v24 = vld [vmem:[%s10404_s3 + $0x218] sm:$0xff] }
 0x22c   :  { %v2076_v26 = vld [vmem:[%s10404_s3 + $0x238] sm:$0xff] }
 0x22e   :  { %5269 = vmatpush1.bf16.msra.mxu0 %v7274_v21  ;;  %5433 = vmatpush1.bf16.msra.mxu1 %v7276_v50  ;;  %v2044_v21 = vld [vmem:[%s10404_s3 + $0x138] sm:$0xff]  ;;  %v6814_v50 = vcombine.low %v2031_v41, %v2035_v42  ;;  %v2079_v41 = vld [vmem:[%s10404_s3 + $0x250] sm:$0xff] }
 0x22f   :  { %5270 = vmatprep.subr.bf16.mxu0 %v7283_v51  ;;  %5434 = vmatprep.subr.bf16.mxu1 %v7285_v55  ;;  %v6823_v55 = vcombine.high %v2039_v47, %v2043_v48  ;;  %v6825_v52 = vcombine.high %v2040_v49, %v2044_v21  ;;  %v2083_v42 = vld [vmem:[%s10404_s3 + $0x270] sm:$0xff] }
 0x232   :  { %5271 = vmatpush1.bf16.msra.mxu0 %v7282_v31  ;;  %5435 = vmatpush1.bf16.msra.mxu1 %v7284_v59  ;;  %v2052_v31 = vld [vmem:[%s10404_s3 + $0x178] sm:$0xff]  ;;  %v6822_v59 = vcombine.low %v2039_v47, %v2043_v48  ;;  %v2087_v47 = vld [vmem:[%s10404_s3 + $0x290] sm:$0xff] }
 0x233   :  { %5272 = vmatprep.subr.bf16.mxu0 %v7291_v60  ;;  %5436 = vmatprep.subr.bf16.mxu1 %v7293_v61  ;;  %v6824_v60 = vcombine.low %v2040_v49, %v2044_v21  ;;  %v6831_v61 = vcombine.high %v2047_v54, %v2051_v56  ;;  %v6833_v63 = vcombine.high %v2048_v58, %v2052_v31  ;;  %v2091_v48 = vld [vmem:[%s10404_s3 + $0x2b0] sm:$0xff]  ;;  %v2088_v49 = vld [vmem:[%s10404_s3 + $0x298] sm:$0xff] }
 0x234   :  { %v2092_v21 = vld [vmem:[%s10404_s3 + $0x2b8] sm:$0xff] }
 0x236   :  { %5273 = vmatpush1.bf16.msra.mxu0 %v7290_v4  ;;  %5437 = vmatpush1.bf16.msra.mxu1 %v7292_v5  ;;  %v2060_v4 = vld [vmem:[%s10404_s3 + $0x1b8] sm:$0xff]  ;;  %v6830_v5 = vcombine.low %v2047_v54, %v2051_v56  ;;  %v2095_v54 = vld [vmem:[%s10404_s3 + $0x2d0] sm:$0xff] }
 0x237   :  { %5447 = vmatprep.subr.bf16.mxu0 %v6791_v6  ;;  %5611 = vmatprep.subr.bf16.mxu1 %v6793_v7  ;;  %v6832_v6 = vcombine.low %v2048_v58, %v2052_v31  ;;  %v6839_v7 = vcombine.high %v2055_v0, %v2059_v2  ;;  %v6841_v9 = vcombine.high %v2056_v3, %v2060_v4  ;;  %v2099_v56 = vld [vmem:[%s10404_s3 + $0x2f0] sm:$0xff]  ;;  %v2096_v58 = vld [vmem:[%s10404_s3 + $0x2d8] sm:$0xff] }
 0x238   :  { %v2100_v31 = vld [vmem:[%s10404_s3 + $0x2f8] sm:$0xff] }
 0x239   :  { %5275 = vmatmul.mubr.bf16.vlgmr.msra.gmra.mrb[8].mxu0 %v9405_v17  ;;  %5439 = vmatmul.mubr.bf16.vlgmr.msra.gmra.mrb[8].mxu1 %v9405_v17 }
 0x23a   :  { %5448 = vmatpush1.bf16.msra.mxu0 %v6790_v14  ;;  %5479 = vmatprep.mubr.bf16.mxu0 %v8771_v62  ;;  %v6838_v14 = vcombine.low %v2055_v0, %v2059_v2  ;;  %v2103_v0 = vld [vmem:[%s10404_s3 + $0x310] sm:$0xff] }
 0x23b   :  { %5612 = vmatpush1.bf16.msra.mxu1 %v6792_v53  ;;  %5643 = vmatprep.mubr.bf16.mxu1 %v8771_v62  ;;  %v2036_v62 = vld [vmem:[%s10404_s3 + $0xf8] sm:$0xff]  ;;  %v6840_v53 = vcombine.low %v2056_v3, %v2060_v4  ;;  %v2107_v2 = vld [vmem:[%s10404_s3 + $0x330] sm:$0xff] }
 0x23c   :  { %5449 = vmatprep.subr.bf16.mxu0 %v6799_v18  ;;  %5613 = vmatprep.subr.bf16.mxu1 %v6801_v19  ;;  %v6817_v57 = vcombine.high %v2032_v43, %v2036_v62  ;;  %v6816_v51 = vcombine.low %v2032_v43, %v2036_v62  ;;  %v6847_v18 = vcombine.high %v2063_v10, %v2067_v39  ;;  %v2080_v43 = vld [vmem:[%s10404_s3 + $0x258] sm:$0xff] }
 0x23d   :  { %v6849_v19 = vcombine.high %v2064_v11, %v2068_v13  ;;  %v2084_v62 = vld [vmem:[%s10404_s3 + $0x278] sm:$0xff] }
 0x23e   :  { %5450 = vmatpush1.bf16.msra.mxu0 %v6798_v28  ;;  %v6846_v28 = vcombine.low %v2063_v10, %v2067_v39  ;;  %v2104_v3 = vld [vmem:[%s10404_s3 + $0x318] sm:$0xff]  ;;  %v2111_v10 = vld [vmem:[%s10404_s3 + $0x350] sm:$0xff] }
 0x23f   :  { %5614 = vmatpush1.bf16.msra.mxu1 %v6800_v35  ;;  %5451 = vmatprep.subr.bf16.mxu0 %v6807_v37  ;;  %v6848_v35 = vcombine.low %v2064_v11, %v2068_v13  ;;  %v6855_v37 = vcombine.high %v2071_v20, %v2075_v23  ;;  %v2108_v4 = vld [vmem:[%s10404_s3 + $0x338] sm:$0xff]  ;;  %v2115_v39 = vld [vmem:[%s10404_s3 + $0x370] sm:$0xff] }
 0x240   :  { %5615 = vmatprep.subr.bf16.mxu1 %v6809_v38  ;;  %v6857_v38 = vcombine.high %v2072_v24, %v2076_v26  ;;  %v2112_v11 = vld [vmem:[%s10404_s3 + $0x358] sm:$0xff] }
 0x241   :  { %v2116_v13 = vld [vmem:[%s10404_s3 + $0x378] sm:$0xff] }
 0x242   :  { %5452 = vmatpush1.bf16.msra.mxu0 %v6806_v44  ;;  %v6854_v44 = vcombine.low %v2071_v20, %v2075_v23  ;;  %v2119_v20 = vld [vmem:[%s10404_s3 + $0x390] sm:$0xff] }
 0x243   :  { %5616 = vmatpush1.bf16.msra.mxu1 %v6808_v22  ;;  %5453 = vmatprep.subr.bf16.mxu0 %v6815_v45  ;;  %v6856_v22 = vcombine.low %v2072_v24, %v2076_v26  ;;  %v6863_v45 = vcombine.high %v2079_v41, %v2083_v42  ;;  %v2123_v23 = vld [vmem:[%s10404_s3 + $0x3b0] sm:$0xff]  ;;  %v2120_v24 = vld [vmem:[%s10404_s3 + $0x398] sm:$0xff] }
 0x244   :  { %5617 = vmatprep.subr.bf16.mxu1 %v6817_v57  ;;  %v6865_v57 = vcombine.high %v2080_v43, %v2084_v62  ;;  %v2124_v26 = vld [vmem:[%s10404_s3 + $0x3b8] sm:$0xff] }
 0x246   :  { %5454 = vmatpush1.bf16.msra.mxu0 %v6814_v50  ;;  %v6862_v50 = vcombine.low %v2079_v41, %v2083_v42  ;;  %v2127_v41 = vld [vmem:[%s10404_s3 + $0x3d0] sm:$0xff] }
 0x247   :  { %5618 = vmatpush1.bf16.msra.mxu1 %v6816_v51  ;;  %5455 = vmatprep.subr.bf16.mxu0 %v6823_v55  ;;  %v6864_v51 = vcombine.low %v2080_v43, %v2084_v62  ;;  %v6871_v55 = vcombine.high %v2087_v47, %v2091_v48  ;;  %v2131_v42 = vld [vmem:[%s10404_s3 + $0x3f0] sm:$0xff]  ;;  %v2128_v43 = vld [vmem:[%s10404_s3 + $0x3d8] sm:$0xff] }
 0x248   :  { %5619 = vmatprep.subr.bf16.mxu1 %v6825_v52  ;;  %v6873_v52 = vcombine.high %v2088_v49, %v2092_v21  ;;  %v2132_v62 = vld [vmem:[%s10404_s3 + $0x3f8] sm:$0xff] }
 0x24a   :  { %5456 = vmatpush1.bf16.msra.mxu0 %v6822_v59  ;;  %v6870_v59 = vcombine.low %v2087_v47, %v2091_v48  ;;  %v2135_v47 = vld [vmem:[%s10404_s3 + $0x410] sm:$0xff] }
 0x24b   :  { %5620 = vmatpush1.bf16.msra.mxu1 %v6824_v60  ;;  %5457 = vmatprep.subr.bf16.mxu0 %v6831_v61  ;;  %v6872_v60 = vcombine.low %v2088_v49, %v2092_v21  ;;  %v6879_v61 = vcombine.high %v2095_v54, %v2099_v56  ;;  %v2139_v48 = vld [vmem:[%s10404_s3 + $0x430] sm:$0xff]  ;;  %v2136_v49 = vld [vmem:[%s10404_s3 + $0x418] sm:$0xff] }
 0x24c   :  { %5621 = vmatprep.subr.bf16.mxu1 %v6833_v63  ;;  %v6881_v63 = vcombine.high %v2096_v58, %v2100_v31  ;;  %v2140_v21 = vld [vmem:[%s10404_s3 + $0x438] sm:$0xff] }
 0x24e   :  { %5458 = vmatpush1.bf16.msra.mxu0 %v6830_v5  ;;  %v6878_v5 = vcombine.low %v2095_v54, %v2099_v56  ;;  %v2143_v54 = vld [vmem:[%s10404_s3 + $0x450] sm:$0xff] }
 0x24f   :  { %5622 = vmatpush1.bf16.msra.mxu1 %v6832_v6  ;;  %5459 = vmatprep.subr.bf16.mxu0 %v6839_v7  ;;  %v6880_v6 = vcombine.low %v2096_v58, %v2100_v31  ;;  %v6887_v7 = vcombine.high %v2103_v0, %v2107_v2  ;;  %v2147_v56 = vld [vmem:[%s10404_s3 + $0x470] sm:$0xff]  ;;  %v6918_v58 = vcombine.low %v2135_v47, %v2139_v48  ;;  %v2144_v31 = vld [vmem:[%s10404_s3 + $0x458] sm:$0xff] }
 0x250   :  { %5623 = vmatprep.subr.bf16.mxu1 %v6841_v9  ;;  %v6889_v9 = vcombine.high %v2104_v3, %v2108_v4 }
 0x252   :  { %5460 = vmatpush1.bf16.msra.mxu0 %v6838_v14  ;;  %v6886_v14 = vcombine.low %v2103_v0, %v2107_v2  ;;  %v2155_v0 = vld [vmem:[%s10404_s3 + $0x4b0] sm:$0xff] }
 0x253   :  { %5624 = vmatpush1.bf16.msra.mxu1 %v6840_v53  ;;  %5461 = vmatprep.subr.bf16.mxu0 %v6847_v18  ;;  %v6888_v53 = vcombine.low %v2104_v3, %v2108_v4  ;;  %v6895_v18 = vcombine.high %v2111_v10, %v2115_v39  ;;  %v2152_v3 = vld [vmem:[%s10404_s3 + $0x498] sm:$0xff] }
 0x254   :  { %5625 = vmatprep.subr.bf16.mxu1 %v6849_v19  ;;  %v6897_v19 = vcombine.high %v2112_v11, %v2116_v13  ;;  %v2156_v4 = vld [vmem:[%s10404_s3 + $0x4b8] sm:$0xff] }
 0x256   :  { %5462 = vmatpush1.bf16.msra.mxu0 %v6846_v28  ;;  %v6894_v28 = vcombine.low %v2111_v10, %v2115_v39  ;;  %v2159_v10 = vld [vmem:[%s10404_s3 + $0x4d0] sm:$0xff] }
 0x257   :  { %5626 = vmatpush1.bf16.msra.mxu1 %v6848_v35  ;;  %5463 = vmatprep.subr.bf16.mxu0 %v6855_v37  ;;  %v6896_v35 = vcombine.low %v2112_v11, %v2116_v13  ;;  %v6903_v37 = vcombine.high %v2119_v20, %v2123_v23  ;;  %v2163_v39 = vld [vmem:[%s10404_s3 + $0x4f0] sm:$0xff]  ;;  %v2164_v11 = vld [vmem:[%s10404_s3 + $0x4f8] sm:$0xff]  ;;  %v6936_v13 = vcombine.low %v2152_v3, %v2156_v4 }
 0x258   :  { %5627 = vmatprep.subr.bf16.mxu1 %v6857_v38  ;;  %v6905_v38 = vcombine.high %v2120_v24, %v2124_v26 }
 0x25a   :  { %5464 = vmatpush1.bf16.msra.mxu0 %v6854_v44  ;;  %v6902_v44 = vcombine.low %v2119_v20, %v2123_v23  ;;  %v2168_v20 = vld [vmem:[%s10404_s3 + $0x518] sm:$0xff] }
 0x25b   :  { %5628 = vmatpush1.bf16.msra.mxu1 %v6856_v22  ;;  %5465 = vmatprep.subr.bf16.mxu0 %v6863_v45  ;;  %v6904_v22 = vcombine.low %v2120_v24, %v2124_v26  ;;  %v6911_v45 = vcombine.high %v2127_v41, %v2131_v42  ;;  %v2172_v23 = vld [vmem:[%s10404_s3 + $0x538] sm:$0xff]  ;;  %v6942_v24 = vcombine.low %v2159_v10, %v2163_v39 }
 0x25c   :  { %5629 = vmatprep.subr.bf16.mxu1 %v6865_v57  ;;  %v6913_v57 = vcombine.high %v2128_v43, %v2132_v62 }
 0x25e   :  { %5466 = vmatpush1.bf16.msra.mxu0 %v6862_v50  ;;  %v6910_v50 = vcombine.low %v2127_v41, %v2131_v42  ;;  %v2176_v41 = vld [vmem:[%s10404_s3 + $0x558] sm:$0xff] }
 0x25f   :  { %5630 = vmatpush1.bf16.msra.mxu1 %v6864_v51  ;;  %5467 = vmatprep.subr.bf16.mxu0 %v6871_v55  ;;  %v6912_v51 = vcombine.low %v2128_v43, %v2132_v62  ;;  %v6919_v55 = vcombine.high %v2135_v47, %v2139_v48  ;;  %v2180_v42 = vld [vmem:[%s10404_s3 + $0x578] sm:$0xff]  ;;  %v6952_v62 = vcombine.low %v2168_v20, %v2172_v23 }
 0x260   :  { %5631 = vmatprep.subr.bf16.mxu1 %v6873_v52  ;;  %v6921_v52 = vcombine.high %v2136_v49, %v2140_v21  ;;  %v2184_v47 = vld [vmem:[%s10404_s3 + $0x598] sm:$0xff] }
 0x261   :  { %v2188_v48 = vld [vmem:[%s10404_s3 + $0x5b8] sm:$0xff] }
 0x262   :  { %5468 = vmatpush1.bf16.msra.mxu0 %v6870_v59  ;;  %v2148_v59 = vld [vmem:[%s10404_s3 + $0x478] sm:$0xff] }
 0x263   :  { %5632 = vmatpush1.bf16.msra.mxu1 %v6872_v60  ;;  %5469 = vmatprep.subr.bf16.mxu0 %v6879_v61  ;;  %v6920_v60 = vcombine.low %v2136_v49, %v2140_v21  ;;  %v6927_v61 = vcombine.high %v2143_v54, %v2147_v56  ;;  %v6929_v2 = vcombine.high %v2144_v31, %v2148_v59 }
 0x264   :  { %5633 = vmatprep.subr.bf16.mxu1 %v6881_v63  ;;  %v2151_v63 = vld [vmem:[%s10404_s3 + $0x490] sm:$0xff]  ;;  %v6960_v21 = vcombine.low %v2176_v41, %v2180_v42 }
 0x266   :  { %5470 = vmatpush1.bf16.msra.mxu0 %v6878_v5  ;;  %v6926_v5 = vcombine.low %v2143_v54, %v2147_v56  ;;  %v2192_v54 = vld [vmem:[%s10404_s3 + $0x5d8] sm:$0xff] }
 0x267   :  { %5634 = vmatpush1.bf16.msra.mxu1 %v6880_v6  ;;  %5471 = vmatprep.subr.bf16.mxu0 %v6887_v7  ;;  %v6928_v6 = vcombine.low %v2144_v31, %v2148_v59  ;;  %v6935_v7 = vcombine.high %v2151_v63, %v2155_v0  ;;  %v2196_v56 = vld [vmem:[%s10404_s3 + $0x5f8] sm:$0xff]  ;;  %v6968_v31 = vcombine.low %v2184_v47, %v2188_v48 }
 0x268   :  { %5635 = vmatprep.subr.bf16.mxu1 %v6889_v9  ;;  %v6937_v9 = vcombine.high %v2152_v3, %v2156_v4  ;;  %v6976_v4 = vcombine.low %v2192_v54, %v2196_v56 }
 0x26a   :  { %5472 = vmatpush1.bf16.msra.mxu0 %v6886_v14  ;;  %v6943_v14 = vcombine.high %v2159_v10, %v2163_v39  ;;  %v2208_v10 = vld [vmem:[%s10404_s3 + $0x658] sm:$0xff] }
 0x26b   :  { %5636 = vmatpush1.bf16.msra.mxu1 %v6888_v53  ;;  %5473 = vmatprep.subr.bf16.mxu0 %v6895_v18  ;;  %v2167_v18 = vld [vmem:[%s10404_s3 + $0x510] sm:$0xff]  ;;  %v2212_v39 = vld [vmem:[%s10404_s3 + $0x678] sm:$0xff] }
 0x26c   :  { %5637 = vmatprep.subr.bf16.mxu1 %v6897_v19  ;;  %v2171_v19 = vld [vmem:[%s10404_s3 + $0x530] sm:$0xff] }
 0x26d   :  { %v6950_v43 = vcombine.low %v2167_v18, %v2171_v19 }
 0x26e   :  { %5474 = vmatpush1.bf16.msra.mxu0 %v6894_v28  ;;  %v6951_v28 = vcombine.high %v2167_v18, %v2171_v19  ;;  %v2216_v18 = vld [vmem:[%s10404_s3 + $0x698] sm:$0xff] }
 0x26f   :  { %5638 = vmatpush1.bf16.msra.mxu1 %v6896_v35  ;;  %5475 = vmatprep.subr.bf16.mxu0 %v6903_v37  ;;  %v6953_v35 = vcombine.high %v2168_v20, %v2172_v23  ;;  %v2175_v37 = vld [vmem:[%s10404_s3 + $0x550] sm:$0xff]  ;;  %v2220_v19 = vld [vmem:[%s10404_s3 + $0x6b8] sm:$0xff]  ;;  %v6992_v23 = vcombine.low %v2208_v10, %v2212_v39 }
 0x270   :  { %5639 = vmatprep.subr.bf16.mxu1 %v6905_v38  ;;  %v2179_v38 = vld [vmem:[%s10404_s3 + $0x570] sm:$0xff] }
 0x271   :  { %v6958_v49 = vcombine.low %v2175_v37, %v2179_v38 }
 0x272   :  { %5476 = vmatpush1.bf16.msra.mxu0 %v6902_v44  ;;  %v6959_v44 = vcombine.high %v2175_v37, %v2179_v38  ;;  %v2224_v37 = vld [vmem:[%s10404_s3 + $0x6d8] sm:$0xff] }
 0x273   :  { %5640 = vmatpush1.bf16.msra.mxu1 %v6904_v22  ;;  %5477 = vmatprep.subr.bf16.mxu0 %v6911_v45  ;;  %v6961_v22 = vcombine.high %v2176_v41, %v2180_v42  ;;  %v2183_v45 = vld [vmem:[%s10404_s3 + $0x590] sm:$0xff]  ;;  %v2228_v38 = vld [vmem:[%s10404_s3 + $0x6f8] sm:$0xff]  ;;  %v7000_v42 = vcombine.low %v2216_v18, %v2220_v19 }
 0x274   :  { %5641 = vmatprep.subr.bf16.mxu1 %v6913_v57  ;;  %v2187_v57 = vld [vmem:[%s10404_s3 + $0x5b0] sm:$0xff] }
 0x276   :  { %5478 = vmatpush1.bf16.msra.mxu0 %v6910_v50  ;;  %v6967_v50 = vcombine.high %v2183_v45, %v2187_v57 }
 0x277   :  { %5642 = vmatpush1.bf16.msra.mxu1 %v6912_v51  ;;  %5488 = vmatprep.subr.bf16.mxu0 %v6919_v55  ;;  %v6969_v51 = vcombine.high %v2184_v47, %v2188_v48  ;;  %v2191_v55 = vld [vmem:[%s10404_s3 + $0x5d0] sm:$0xff]  ;;  %v7008_v48 = vcombine.low %v2224_v37, %v2228_v38 }
 0x278   :  { %5652 = vmatprep.subr.bf16.mxu1 %v6921_v52  ;;  %v2195_v52 = vld [vmem:[%s10404_s3 + $0x5f0] sm:$0xff] }
 0x279   :  { %5480 = vmatmul.mubr.bf16.vlgmr.msra.gmra.mrb[12].mxu0 %v8777_v1  ;;  %v6975_v59 = vcombine.high %v2191_v55, %v2195_v52  ;;  %v6974_v3 = vcombine.low %v2191_v55, %v2195_v52  ;;  %v2240_v55 = vld [vmem:[%s10404_s3 + $0x758] sm:$0xff] }
 0x27a   :  { %5644 = vmatmul.mubr.bf16.vlgmr.msra.gmra.mrb[12].mxu1 %v8777_v1  ;;  %5489 = vmatpush1.bf16.msra.mxu0 %v6918_v58  ;;  %v2160_v1 = vld [vmem:[%s10404_s3 + $0x4d8] sm:$0xff]  ;;  %v6966_v58 = vcombine.low %v2183_v45, %v2187_v57 }
 0x27b   :  { %5520 = vmatprep.mubr.bf16.mxu0 %v8795_v8  ;;  %5653 = vmatpush1.bf16.msra.mxu1 %v6920_v60  ;;  %v6945_v53 = vcombine.high %v2160_v1, %v2164_v11  ;;  %v6944_v26 = vcombine.low %v2160_v1, %v2164_v11  ;;  %v6977_v60 = vcombine.high %v2192_v54, %v2196_v56  ;;  %v2232_v45 = vld [vmem:[%s10404_s3 + $0x718] sm:$0xff] }
 0x27c   :  { %5684 = vmatprep.mubr.bf16.mxu1 %v8795_v8  ;;  %5490 = vmatprep.subr.bf16.mxu0 %v6927_v61  ;;  %v6934_v8 = vcombine.low %v2151_v63, %v2155_v0  ;;  %v2199_v61 = vld [vmem:[%s10404_s3 + $0x610] sm:$0xff]  ;;  %v2200_v0 = vld [vmem:[%s10404_s3 + $0x618] sm:$0xff] }
 0x27d   :  { %5654 = vmatprep.subr.bf16.mxu1 %v6929_v2  ;;  %v2203_v63 = vld [vmem:[%s10404_s3 + $0x630] sm:$0xff]  ;;  %v2204_v2 = vld [vmem:[%s10404_s3 + $0x638] sm:$0xff] }
 0x27e   :  { %5491 = vmatpush1.bf16.msra.mxu0 %v6926_v5  ;;  %v6983_v5 = vcombine.high %v2199_v61, %v2203_v63  ;;  %v6982_v1 = vcombine.low %v2199_v61, %v2203_v63  ;;  %v6984_v11 = vcombine.low %v2200_v0, %v2204_v2  ;;  %v2236_v57 = vld [vmem:[%s10404_s3 + $0x738] sm:$0xff] }
 0x27f   :  { %5655 = vmatpush1.bf16.msra.mxu1 %v6928_v6  ;;  %5492 = vmatprep.subr.bf16.mxu0 %v6935_v7  ;;  %v6985_v6 = vcombine.high %v2200_v0, %v2204_v2  ;;  %v2207_v7 = vld [vmem:[%s10404_s3 + $0x650] sm:$0xff]  ;;  %v2244_v52 = vld [vmem:[%s10404_s3 + $0x778] sm:$0xff]  ;;  %v7016_v56 = vcombine.low %v2232_v45, %v2236_v57 }
 0x280   :  { %5656 = vmatprep.subr.bf16.mxu1 %v6937_v9  ;;  %v2211_v9 = vld [vmem:[%s10404_s3 + $0x670] sm:$0xff]  ;;  %v2248_v61 = vld [vmem:[%s10404_s3 + $0x798] sm:$0xff]  ;;  %v7024_v2 = vcombine.low %v2240_v55, %v2244_v52 }
 0x281   :  { %v6990_v20 = vcombine.low %v2207_v7, %v2211_v9  ;;  %v2252_v63 = vld [vmem:[%s10404_s3 + $0x7b8] sm:$0xff] }
 0x282   :  { %5493 = vmatpush1.bf16.msra.mxu0 %v6934_v8  ;;  %v6991_v8 = vcombine.high %v2207_v7, %v2211_v9  ;;  %v2256_v7 = vld [vmem:[%s10404_s3 + $0x7d8] sm:$0xff] }
 0x283   :  { %5657 = vmatpush1.bf16.msra.mxu1 %v6936_v13  ;;  %5494 = vmatprep.subr.bf16.mxu0 %v6943_v14  ;;  %v6993_v13 = vcombine.high %v2208_v10, %v2212_v39  ;;  %v2215_v14 = vld [vmem:[%s10404_s3 + $0x690] sm:$0xff]  ;;  %v2260_v9 = vld [vmem:[%s10404_s3 + $0x7f8] sm:$0xff]  ;;  %v7032_v39 = vcombine.low %v2248_v61, %v2252_v63 }
 0x284   :  { %5658 = vmatprep.subr.bf16.mxu1 %v6945_v53  ;;  %v2219_v53 = vld [vmem:[%s10404_s3 + $0x6b0] sm:$0xff] }
 0x285   :  { %v6998_v41 = vcombine.low %v2215_v14, %v2219_v53 }
 0x286   :  { %5495 = vmatpush1.bf16.msra.mxu0 %v6942_v24  ;;  %v6999_v24 = vcombine.high %v2215_v14, %v2219_v53  ;;  %v2264_v14 = vld [vmem:[%s10404_s3 + $0x818] sm:$0xff] }
 0x287   :  { %5659 = vmatpush1.bf16.msra.mxu1 %v6944_v26  ;;  %5496 = vmatprep.subr.bf16.mxu0 %v6951_v28  ;;  %v7001_v26 = vcombine.high %v2216_v18, %v2220_v19  ;;  %v2223_v28 = vld [vmem:[%s10404_s3 + $0x6d0] sm:$0xff]  ;;  %v2268_v53 = vld [vmem:[%s10404_s3 + $0x838] sm:$0xff]  ;;  %v7040_v19 = vcombine.low %v2256_v7, %v2260_v9 }
 0x288   :  { %5660 = vmatprep.subr.bf16.mxu1 %v6953_v35  ;;  %v2227_v35 = vld [vmem:[%s10404_s3 + $0x6f0] sm:$0xff] }
 0x289   :  { %v7006_v47 = vcombine.low %v2223_v28, %v2227_v35 }
 0x28a   :  { %5497 = vmatpush1.bf16.msra.mxu0 %v6950_v43  ;;  %v7007_v43 = vcombine.high %v2223_v28, %v2227_v35  ;;  %v2272_v35 = vld [vmem:[%s10404_s3 + $0x858] sm:$0xff] }
 0x28b   :  { %5661 = vmatpush1.bf16.msra.mxu1 %v6952_v62  ;;  %5498 = vmatprep.subr.bf16.mxu0 %v6959_v44  ;;  %v7009_v62 = vcombine.high %v2224_v37, %v2228_v38  ;;  %v2231_v44 = vld [vmem:[%s10404_s3 + $0x710] sm:$0xff]  ;;  %v2276_v37 = vld [vmem:[%s10404_s3 + $0x878] sm:$0xff]  ;;  %v7048_v38 = vcombine.low %v2264_v14, %v2268_v53 }
 0x28c   :  { %5662 = vmatprep.subr.bf16.mxu1 %v6961_v22  ;;  %v2235_v22 = vld [vmem:[%s10404_s3 + $0x730] sm:$0xff] }
 0x28d   :  { %v7014_v54 = vcombine.low %v2231_v44, %v2235_v22 }
 0x28e   :  { %5499 = vmatpush1.bf16.msra.mxu0 %v6958_v49  ;;  %v7015_v49 = vcombine.high %v2231_v44, %v2235_v22  ;;  %v7057_v44 = vcombine.high %v2272_v35, %v2276_v37  ;;  %v2284_v22 = vld [vmem:[%s10404_s3 + $0x8b8] sm:$0xff] }
 0x28f   :  { %5663 = vmatpush1.bf16.msra.mxu1 %v6960_v21  ;;  %5500 = vmatprep.subr.bf16.mxu0 %v6967_v50  ;;  %v7017_v21 = vcombine.high %v2232_v45, %v2236_v57  ;;  %v2239_v50 = vld [vmem:[%s10404_s3 + $0x750] sm:$0xff] }
 0x290   :  { %5664 = vmatprep.subr.bf16.mxu1 %v6969_v51  ;;  %v2243_v51 = vld [vmem:[%s10404_s3 + $0x770] sm:$0xff] }
 0x291   :  { %v7022_v0 = vcombine.low %v2239_v50, %v2243_v51  ;;  %v2287_v57 = vld [vmem:[%s10404_s3 + $0x8d0] sm:$0xff] }
 0x292   :  { %5501 = vmatpush1.bf16.msra.mxu0 %v6966_v58  ;;  %v7023_v58 = vcombine.high %v2239_v50, %v2243_v51  ;;  %v2292_v50 = vld [vmem:[%s10404_s3 + $0x8f8] sm:$0xff] }
 0x293   :  { %5665 = vmatpush1.bf16.msra.mxu1 %v6968_v31  ;;  %5502 = vmatprep.subr.bf16.mxu0 %v6975_v59  ;;  %v7025_v31 = vcombine.high %v2240_v55, %v2244_v52  ;;  %v2247_v59 = vld [vmem:[%s10404_s3 + $0x790] sm:$0xff] }
 0x294   :  { %5666 = vmatprep.subr.bf16.mxu1 %v6977_v60  ;;  %v2251_v60 = vld [vmem:[%s10404_s3 + $0x7b0] sm:$0xff] }
 0x295   :  { %v7030_v10 = vcombine.low %v2247_v59, %v2251_v60  ;;  %v2295_v55 = vld [vmem:[%s10404_s3 + $0x910] sm:$0xff] }
 0x296   :  { %5503 = vmatpush1.bf16.msra.mxu0 %v6974_v3  ;;  %v7031_v3 = vcombine.high %v2247_v59, %v2251_v60  ;;  %v2303_v60 = vld [vmem:[%s10404_s3 + $0x950] sm:$0xff] }
 0x297   :  { %5667 = vmatpush1.bf16.msra.mxu1 %v6976_v4  ;;  %5504 = vmatprep.subr.bf16.mxu0 %v6983_v5  ;;  %v7033_v4 = vcombine.high %v2248_v61, %v2252_v63  ;;  %v2255_v5 = vld [vmem:[%s10404_s3 + $0x7d0] sm:$0xff] }
 0x298   :  { %5668 = vmatprep.subr.bf16.mxu1 %v6985_v6  ;;  %v2259_v6 = vld [vmem:[%s10404_s3 + $0x7f0] sm:$0xff] }
 0x299   :  { %v7038_v18 = vcombine.low %v2255_v5, %v2259_v6 }
 0x29a   :  { %5505 = vmatpush1.bf16.msra.mxu0 %v6982_v1  ;;  %v7039_v1 = vcombine.high %v2255_v5, %v2259_v6  ;;  %v2311_v6 = vld [vmem:[%s10404_s3 + $0x990] sm:$0xff] }
 0x29b   :  { %5669 = vmatpush1.bf16.msra.mxu1 %v6984_v11  ;;  %5506 = vmatprep.subr.bf16.mxu0 %v6991_v8  ;;  %v7041_v11 = vcombine.high %v2256_v7, %v2260_v9  ;;  %v2263_v8 = vld [vmem:[%s10404_s3 + $0x810] sm:$0xff] }
 0x29c   :  { %5670 = vmatprep.subr.bf16.mxu1 %v6993_v13  ;;  %v2267_v13 = vld [vmem:[%s10404_s3 + $0x830] sm:$0xff] }
 0x29d   :  { %v7046_v28 = vcombine.low %v2263_v8, %v2267_v13 }
 0x29e   :  { %5507 = vmatpush1.bf16.msra.mxu0 %v6990_v20  ;;  %v7047_v20 = vcombine.high %v2263_v8, %v2267_v13  ;;  %v2319_v13 = vld [vmem:[%s10404_s3 + $0x9d0] sm:$0xff] }
 0x29f   :  { %5671 = vmatpush1.bf16.msra.mxu1 %v6992_v23  ;;  %5508 = vmatprep.subr.bf16.mxu0 %v6999_v24  ;;  %v7049_v23 = vcombine.high %v2264_v14, %v2268_v53  ;;  %v2271_v24 = vld [vmem:[%s10404_s3 + $0x850] sm:$0xff] }
 0x2a0   :  { %5672 = vmatprep.subr.bf16.mxu1 %v7001_v26  ;;  %v2275_v26 = vld [vmem:[%s10404_s3 + $0x870] sm:$0xff] }
 0x2a1   :  { %v7054_v45 = vcombine.low %v2271_v24, %v2275_v26 }
 0x2a2   :  { %5509 = vmatpush1.bf16.msra.mxu0 %v6998_v41  ;;  %v7055_v41 = vcombine.high %v2271_v24, %v2275_v26  ;;  %v2327_v26 = vld [vmem:[%s10404_s3 + $0xa10] sm:$0xff] }
 0x2a3   :  { %5673 = vmatpush1.bf16.msra.mxu1 %v7000_v42  ;;  %5510 = vmatprep.subr.bf16.mxu0 %v7007_v43  ;;  %v2279_v42 = vld [vmem:[%s10404_s3 + $0x890] sm:$0xff] }
 0x2a4   :  { %5674 = vmatprep.subr.bf16.mxu1 %v7009_v62  ;;  %v2283_v43 = vld [vmem:[%s10404_s3 + $0x8b0] sm:$0xff]  ;;  %v2280_v62 = vld [vmem:[%s10404_s3 + $0x898] sm:$0xff] }
 0x2a5   :  { %v7062_v51 = vcombine.low %v2279_v42, %v2283_v43 }
 0x2a6   :  { %5511 = vmatpush1.bf16.msra.mxu0 %v7006_v47  ;;  %v7056_v47 = vcombine.low %v2272_v35, %v2276_v37  ;;  %v2331_v37 = vld [vmem:[%s10404_s3 + $0xa30] sm:$0xff] }
 0x2a7   :  { %5675 = vmatpush1.bf16.msra.mxu1 %v7008_v48  ;;  %5512 = vmatprep.subr.bf16.mxu0 %v7015_v49  ;;  %v7063_v48 = vcombine.high %v2279_v42, %v2283_v43  ;;  %v2291_v49 = vld [vmem:[%s10404_s3 + $0x8f0] sm:$0xff]  ;;  %v2332_v42 = vld [vmem:[%s10404_s3 + $0xa38] sm:$0xff] }
 0x2a8   :  { %5676 = vmatprep.subr.bf16.mxu1 %v7017_v21  ;;  %v7065_v21 = vcombine.high %v2280_v62, %v2284_v22  ;;  %v7071_v52 = vcombine.high %v2287_v57, %v2291_v49  ;;  %v7070_v59 = vcombine.low %v2287_v57, %v2291_v49  ;;  %v7110_v49 = vcombine.low %v2327_v26, %v2331_v37 }
 0x2aa   :  { %5513 = vmatpush1.bf16.msra.mxu0 %v7014_v54  ;;  %v2299_v54 = vld [vmem:[%s10404_s3 + $0x930] sm:$0xff] }
 0x2ab   :  { %5677 = vmatpush1.bf16.msra.mxu1 %v7016_v56  ;;  %5514 = vmatprep.subr.bf16.mxu0 %v7023_v58  ;;  %v2296_v58 = vld [vmem:[%s10404_s3 + $0x918] sm:$0xff]  ;;  %v7079_v63 = vcombine.high %v2295_v55, %v2299_v54  ;;  %v7078_v5 = vcombine.low %v2295_v55, %v2299_v54 }
 0x2ac   :  { %5678 = vmatprep.subr.bf16.mxu1 %v7025_v31  ;;  %v2300_v31 = vld [vmem:[%s10404_s3 + $0x938] sm:$0xff] }
 0x2ad   :  { %v7080_v7 = vcombine.low %v2296_v58, %v2300_v31  ;;  %v2344_v55 = vld [vmem:[%s10404_s3 + $0xa98] sm:$0xff] }
 0x2ae   :  { %5515 = vmatpush1.bf16.msra.mxu0 %v7022_v0  ;;  %v2307_v0 = vld [vmem:[%s10404_s3 + $0x970] sm:$0xff] }
 0x2af   :  { %5679 = vmatpush1.bf16.msra.mxu1 %v7024_v2  ;;  %5516 = vmatprep.subr.bf16.mxu0 %v7031_v3  ;;  %v7081_v2 = vcombine.high %v2296_v58, %v2300_v31  ;;  %v2304_v3 = vld [vmem:[%s10404_s3 + $0x958] sm:$0xff]  ;;  %v7087_v9 = vcombine.high %v2303_v60, %v2307_v0  ;;  %v7086_v8 = vcombine.low %v2303_v60, %v2307_v0  ;;  %v2355_v58 = vld [vmem:[%s10404_s3 + $0xaf0] sm:$0xff] }
 0x2b0   :  { %5680 = vmatprep.subr.bf16.mxu1 %v7033_v4  ;;  %v2308_v4 = vld [vmem:[%s10404_s3 + $0x978] sm:$0xff] }
 0x2b1   :  { %v7088_v14 = vcombine.low %v2304_v3, %v2308_v4  ;;  %v2352_v60 = vld [vmem:[%s10404_s3 + $0xad8] sm:$0xff] }
 0x2b2   :  { %5517 = vmatpush1.bf16.msra.mxu0 %v7030_v10  ;;  %v2315_v10 = vld [vmem:[%s10404_s3 + $0x9b0] sm:$0xff] }
 0x2b3   :  { %5681 = vmatpush1.bf16.msra.mxu1 %v7032_v39  ;;  %5518 = vmatprep.subr.bf16.mxu0 %v7039_v1  ;;  %v7089_v39 = vcombine.high %v2304_v3, %v2308_v4  ;;  %v2312_v1 = vld [vmem:[%s10404_s3 + $0x998] sm:$0xff]  ;;  %v7095_v53 = vcombine.high %v2311_v6, %v2315_v10  ;;  %v7094_v24 = vcombine.low %v2311_v6, %v2315_v10  ;;  %v2363_v3 = vld [vmem:[%s10404_s3 + $0xb30] sm:$0xff] }
 0x2b4   :  { %5682 = vmatprep.subr.bf16.mxu1 %v7041_v11  ;;  %v2316_v11 = vld [vmem:[%s10404_s3 + $0x9b8] sm:$0xff] }
 0x2b5   :  { %v2360_v6 = vld [vmem:[%s10404_s3 + $0xb18] sm:$0xff] }
 0x2b6   :  { %5519 = vmatpush1.bf16.msra.mxu0 %v7038_v18  ;;  %v2323_v18 = vld [vmem:[%s10404_s3 + $0x9f0] sm:$0xff] }
 0x2b7   :  { %5683 = vmatpush1.bf16.msra.mxu1 %v7040_v19  ;;  %5529 = vmatprep.subr.bf16.mxu0 %v7047_v20  ;;  %v7097_v19 = vcombine.high %v2312_v1, %v2316_v11  ;;  %v2320_v20 = vld [vmem:[%s10404_s3 + $0x9d8] sm:$0xff]  ;;  %v7103_v35 = vcombine.high %v2319_v13, %v2323_v18  ;;  %v7102_v43 = vcombine.low %v2319_v13, %v2323_v18 }
 0x2b8   :  { %5693 = vmatprep.subr.bf16.mxu1 %v7049_v23  ;;  %v2324_v23 = vld [vmem:[%s10404_s3 + $0x9f8] sm:$0xff] }
 0x2b9   :  { %5521 = vmatmul.mubr.bf16.vlgmr.msra.gmra.mrb[12].mxu0 %v8984_v34  ;;  %v2368_v13 = vld [vmem:[%s10404_s3 + $0xb58] sm:$0xff] }
 0x2ba   :  { %5685 = vmatmul.mubr.bf16.vlgmr.msra.gmra.mrb[12].mxu1 %v8984_v34  ;;  %5530 = vmatpush1.bf16.msra.mxu0 %v7046_v28  ;;  %v2288_v34 = vld [vmem:[%s10404_s3 + $0x8d8] sm:$0xff]  ;;  %v7096_v28 = vcombine.low %v2312_v1, %v2316_v11  ;;  %v2371_v1 = vld [vmem:[%s10404_s3 + $0xb70] sm:$0xff] }
 0x2bb   :  { %5561 = vmatprep.mubr.bf16.mxu0 %v9194_v25  ;;  %5694 = vmatpush1.bf16.msra.mxu1 %v7048_v38  ;;  %v7073_v56 = vcombine.high %v2288_v34, %v2292_v50  ;;  %v7072_v61 = vcombine.low %v2288_v34, %v2292_v50  ;;  %v7105_v38 = vcombine.high %v2320_v20, %v2324_v23  ;;  %v2347_v34 = vld [vmem:[%s10404_s3 + $0xab0] sm:$0xff] }
 0x2bc   :  { %5725 = vmatprep.mubr.bf16.mxu1 %v9194_v25  ;;  %5531 = vmatprep.subr.bf16.mxu0 %v7055_v41  ;;  %v7064_v25 = vcombine.low %v2280_v62, %v2284_v22  ;;  %v2328_v41 = vld [vmem:[%s10404_s3 + $0xa18] sm:$0xff]  ;;  %v2335_v62 = vld [vmem:[%s10404_s3 + $0xa50] sm:$0xff]  ;;  %v7111_v22 = vcombine.high %v2327_v26, %v2331_v37 }
 0x2bd   :  { %5695 = vmatprep.subr.bf16.mxu1 %v7057_v44  ;;  %v7104_v44 = vcombine.low %v2320_v20, %v2324_v23  ;;  %v7113_v57 = vcombine.high %v2328_v41, %v2332_v42  ;;  %v7112_v50 = vcombine.low %v2328_v41, %v2332_v42  ;;  %v2379_v20 = vld [vmem:[%s10404_s3 + $0xbb0] sm:$0xff]  ;;  %v2376_v26 = vld [vmem:[%s10404_s3 + $0xb98] sm:$0xff] }
 0x2be   :  { %5532 = vmatpush1.bf16.msra.mxu0 %v7054_v45  ;;  %v2339_v45 = vld [vmem:[%s10404_s3 + $0xa70] sm:$0xff] }
 0x2bf   :  { %5696 = vmatpush1.bf16.msra.mxu1 %v7056_v47  ;;  %5533 = vmatprep.subr.bf16.mxu0 %v7063_v48  ;;  %v2336_v47 = vld [vmem:[%s10404_s3 + $0xa58] sm:$0xff]  ;;  %v7118_v54 = vcombine.low %v2335_v62, %v2339_v45  ;;  %v2387_v41 = vld [vmem:[%s10404_s3 + $0xbf0] sm:$0xff] }
 0x2c0   :  { %5697 = vmatprep.subr.bf16.mxu1 %v7065_v21  ;;  %v2340_v48 = vld [vmem:[%s10404_s3 + $0xa78] sm:$0xff]  ;;  %v2343_v21 = vld [vmem:[%s10404_s3 + $0xa90] sm:$0xff] }
 0x2c1   :  { %v7120_v31 = vcombine.low %v2336_v47, %v2340_v48  ;;  %v7126_v0 = vcombine.low %v2343_v21, %v2347_v34 }
 0x2c2   :  { %5534 = vmatpush1.bf16.msra.mxu0 %v7062_v51  ;;  %v7119_v51 = vcombine.high %v2335_v62, %v2339_v45  ;;  %v2384_v62 = vld [vmem:[%s10404_s3 + $0xbd8] sm:$0xff] }
 0x2c3   :  { %5698 = vmatpush1.bf16.msra.mxu1 %v7064_v25  ;;  %5535 = vmatprep.subr.bf16.mxu0 %v7071_v52  ;;  %v7121_v25 = vcombine.high %v2336_v47, %v2340_v48  ;;  %v2348_v52 = vld [vmem:[%s10404_s3 + $0xab8] sm:$0xff] }
 0x2c4   :  { %5699 = vmatprep.subr.bf16.mxu1 %v7073_v56  ;;  %v2351_v56 = vld [vmem:[%s10404_s3 + $0xad0] sm:$0xff]  ;;  %v7128_v4 = vcombine.low %v2344_v55, %v2348_v52 }
 0x2c5   :  { %v7134_v10 = vcombine.low %v2351_v56, %v2355_v58 }
 0x2c6   :  { %5536 = vmatpush1.bf16.msra.mxu0 %v7070_v59  ;;  %v7127_v59 = vcombine.high %v2343_v21, %v2347_v34  ;;  %v2395_v21 = vld [vmem:[%s10404_s3 + $0xc30] sm:$0xff]  ;;  %v2392_v34 = vld [vmem:[%s10404_s3 + $0xc18] sm:$0xff] }
 0x2c7   :  { %5700 = vmatpush1.bf16.msra.mxu1 %v7072_v61  ;;  %5537 = vmatprep.subr.bf16.mxu0 %v7079_v63  ;;  %v2356_v61 = vld [vmem:[%s10404_s3 + $0xaf8] sm:$0xff]  ;;  %v7129_v63 = vcombine.high %v2344_v55, %v2348_v52 }
 0x2c8   :  { %5701 = vmatprep.subr.bf16.mxu1 %v7081_v2  ;;  %v2359_v2 = vld [vmem:[%s10404_s3 + $0xb10] sm:$0xff]  ;;  %v7136_v11 = vcombine.low %v2352_v60, %v2356_v61 }
 0x2c9   :  { %v7142_v18 = vcombine.low %v2359_v2, %v2363_v3 }
 0x2ca   :  { %5538 = vmatpush1.bf16.msra.mxu0 %v7078_v5  ;;  %v7135_v5 = vcombine.high %v2351_v56, %v2355_v58  ;;  %v2403_v56 = vld [vmem:[%s10404_s3 + $0xc70] sm:$0xff] }
 0x2cb   :  { %5702 = vmatpush1.bf16.msra.mxu1 %v7080_v7  ;;  %5539 = vmatprep.subr.bf16.mxu0 %v7087_v9  ;;  %v2364_v7 = vld [vmem:[%s10404_s3 + $0xb38] sm:$0xff]  ;;  %v7137_v9 = vcombine.high %v2352_v60, %v2356_v61 }
 0x2cc   :  { %5703 = vmatprep.subr.bf16.mxu1 %v7089_v39  ;;  %v2367_v39 = vld [vmem:[%s10404_s3 + $0xb50] sm:$0xff]  ;;  %v7144_v23 = vcombine.low %v2360_v6, %v2364_v7 }
 0x2cd   :  { %v7150_v37 = vcombine.low %v2367_v39, %v2371_v1 }
 0x2ce   :  { %5540 = vmatpush1.bf16.msra.mxu0 %v7086_v8  ;;  %v7143_v8 = vcombine.high %v2359_v2, %v2363_v3  ;;  %v2408_v3 = vld [vmem:[%s10404_s3 + $0xc98] sm:$0xff] }
 0x2cf   :  { %5704 = vmatpush1.bf16.msra.mxu1 %v7088_v14  ;;  %5541 = vmatprep.subr.bf16.mxu0 %v7095_v53  ;;  %v2372_v14 = vld [vmem:[%s10404_s3 + $0xb78] sm:$0xff]  ;;  %v7145_v53 = vcombine.high %v2360_v6, %v2364_v7 }
 0x2d0   :  { %5705 = vmatprep.subr.bf16.mxu1 %v7097_v19  ;;  %v2375_v19 = vld [vmem:[%s10404_s3 + $0xb90] sm:$0xff]  ;;  %v7152_v42 = vcombine.low %v2368_v13, %v2372_v14 }
 0x2d1   :  { %v7158_v45 = vcombine.low %v2375_v19, %v2379_v20 }
 0x2d2   :  { %5542 = vmatpush1.bf16.msra.mxu0 %v7094_v24  ;;  %v7151_v24 = vcombine.high %v2367_v39, %v2371_v1  ;;  %v2419_v39 = vld [vmem:[%s10404_s3 + $0xcf0] sm:$0xff]  ;;  %v2420_v1 = vld [vmem:[%s10404_s3 + $0xcf8] sm:$0xff] }
 0x2d3   :  { %5706 = vmatpush1.bf16.msra.mxu1 %v7096_v28  ;;  %5543 = vmatprep.subr.bf16.mxu0 %v7103_v35  ;;  %v2380_v28 = vld [vmem:[%s10404_s3 + $0xbb8] sm:$0xff]  ;;  %v7153_v35 = vcombine.high %v2368_v13, %v2372_v14  ;;  %v2423_v14 = vld [vmem:[%s10404_s3 + $0xd10] sm:$0xff] }
 0x2d4   :  { %5707 = vmatprep.subr.bf16.mxu1 %v7105_v38  ;;  %v2383_v38 = vld [vmem:[%s10404_s3 + $0xbd0] sm:$0xff] }
 0x2d5   :  { %v7167_v47 = vcombine.high %v2383_v38, %v2387_v41 }
 0x2d6   :  { %5544 = vmatpush1.bf16.msra.mxu0 %v7102_v43  ;;  %v7159_v43 = vcombine.high %v2375_v19, %v2379_v20  ;;  %v2428_v19 = vld [vmem:[%s10404_s3 + $0xd38] sm:$0xff] }
 0x2d7   :  { %5708 = vmatpush1.bf16.msra.mxu1 %v7104_v44  ;;  %5545 = vmatprep.subr.bf16.mxu0 %v7111_v22  ;;  %v2388_v44 = vld [vmem:[%s10404_s3 + $0xbf8] sm:$0xff]  ;;  %v7161_v22 = vcombine.high %v2376_v26, %v2380_v28 }
 0x2d8   :  { %5709 = vmatprep.subr.bf16.mxu1 %v7113_v57  ;;  %v7160_v57 = vcombine.low %v2376_v26, %v2380_v28  ;;  %v7169_v48 = vcombine.high %v2384_v62, %v2388_v44  ;;  %v7168_v55 = vcombine.low %v2384_v62, %v2388_v44  ;;  %v2431_v28 = vld [vmem:[%s10404_s3 + $0xd50] sm:$0xff] }
 0x2d9   :  { %v2439_v44 = vld [vmem:[%s10404_s3 + $0xd90] sm:$0xff] }
 0x2da   :  { %5546 = vmatpush1.bf16.msra.mxu0 %v7110_v49  ;;  %v2391_v49 = vld [vmem:[%s10404_s3 + $0xc10] sm:$0xff] }
 0x2db   :  { %5710 = vmatpush1.bf16.msra.mxu1 %v7112_v50  ;;  %5547 = vmatprep.subr.bf16.mxu0 %v7119_v51  ;;  %v2396_v50 = vld [vmem:[%s10404_s3 + $0xc38] sm:$0xff]  ;;  %v7166_v51 = vcombine.low %v2383_v38, %v2387_v41  ;;  %v7174_v58 = vcombine.low %v2391_v49, %v2395_v21 }
 0x2dc   :  { %5711 = vmatprep.subr.bf16.mxu1 %v7121_v25  ;;  %v7175_v25 = vcombine.high %v2391_v49, %v2395_v21  ;;  %v7177_v52 = vcombine.high %v2392_v34, %v2396_v50  ;;  %v7176_v60 = vcombine.low %v2392_v34, %v2396_v50  ;;  %v2436_v38 = vld [vmem:[%s10404_s3 + $0xd78] sm:$0xff]  ;;  %v10062_v21 = vld [vmem:[%s10407_s4] sm:$0xff] }
 0x2de   :  { %5548 = vmatpush1.bf16.msra.mxu0 %v7118_v54  ;;  %v2399_v54 = vld [vmem:[%s10404_s3 + $0xc50] sm:$0xff] }
 0x2df   :  { %5712 = vmatpush1.bf16.msra.mxu1 %v7120_v31  ;;  %5549 = vmatprep.subr.bf16.mxu0 %v7127_v59  ;;  %v2400_v31 = vld [vmem:[%s10404_s3 + $0xc58] sm:$0xff]  ;;  %v7183_v61 = vcombine.high %v2399_v54, %v2403_v56 }
 0x2e0   :  { %5713 = vmatprep.subr.bf16.mxu1 %v7129_v63  ;;  %v2404_v59 = vld [vmem:[%s10404_s3 + $0xc78] sm:$0xff]  ;;  %v2407_v63 = vld [vmem:[%s10404_s3 + $0xc90] sm:$0xff] }
 0x2e1   :  { %v7185_v2 = vcombine.high %v2400_v31, %v2404_v59  ;;  %v7184_v6 = vcombine.low %v2400_v31, %v2404_v59 }
 0x2e2   :  { %5550 = vmatpush1.bf16.msra.mxu0 %v7126_v0  ;;  %v2411_v0 = vld [vmem:[%s10404_s3 + $0xcb0] sm:$0xff] }
 0x2e3   :  { %5714 = vmatpush1.bf16.msra.mxu1 %v7128_v4  ;;  %5551 = vmatprep.subr.bf16.mxu0 %v7135_v5  ;;  %v2412_v4 = vld [vmem:[%s10404_s3 + $0xcb8] sm:$0xff]  ;;  %v7182_v5 = vcombine.low %v2399_v54, %v2403_v56  ;;  %v7191_v7 = vcombine.high %v2407_v63, %v2411_v0 }
 0x2e4   :  { %5715 = vmatprep.subr.bf16.mxu1 %v7137_v9  ;;  %v7193_v9 = vcombine.high %v2408_v3, %v2412_v4  ;;  %v2448_v56 = vld [vmem:[%s10404_s3 + $0xdd8] sm:$0xff] }
 0x2e6   :  { %5552 = vmatpush1.bf16.msra.mxu0 %v7134_v10  ;;  %v2415_v10 = vld [vmem:[%s10404_s3 + $0xcd0] sm:$0xff] }
 0x2e7   :  { %5716 = vmatpush1.bf16.msra.mxu1 %v7136_v11  ;;  %5553 = vmatprep.subr.bf16.mxu0 %v7143_v8  ;;  %v7192_v11 = vcombine.low %v2408_v3, %v2412_v4  ;;  %v7199_v8 = vcombine.high %v2415_v10, %v2419_v39  ;;  %v7198_v20 = vcombine.low %v2415_v10, %v2419_v39 }
 0x2e8   :  { %5717 = vmatprep.subr.bf16.mxu1 %v7145_v53  ;;  %v2427_v53 = vld [vmem:[%s10404_s3 + $0xd30] sm:$0xff]  ;;  %v2534_v4 = vrot.slane %v10062_v21, %v301_v33 }
 0x2e9   :  { %v7206_v41 = vcombine.low %v2423_v14, %v2427_v53 }
 0x2ea   :  { %5554 = vmatpush1.bf16.msra.mxu0 %v7142_v18  ;;  %v2424_v18 = vld [vmem:[%s10404_s3 + $0xd18] sm:$0xff] }
 0x2eb   :  { %5718 = vmatpush1.bf16.msra.mxu1 %v7144_v23  ;;  %5555 = vmatprep.subr.bf16.mxu0 %v7151_v24  ;;  %v7207_v24 = vcombine.high %v2423_v14, %v2427_v53  ;;  %v7209_v26 = vcombine.high %v2424_v18, %v2428_v19  ;;  %v2468_v14 = vld [vmem:[%s10404_s3 + $0xe78] sm:$0xff] }
 0x2ec   :  { %5719 = vmatprep.subr.bf16.mxu1 %v7153_v35  ;;  %v2435_v35 = vld [vmem:[%s10404_s3 + $0xd70] sm:$0xff] }
 0x2ee   :  { %5556 = vmatpush1.bf16.msra.mxu0 %v7150_v37  ;;  %v2432_v37 = vld [vmem:[%s10404_s3 + $0xd58] sm:$0xff] }
 0x2ef   :  { %5720 = vmatpush1.bf16.msra.mxu1 %v7152_v42  ;;  %5557 = vmatprep.subr.bf16.mxu0 %v7159_v43  ;;  %v7208_v42 = vcombine.low %v2424_v18, %v2428_v19  ;;  %v7215_v43 = vcombine.high %v2431_v28, %v2435_v35  ;;  %v7217_v62 = vcombine.high %v2432_v37, %v2436_v38 }
 0x2f0   :  { %5721 = vmatprep.subr.bf16.mxu1 %v7161_v22  ;;  %v2443_v22 = vld [vmem:[%s10404_s3 + $0xdb0] sm:$0xff] }
 0x2f1   :  { %v7223_v49 = vcombine.high %v2439_v44, %v2443_v22 }
 0x2f2   :  { %5558 = vmatpush1.bf16.msra.mxu0 %v7158_v45  ;;  %v2440_v45 = vld [vmem:[%s10404_s3 + $0xd98] sm:$0xff] }
 0x2f3   :  { %5722 = vmatpush1.bf16.msra.mxu1 %v7160_v57  ;;  %5559 = vmatprep.subr.bf16.mxu0 %v7167_v47  ;;  %v2444_v57 = vld [vmem:[%s10404_s3 + $0xdb8] sm:$0xff]  ;;  %v7214_v47 = vcombine.low %v2431_v28, %v2435_v35  ;;  %v2475_v28 = vld [vmem:[%s10404_s3 + $0xeb0] sm:$0xff] }
 0x2f4   :  { %5723 = vmatprep.subr.bf16.mxu1 %v7169_v48  ;;  %v7216_v48 = vcombine.low %v2432_v37, %v2436_v38  ;;  %v2472_v35 = vld [vmem:[%s10404_s3 + $0xe98] sm:$0xff] }
 0x2f5   :  { %v2476_v37 = vld [vmem:[%s10404_s3 + $0xeb8] sm:$0xff] }
 0x2f6   :  { %5560 = vmatpush1.bf16.msra.mxu0 %v7166_v51  ;;  %v7225_v51 = vcombine.high %v2440_v45, %v2444_v57 }
 0x2f7   :  { %5724 = vmatpush1.bf16.msra.mxu1 %v7168_v55  ;;  %5570 = vmatprep.subr.bf16.mxu0 %v7175_v25  ;;  %v2447_v55 = vld [vmem:[%s10404_s3 + $0xdd0] sm:$0xff] }
 0x2f8   :  { %5734 = vmatprep.subr.bf16.mxu1 %v7177_v52  ;;  %v2451_v25 = vld [vmem:[%s10404_s3 + $0xdf0] sm:$0xff] }
 0x2f9   :  { %5562 = vmatmul.mubr.bf16.vlgmr.msra.gmra.mrb[12].mxu0 %v9196_v15  ;;  %v7231_v3 = vcombine.high %v2447_v55, %v2451_v25  ;;  %v7230_v33 = vcombine.low %v2447_v55, %v2451_v25  ;;  %v2491_v55 = vld [vmem:[%s10404_s3 + $0xf30] sm:$0xff]  ;;  %v2488_v25 = vld [vmem:[%s10404_s3 + $0xf18] sm:$0xff] }
 0x2fa   :  { %5726 = vmatmul.mubr.bf16.vlgmr.msra.gmra.mrb[12].mxu1 %v9196_v15  ;;  %5571 = vmatpush1.bf16.msra.mxu0 %v7174_v58  ;;  %v2416_v15 = vld [vmem:[%s10404_s3 + $0xcd8] sm:$0xff] }
 0x2fb   :  { %5602 = vmatprep.mubr.bf16.mxu0 %v9214_v12  ;;  %5735 = vmatpush1.bf16.msra.mxu1 %v7176_v60  ;;  %v7201_v13 = vcombine.high %v2416_v15, %v2420_v1  ;;  %v7200_v23 = vcombine.low %v2416_v15, %v2420_v1  ;;  %v2452_v58 = vld [vmem:[%s10404_s3 + $0xdf8] sm:$0xff]  ;;  %v7222_v60 = vcombine.low %v2439_v44, %v2443_v22  ;;  %v2483_v44 = vld [vmem:[%s10404_s3 + $0xef0] sm:$0xff] }
 0x2fc   :  { %5766 = vmatprep.mubr.bf16.mxu1 %v9214_v12  ;;  %5572 = vmatprep.subr.bf16.mxu0 %v7183_v61  ;;  %v7190_v12 = vcombine.low %v2407_v63, %v2411_v0  ;;  %v2526_v61 = vrot.slane %v10062_v21, %v293_v32  ;;  %v2459_v32 = vld [vmem:[%s10404_s3 + $0xe30] sm:$0xff]  ;;  %v7232_v39 = vcombine.low %v2448_v56, %v2452_v58  ;;  %v2480_v22 = vld [vmem:[%s10404_s3 + $0xed8] sm:$0xff] }
 0x2fd   :  { %5736 = vmatprep.subr.bf16.mxu1 %v7185_v2  ;;  %v7224_v2 = vcombine.low %v2440_v45, %v2444_v57  ;;  %v2484_v45 = vld [vmem:[%s10404_s3 + $0xef8] sm:$0xff] }
 0x2fe   :  { %5573 = vmatpush1.bf16.msra.mxu0 %v7182_v5  ;;  %v7233_v5 = vcombine.high %v2448_v56, %v2452_v58  ;;  %v7264_v56 = vcombine.low %v2480_v22, %v2484_v45 }
 0x2ff   :  { %5737 = vmatpush1.bf16.msra.mxu1 %v7184_v6  ;;  %5574 = vmatprep.subr.bf16.mxu0 %v7191_v7  ;;  %v2455_v6 = vld [vmem:[%s10404_s3 + $0xe10] sm:$0xff]  ;;  %v2456_v7 = vld [vmem:[%s10404_s3 + $0xe18] sm:$0xff] }
 0x300   :  { %5738 = vmatprep.subr.bf16.mxu1 %v7193_v9  ;;  %v2460_v9 = vld [vmem:[%s10404_s3 + $0xe38] sm:$0xff]  ;;  %v7239_v15 = vcombine.high %v2455_v6, %v2459_v32  ;;  %v7238_v53 = vcombine.low %v2455_v6, %v2459_v32 }
 0x301   :  { %v7240_v19 = vcombine.low %v2456_v7, %v2460_v9 }
 0x302   :  { %5575 = vmatpush1.bf16.msra.mxu0 %v7190_v12  ;;  %v7241_v12 = vcombine.high %v2456_v7, %v2460_v9  ;;  %v2503_v7 = vld [vmem:[%s10404_s3 + $0xf90] sm:$0xff] }
 0x303   :  { %5739 = vmatpush1.bf16.msra.mxu1 %v7192_v11  ;;  %5576 = vmatprep.subr.bf16.mxu0 %v7199_v8  ;;  %v2463_v11 = vld [vmem:[%s10404_s3 + $0xe50] sm:$0xff] }
 0x304   :  { %5740 = vmatprep.subr.bf16.mxu1 %v7201_v13  ;;  %v2467_v8 = vld [vmem:[%s10404_s3 + $0xe70] sm:$0xff]  ;;  %v2464_v13 = vld [vmem:[%s10404_s3 + $0xe58] sm:$0xff] }
 0x305   :  { %v7246_v38 = vcombine.low %v2463_v11, %v2467_v8  ;;  %v2507_v9 = vld [vmem:[%s10404_s3 + $0xfb0] sm:$0xff] }
 0x306   :  { %5577 = vmatpush1.bf16.msra.mxu0 %v7198_v20  ;;  %v7247_v20 = vcombine.high %v2463_v11, %v2467_v8  ;;  %v2511_v8 = vld [vmem:[%s10404_s3 + $0xfd0] sm:$0xff] }
 0x307   :  { %5741 = vmatpush1.bf16.msra.mxu1 %v7200_v23  ;;  %5578 = vmatprep.subr.bf16.mxu0 %v7207_v24  ;;  %v7249_v24 = vcombine.high %v2464_v13, %v2468_v14 }
 0x308   :  { %5742 = vmatprep.subr.bf16.mxu1 %v7209_v26  ;;  %v2471_v26 = vld [vmem:[%s10404_s3 + $0xe90] sm:$0xff] }
 0x309   :  { %v7254_v57 = vcombine.low %v2471_v26, %v2475_v28 }
 0x30a   :  { %5579 = vmatpush1.bf16.msra.mxu0 %v7206_v41  ;;  %v7248_v41 = vcombine.low %v2464_v13, %v2468_v14  ;;  %v2515_v13 = vld [vmem:[%s10404_s3 + $0xff0] sm:$0xff]  ;;  %v2522_v14 = vrot.slane %v10062_v21, %v289_v30 }
 0x30b   :  { %5743 = vmatpush1.bf16.msra.mxu1 %v7208_v42  ;;  %5580 = vmatprep.subr.bf16.mxu0 %v7215_v43  ;;  %v7255_v42 = vcombine.high %v2471_v26, %v2475_v28  ;;  %v7257_v43 = vcombine.high %v2472_v35, %v2476_v37 }
 0x30c   :  { %v10064_v34 = vpop.f32.mrb[8].mxu0  ;;  %v10066_v50 = vpop.f32.mrb[8].mxu1  ;;  %5744 = vmatprep.subr.bf16.mxu1 %v7217_v62  ;;  %v2479_v62 = vld [vmem:[%s10404_s3 + $0xed0] sm:$0xff] }
 0x30d   :  { %v5278_v52 = vpop.f32.mrb[9].mxu0  ;;  %v5442_v54 = vpop.f32.mrb[9].mxu1  ;;  %v7467_v26 = vadd.f32 %v10064_v34, %v2522_v14  ;;  %v7545_v34 = vld [vmem:[%s10406_s5] sm:$0xff]  }
 0x30e   :  { %v5280_v31 = vpop.f32.mrb[10].mxu0  ;;  %v5444_v59 = vpop.f32.mrb[10].mxu1  ;;  %5581 = vmatpush1.bf16.msra.mxu0 %v7214_v47  ;;  %v7468_v10 = vadd.f32 %v5278_v52, %v2526_v61  ;;  %v7470_v1 = vadd.f32 %v5442_v54, %v2534_v4  ;;  %v7256_v47 = vcombine.low %v2472_v35, %v2476_v37  ;;  %v2492_v52 = vld [vmem:[%s10404_s3 + $0xf38] sm:$0xff]  ;;  %v7262_v54 = vcombine.low %v2479_v62, %v2483_v44  ;;  %v7575_v14 = vld [vmem:[%s10406_s5 + $0x140] sm:$0xff]  }
 0x30f   :  { %5745 = vmatpush1.bf16.msra.mxu1 %v7216_v48  ;;  %v5281_v63 = vpop.f32.mrb[11].mxu0  ;;  %v5445_v0 = vpop.f32.mrb[11].mxu1  ;;  %5582 = vmatprep.subr.bf16.mxu0 %v7223_v49  ;;  %v7263_v48 = vcombine.high %v2479_v62, %v2483_v44  ;;  %v7265_v49 = vcombine.high %v2480_v22, %v2484_v45  ;;  %v7273_v31 = vcombine.high %v2488_v25, %v2492_v52  ;;  %v2495_v59 = vld [vmem:[%s10404_s3 + $0xf50] sm:$0xff]  ;;  %v7546_v62 = vld [vmem:[%s10406_s5 + $0x80] sm:$0xff]   ;;  %v7547_v44 = vld [vmem:[%s10406_s5 + $0x48] sm:$0xff]  }
 0x310   :  { %5746 = vmatprep.subr.bf16.mxu1 %v7225_v51  ;;  %v7299_v18 = vmul.f32 -1.442695, %v7468_v10  ;;  %v7301_v23 = vmul.f32 -1.442695, %v7470_v1  ;;  %v2487_v51 = vld [vmem:[%s10404_s3 + $0xf10] sm:$0xff]  ;;  %v2496_v63 = vld [vmem:[%s10404_s3 + $0xf58] sm:$0xff]  ;;  %v7272_v4 = vcombine.low %v2488_v25, %v2492_v52  ;;  %v7294_v35 = vcombine.low %v2511_v8, %v2515_v13 }
 0x311   :  { %v7271_v58 = vcombine.high %v2487_v51, %v2491_v55  ;;  %v2500_v0 = vld [vmem:[%s10404_s3 + $0xf78] sm:$0xff]  ;;  %v7548_v45 = vld [vmem:[%s10406_s5 + $0xc8] sm:$0xff]  }
 0x312   :  { %5583 = vmatpush1.bf16.msra.mxu0 %v7222_v60  ;;  %7639 = vpow2.f32 %v7299_v18  ;;  %v2499_v60 = vld [vmem:[%s10404_s3 + $0xf70] sm:$0xff]  ;;  %v7281_v32 = vcombine.high %v2496_v63, %v2500_v0  ;;  %v2504_v10 = vld [vmem:[%s10404_s3 + $0xf98] sm:$0xff]  ;;  %v7280_v1 = vcombine.low %v2496_v63, %v2500_v0  ;;  %v7561_v63 = vld [vmem:[%s10406_s5 + $0x20] sm:$0xff]  }
 0x313   :  { %5747 = vmatpush1.bf16.msra.mxu1 %v7224_v2  ;;  %5584 = vmatprep.subr.bf16.mxu0 %v7231_v3  ;;  %7641 = vpow2.f32 %v7301_v23  ;;  %v7270_v3 = vcombine.low %v2487_v51, %v2491_v55  ;;  %v2516_v18 = vld [vmem:[%s10404_s3 + $0xff8] sm:$0xff]  ;;  %v7553_v51 = vld [vmem:[%s10406_s5 + $0x10] sm:$0xff]  }
 0x314   :  { %5748 = vmatprep.subr.bf16.mxu1 %v7233_v5  ;;  %v7279_v5 = vcombine.high %v2495_v59, %v2499_v60  ;;  %v7554_v55 = vld [vmem:[%s10406_s5 + $0x90] sm:$0xff]   ;;  %v7555_v25 = vld [vmem:[%s10406_s5 + $0x58] sm:$0xff]  }
 0x315   :  { %v7556_v52 = vld [vmem:[%s10406_s5 + $0xd8] sm:$0xff]  }
 0x316   :  { %5585 = vmatpush1.bf16.msra.mxu0 %v7230_v33 }
 0x317   :  { %5749 = vmatpush1.bf16.msra.mxu1 %v7232_v39  ;;  %5586 = vmatprep.subr.bf16.mxu0 %v7239_v15  ;;  %v2508_v39 = vld [vmem:[%s10404_s3 + $0xfb8] sm:$0xff]  ;;  %v7278_v15 = vcombine.low %v2495_v59, %v2499_v60  ;;  %v7560_v60 = vld [vmem:[%s10406_s5 + $0xe0] sm:$0xff]  }
 0x318   :  { %5750 = vmatprep.subr.bf16.mxu1 %v7241_v12  ;;  %v7287_v12 = vcombine.high %v2503_v7, %v2507_v9  ;;  %v7289_v11 = vcombine.high %v2504_v10, %v2508_v39  ;;  %v7288_v23 = vcombine.low %v2504_v10, %v2508_v39  ;;  %v7571_v10 = vld [vmem:[%s10406_s5 + $0x78] sm:$0xff]  }
 0x319   :  { %v7572_v39 = vld [vmem:[%s10406_s5 + $0xf8] sm:$0xff]  }
 0x31a   :  { %5587 = vmatpush1.bf16.msra.mxu0 %v7238_v53  ;;  %v2512_v53 = vld [vmem:[%s10404_s3 + $0xfd8] sm:$0xff] }
 0x31b   :  { %5751 = vmatpush1.bf16.msra.mxu1 %v7240_v19  ;;  %5588 = vmatprep.subr.bf16.mxu0 %v7247_v20  ;;  %v2530_v19 = vrot.slane %v10062_v21, %v297_v46  ;;  %v7286_v20 = vcombine.low %v2503_v7, %v2507_v9  ;;  %v7297_v30 = vcombine.high %v2512_v53, %v2516_v18  ;;  %v7543_v46 = vld [vmem:[%s10406_s5 + $0x40] sm:$0xff]   ;;  %v7568_v7 = vld [vmem:[%s10406_s5 + $0xf0] sm:$0xff]  }
 0x31c   :  { %5752 = vmatprep.subr.bf16.mxu1 %v7249_v24  ;;  %v7640_v61 = vpop.eup %7639  ;;  %v7295_v24 = vcombine.high %v2511_v8, %v2515_v13  ;;  %v7296_v37 = vcombine.low %v2512_v53, %v2516_v18  ;;  %v7569_v9 = vld [vmem:[%s10406_s5 + $0x30] sm:$0xff]   ;;  %v7576_v53 = vld [vmem:[%s10406_s5 + $0x1c0] sm:$0xff]  }
 0x31d   :  { %v7642_v2 = vpop.eup %7641  ;;  %v5800_v6 = vadd.f32 1.0, %v7640_v61  ;;  %v7469_v28 = vadd.f32 %v10066_v50, %v2530_v19  ;;  %v7577_v18 = vld [vmem:[%s10406_s5 + $0x100] sm:$0xff]  }
 0x31e   :  { %5589 = vmatpush1.bf16.msra.mxu0 %v7246_v38  ;;  %v5802_v33 = vadd.f32 1.0, %v7642_v2  ;;  %v7544_v38 = vld [vmem:[%s10406_s5 + $0xc0] sm:$0xff]  }
 0x31f   :  { %5753 = vmatpush1.bf16.msra.mxu1 %v7248_v41  ;;  %5590 = vmatprep.subr.bf16.mxu0 %v7255_v42  ;;  %7643 = vrcp.f32 %v5800_v6  ;;  %v7298_v41 = vmul.f32 -1.442695, %v7467_v26  ;;  %v7562_v2 = vld [vmem:[%s10406_s5 + $0xa0] sm:$0xff]   ;;  %v7566_v6 = vld [vmem:[%s10406_s5 + $0xa8] sm:$0xff]   ;;  %v7583_v26 = vld [vmem:[%s10406_s5 + $0x150] sm:$0xff]  }
 0x320   :  { %5754 = vmatprep.subr.bf16.mxu1 %v7257_v43  ;;  %7645 = vrcp.f32 %v5802_v33  ;;  %v7300_v43 = vmul.f32 -1.442695, %v7469_v28  ;;  %v7570_v33 = vld [vmem:[%s10406_s5 + $0xb0] sm:$0xff]   ;;  %v7578_v19 = vld [vmem:[%s10406_s5 + $0x180] sm:$0xff]  }
 0x321   :  { %7647 = vpow2.f32 %v7298_v41  ;;  %v7584_v28 = vld [vmem:[%s10406_s5 + $0x1d0] sm:$0xff]   ;;  %v7589_v41 = vld [vmem:[%s10406_s5 + $0x118] sm:$0xff]  }
 0x322   :  { %5591 = vmatpush1.bf16.msra.mxu0 %v7254_v57  ;;  %7649 = vpow2.f32 %v7300_v43  ;;  %v7591_v43 = vld [vmem:[%s10406_s5 + $0x160] sm:$0xff]  }
 0x323   :  { %5755 = vmatpush1.bf16.msra.mxu1 %v7256_v47  ;;  %5592 = vmatprep.subr.bf16.mxu0 %v7263_v48  ;;  %v7549_v47 = vld [vmem:[%s10406_s5 + $0x8] sm:$0xff]  }
 0x324   :  { %5756 = vmatprep.subr.bf16.mxu1 %v7265_v49  ;;  %v7550_v48 = vld [vmem:[%s10406_s5 + $0x88] sm:$0xff]   ;;  %v7551_v49 = vld [vmem:[%s10406_s5 + $0x50] sm:$0xff]  }
 0x326   :  { %5593 = vmatpush1.bf16.msra.mxu0 %v7262_v54  ;;  %v7557_v54 = vld [vmem:[%s10406_s5 + $0x18] sm:$0xff]  }
 0x327   :  { %5757 = vmatpush1.bf16.msra.mxu1 %v7264_v56  ;;  %5594 = vmatprep.subr.bf16.mxu0 %v7271_v58  ;;  %v7558_v58 = vld [vmem:[%s10406_s5 + $0x98] sm:$0xff]  }
 0x328   :  { %5758 = vmatprep.subr.bf16.mxu1 %v7273_v31  ;;  %v7559_v31 = vld [vmem:[%s10406_s5 + $0x60] sm:$0xff]  }
 0x329   :  { %v7644_v42 = vpop.eup %7643 }
 0x32a   :  { %5595 = vmatpush1.bf16.msra.mxu0 %v7270_v3  ;;  %v7646_v50 = vpop.eup %7645  ;;  %v5824_v22 = vpack.c.bf16 %v7644_v42, %v7644_v42  ;;  %v7563_v3 = vld [vmem:[%s10406_s5 + $0x68] sm:$0xff]   ;;  %v7590_v42 = vld [vmem:[%s10406_s5 + $0x198] sm:$0xff]  }
 0x32b   :  { %5759 = vmatpush1.bf16.msra.mxu1 %v7272_v4  ;;  %5596 = vmatprep.subr.bf16.mxu0 %v7279_v5  ;;  %v5826_v57 = vpack.c.bf16 %v7646_v50, %v7646_v50  ;;  %v7648_v56 = vpop.eup %7647  ;;  %v7564_v4 = vld [vmem:[%s10406_s5 + $0xe8] sm:$0xff]   ;;  %v7593_v50 = vld [vmem:[%s10406_s5 + $0x120] sm:$0xff]  }
 0x32c   :  { %5760 = vmatprep.subr.bf16.mxu1 %v7281_v32  ;;  %v7650_v59 = vpop.eup %7649  ;;  %v5799_v61 = vadd.f32 1.0, %v7648_v56  ;;  %v7565_v5 = vld [vmem:[%s10406_s5 + $0x28] sm:$0xff]   ;;  %v7567_v32 = vld [vmem:[%s10406_s5 + $0x70] sm:$0xff]   ;;  %v2546_v56 = vrot.slane %v10062_v21, %v313_v16 }
 0x32d   :  { %v5801_v0 = vadd.f32 1.0, %v7650_v59 }
 0x32e   :  { %5597 = vmatpush1.bf16.msra.mxu0 %v7278_v15  ;;  %7651 = vrcp.f32 %v5799_v61  ;;  %v7573_v15 = vld [vmem:[%s10406_s5 + $0x38] sm:$0xff]  }
 0x32f   :  { %5761 = vmatpush1.bf16.msra.mxu1 %v7280_v1  ;;  %5598 = vmatprep.subr.bf16.mxu0 %v7287_v12  ;;  %7653 = vrcp.f32 %v5801_v0  ;;  %v7574_v1 = vld [vmem:[%s10406_s5 + $0xb8] sm:$0xff]  }
 0x330   :  { %5762 = vmatprep.subr.bf16.mxu1 %v7289_v11 }
 0x332   :  { %5599 = vmatpush1.bf16.msra.mxu0 %v7286_v20  ;;  %v7579_v20 = vld [vmem:[%s10406_s5 + $0x148] sm:$0xff]  }
 0x333   :  { %5763 = vmatpush1.bf16.msra.mxu1 %v7288_v23  ;;  %5600 = vmatprep.subr.bf16.mxu0 %v7295_v24  ;;  %v7580_v23 = vld [vmem:[%s10406_s5 + $0x1c8] sm:$0xff]  }
 0x334   :  { %5764 = vmatprep.subr.bf16.mxu1 %v7297_v30  ;;  %v7581_v24 = vld [vmem:[%s10406_s5 + $0x108] sm:$0xff]  }
 0x335   :  { %v7582_v30 = vld [vmem:[%s10406_s5 + $0x188] sm:$0xff]  }
 0x336   :  { %5601 = vmatpush1.bf16.msra.mxu0 %v7294_v35  ;;  %v7585_v35 = vld [vmem:[%s10406_s5 + $0x110] sm:$0xff]  }
 0x337   :  { %5765 = vmatpush1.bf16.msra.mxu1 %v7296_v37  ;;  %7371 = vmatprep.subr.bf16.mxu0 %v7543_v46  ;;  %v7586_v37 = vld [vmem:[%s10406_s5 + $0x190] sm:$0xff]   ;;  %v7587_v46 = vld [vmem:[%s10406_s5 + $0x158] sm:$0xff]  }
 0x338   :  { %7393 = vmatprep.subr.bf16.mxu1 %v7544_v38  ;;  %v7652_v12 = vpop.eup %7651  ;;  %v7588_v38 = vld [vmem:[%s10406_s5 + $0x1d8] sm:$0xff]  }
 0x339   :  { %5603 = vmatmul.mubr.bf16.vlgmr.msra.gmra.mrb[12].mxu0 %v9405_v17  ;;  %v7654_v11 = vpop.eup %7653  ;;  %v5823_v8 = vpack.c.bf16 %v7652_v12, %v7652_v12 }
 0x33a   :  { %5767 = vmatmul.mubr.bf16.vlgmr.msra.gmra.mrb[12].mxu1 %v9405_v17  ;;  %7372 = vmatpush3.bf16.msra.mxu0 %v7545_v34  ;;  %v7552_v17 = vld [vmem:[%s10406_s5 + $0xd0] sm:$0xff]   ;;  %v5825_v13 = vpack.c.bf16 %v7654_v11, %v7654_v11  ;;  %v7592_v34 = vld [vmem:[%s10406_s5 + $0x1e0] sm:$0xff]  }
 0x33b   :  { %6382 = vmatprep.mubr.bf16.mxu0 %v5824_v22  ;;  %7394 = vmatpush3.bf16.msra.mxu1 %v7546_v62  ;;  %v7594_v62 = vld [vmem:[%s10406_s5 + $0x1a0] sm:$0xff]   ;;  %v7596_v22 = vld [vmem:[%s10406_s5 + $0x1e8] sm:$0xff]  }
 0x33c   :  { %6422 = vmatprep.mubr.bf16.mxu1 %v5826_v57  ;;  %7373 = vmatprep.subr.bf16.mxu0 %v7547_v44  ;;  %v7595_v44 = vld [vmem:[%s10406_s5 + $0x168] sm:$0xff]  }
 0x33d   :  { %7395 = vmatprep.subr.bf16.mxu1 %v7548_v45  ;;  %v7597_v45 = vld [vmem:[%s10406_s5 + $0x128] sm:$0xff]  }
 0x33e   :  { %7374 = vmatpush3.bf16.msra.mxu0 %v7549_v47  ;;  %v7598_v57 = vld [vmem:[%s10406_s5 + $0x1a8] sm:$0xff]   ;;  %v7599_v47 = vld [vmem:[%s10406_s5 + $0x170] sm:$0xff]  }
 0x33f   :  { %7396 = vmatpush3.bf16.msra.mxu1 %v7550_v48  ;;  %7375 = vmatprep.subr.bf16.mxu0 %v7551_v49  ;;  %v7600_v48 = vld [vmem:[%s10406_s5 + $0x1f0] sm:$0xff]  }
 0x340   :  { %7397 = vmatprep.subr.bf16.mxu1 %v7552_v17  ;;  %v7601_v49 = vld [vmem:[%s10406_s5 + $0x130] sm:$0xff]  }
 0x341   :  { %v7602_v17 = vld [vmem:[%s10406_s5 + $0x1b0] sm:$0xff]  }
 0x342   :  { %7376 = vmatpush3.bf16.msra.mxu0 %v7553_v51  ;;  %v7603_v51 = vld [vmem:[%s10406_s5 + $0x178] sm:$0xff]  }
 0x343   :  { %7398 = vmatpush3.bf16.msra.mxu1 %v7554_v55  ;;  %7377 = vmatprep.subr.bf16.mxu0 %v7555_v25  ;;  %v7604_v55 = vld [vmem:[%s10406_s5 + $0x1f8] sm:$0xff]  }
 0x344   :  { %7399 = vmatprep.subr.bf16.mxu1 %v7556_v52  ;;  %v7605_v25 = vld [vmem:[%s10406_s5 + $0x138] sm:$0xff]  }
 0x345   :  { %v7606_v52 = vld [vmem:[%s10406_s5 + $0x1b8] sm:$0xff]  }
 0x346   :  { %7378 = vmatpush3.bf16.msra.mxu0 %v7557_v54  ;;  %v2538_v54 = vrot.slane %v10062_v21, %v305_v27 }
 0x347   :  { %7400 = vmatpush3.bf16.msra.mxu1 %v7558_v58  ;;  %7379 = vmatprep.subr.bf16.mxu0 %v7559_v31  ;;  %v2542_v58 = vrot.slane %v10062_v21, %v309_v36  ;;  %v2550_v31 = vrot.slane %v10062_v21, %v317_v40 }
 0x348   :  { %7401 = vmatprep.subr.bf16.mxu1 %v7560_v60 }
 0x34a   :  { %7380 = vmatpush3.bf16.msra.mxu0 %v7561_v63 }
 0x34b   :  { %7402 = vmatpush3.bf16.msra.mxu1 %v7562_v2  ;;  %7381 = vmatprep.subr.bf16.mxu0 %v7563_v3 }
 0x34c   :  { %7403 = vmatprep.subr.bf16.mxu1 %v7564_v4 }
 0x34e   :  { %7382 = vmatpush3.bf16.msra.mxu0 %v7565_v5 }
 0x34f   :  { %7404 = vmatpush3.bf16.msra.mxu1 %v7566_v6  ;;  %7383 = vmatprep.subr.bf16.mxu0 %v7567_v32 }
 0x350   :  { %7405 = vmatprep.subr.bf16.mxu1 %v7568_v7 }
 0x352   :  { %7384 = vmatpush3.bf16.msra.mxu0 %v7569_v9 }
 0x353   :  { %7406 = vmatpush3.bf16.msra.mxu1 %v7570_v33  ;;  %7385 = vmatprep.subr.bf16.mxu0 %v7571_v10 }
 0x354   :  { %7407 = vmatprep.subr.bf16.mxu1 %v7572_v39 }
 0x356   :  { %7386 = vmatpush3.bf16.msra.mxu0 %v7573_v15 }
 0x357   :  { %7408 = vmatpush3.bf16.msra.mxu1 %v7574_v1  ;;  %7415 = vmatprep.subr.bf16.mxu0 %v7575_v14 }
 0x358   :  { %7437 = vmatprep.subr.bf16.mxu1 %v7576_v53 }
 0x359   :  { %6383 = vmatmul.mubr.bf16.vlgmr.msra.gmra.mrb[16].mxu0 %v5823_v8 }
 0x35a   :  { %6423 = vmatmul.mubr.bf16.vlgmr.msra.gmra.mrb[16].mxu1 %v5825_v13  ;;  %7416 = vmatpush3.bf16.msra.mxu0 %v7577_v18 }
 0x35b   :  { %7438 = vmatpush3.bf16.msra.mxu1 %v7578_v19  ;;  %7417 = vmatprep.subr.bf16.mxu0 %v7579_v20 }
 0x35c   :  { %7439 = vmatprep.subr.bf16.mxu1 %v7580_v23  ;;  %v7306_v23 = vld [vmem:[%s10408_s6] ss:$0 sm:$0xff] }
 0x35e   :  { %7418 = vmatpush3.bf16.msra.mxu0 %v7581_v24 }
 0x35f   :  { %7440 = vmatpush3.bf16.msra.mxu1 %v7582_v30  ;;  %7419 = vmatprep.subr.bf16.mxu0 %v7583_v26 }
 0x360   :  { %7441 = vmatprep.subr.bf16.mxu1 %v7584_v28 }
 0x362   :  { %7420 = vmatpush3.bf16.msra.mxu0 %v7585_v35 }
 0x363   :  { %7442 = vmatpush3.bf16.msra.mxu1 %v7586_v37  ;;  %7421 = vmatprep.subr.bf16.mxu0 %v7587_v46 }
 0x364   :  { %7443 = vmatprep.subr.bf16.mxu1 %v7588_v38 }
 0x366   :  { %7422 = vmatpush3.bf16.msra.mxu0 %v7589_v41 }
 0x367   :  { %7444 = vmatpush3.bf16.msra.mxu1 %v7590_v42  ;;  %7423 = vmatprep.subr.bf16.mxu0 %v7591_v43 }
 0x368   :  { %7445 = vmatprep.subr.bf16.mxu1 %v7592_v34 }
 0x36a   :  { %7424 = vmatpush3.bf16.msra.mxu0 %v7593_v50 }
 0x36b   :  { %7446 = vmatpush3.bf16.msra.mxu1 %v7594_v62  ;;  %7425 = vmatprep.subr.bf16.mxu0 %v7595_v44 }
 0x36c   :  { %7447 = vmatprep.subr.bf16.mxu1 %v7596_v22 }
 0x36e   :  { %7426 = vmatpush3.bf16.msra.mxu0 %v7597_v45 }
 0x36f   :  { %7448 = vmatpush3.bf16.msra.mxu1 %v7598_v57  ;;  %7427 = vmatprep.subr.bf16.mxu0 %v7599_v47 }
 0x370   :  { %7449 = vmatprep.subr.bf16.mxu1 %v7600_v48 }
 0x372   :  { %7428 = vmatpush3.bf16.msra.mxu0 %v7601_v49 }
 0x373   :  { %7450 = vmatpush3.bf16.msra.mxu1 %v7602_v17  ;;  %7429 = vmatprep.subr.bf16.mxu0 %v7603_v51 }
 0x374   :  { %7451 = vmatprep.subr.bf16.mxu1 %v7604_v55 }
 0x376   :  { %7430 = vmatpush3.bf16.msra.mxu0 %v7605_v25 }
 0x377   :  { %7452 = vmatpush3.bf16.msra.mxu1 %v7606_v52 }
 0x40c   :  { %v5604_v59 = vpop.f32.mrb[12].mxu0 }
 0x40d   :  { %v7471_v60 = vadd.f32 %v5604_v59, %v2538_v54  ;;  %v5768_v61 = vpop.f32.mrb[12].mxu1  ;;  %v5606_v63 = vpop.f32.mrb[13].mxu0 }
 0x40e   :  { %v7473_v0 = vadd.f32 %v5768_v61, %v2546_v56  ;;  %v7472_v2 = vadd.f32 %v5606_v63, %v2542_v58  ;;  %v5770_v3 = vpop.f32.mrb[13].mxu1  ;;  %v5608_v27 = vpop.f32.mrb[14].mxu0 }
 0x40f   :  { %v7302_v4 = vmul.f32 -1.442695, %v7471_v60  ;;  %v7474_v5 = vadd.f32 %v5770_v3, %v2550_v31  ;;  %v5772_v6 = vpop.f32.mrb[14].mxu1  ;;  %v5609_v16 = vpop.f32.mrb[15].mxu0 }
 0x410   :  { %v7304_v32 = vmul.f32 -1.442695, %v7473_v0  ;;  %v7303_v7 = vmul.f32 -1.442695, %v7472_v2  ;;  %v5773_v9 = vpop.f32.mrb[15].mxu1 }
 0x411   :  { %7655 = vpow2.f32 %v7302_v4  ;;  %v7305_v36 = vmul.f32 -1.442695, %v7474_v5 }
 0x412   :  { %7657 = vpow2.f32 %v7304_v32 }
 0x413   :  { %7659 = vpow2.f32 %v7303_v7 }
 0x414   :  { %7661 = vpow2.f32 %v7305_v36 }
 0x41b   :  { %v7656_v29 = vpop.eup %7655 }
 0x41c   :  { %v7658_v40 = vpop.eup %7657  ;;  %v5803_v21 = vadd.f32 1.0, %v7656_v29 }
 0x41d   :  { %v7660_v33 = vpop.eup %7659  ;;  %v5805_v10 = vadd.f32 1.0, %v7658_v40 }
 0x41e   :  { %v7662_v39 = vpop.eup %7661  ;;  %7663 = vrcp.f32 %v5803_v21  ;;  %v5804_v15 = vadd.f32 1.0, %v7660_v33 }
 0x41f   :  { %7665 = vrcp.f32 %v5805_v10  ;;  %v5806_v1 = vadd.f32 1.0, %v7662_v39 }
 0x420   :  { %7667 = vrcp.f32 %v5804_v15 }
 0x421   :  { %7669 = vrcp.f32 %v5806_v1 }
 0x428   :  { %v7664_v12 = vpop.eup %7663 }
 0x429   :  { %v7666_v11 = vpop.eup %7665  ;;  %v5827_v19 = vpack.c.bf16 %v7664_v12, %v7664_v12 }
 0x42a   :  { %v7668_v8 = vpop.eup %7667  ;;  %v5829_v30 = vpack.c.bf16 %v7666_v11, %v7666_v11 }
 0x42b   :  { %v7670_v13 = vpop.eup %7669  ;;  %v5828_v14 = vpack.c.bf16 %v7668_v8, %v7668_v8 }
 0x42c   :  { %v7387_v53 = vpop.f32.mrb[16].mxu0  ;;  %v5830_v18 = vpack.c.bf16 %v7670_v13, %v7670_v13 }
 0x42d   :  { %v7409_v20 = vpop.f32.mrb[16].mxu1  ;;  %6462 = vmatprep.mubr.bf16.mxu0 %v5828_v14  ;;  %v7388_v24 = vpop.f32.mrb[17].mxu0 }
 0x42e   :  { %6502 = vmatprep.mubr.bf16.mxu1 %v5830_v18  ;;  %v7389_v26 = vadd.f32 %v7388_v24, %v7387_v53  ;;  %v7410_v28 = vpop.f32.mrb[17].mxu1  ;;  %6463 = vmatmul.mubr.bf16.vlgmr.msra.gmra.mrb[20].mxu0 %v5827_v19  ;;  %v7390_v35 = vpop.f32.mrb[18].mxu0 }
 0x42f   :  { %v7411_v37 = vadd.f32 %v7410_v28, %v7409_v20  ;;  %6503 = vmatmul.mubr.bf16.vlgmr.msra.gmra.mrb[20].mxu1 %v5829_v30  ;;  %v7412_v46 = vpop.f32.mrb[18].mxu1  ;;  %v7391_v38 = vpop.f32.mrb[19].mxu0 }
 0x430   :  { %v6385_v41 = vadd.f32 %v7389_v26, %v7306_v23  ;;  %v7413_v42 = vpop.f32.mrb[19].mxu1 }
 0x432   :  { %v6425_v43 = vadd.f32 %v7411_v37, %v6385_v41 }
 0x501   :  { %v7431_v34 = vpop.f32.mrb[20].mxu0 }
 0x502   :  { %v7453_v50 = vpop.f32.mrb[20].mxu1  ;;  %v7432_v62 = vpop.f32.mrb[21].mxu0 }
 0x503   :  { %v7433_v44 = vadd.f32 %v7432_v62, %v7431_v34  ;;  %v7454_v22 = vpop.f32.mrb[21].mxu1  ;;  %v7434_v45 = vpop.f32.mrb[22].mxu0 }
 0x504   :  { %v7455_v57 = vadd.f32 %v7454_v22, %v7453_v50  ;;  %v7456_v47 = vpop.f32.mrb[22].mxu1  ;;  %v7435_v48 = vpop.f32.mrb[23].mxu0 }
 0x505   :  { %v6465_v49 = vadd.f32 %v7433_v44, %v6425_v43  ;;  %v7457_v17 = vpop.f32.mrb[23].mxu1 }
 0x507   :  { %v6505_v51 = vadd.f32 %v7455_v57, %v6465_v49 }
 0x509   :  { %vm6510_vm0 = vcmp.ge.f32.partialorder %v6505_v51, 0.0  ;;  %v6511_v55 = vmul.f32 0.01, %v6505_v51 }
 0x50b   :  { %v6512_v25 = vsel %vm6510_vm0, %v6505_v51, %v6511_v55 }
 0x50c   :  { %6513 = vst [vmem:[%s10409_s7] sm:$0xff] %v6512_v25 }

</bundles_post_ra>
